<compile_context>
chip_gen: v7x
topology: tpu7x:2x2x1
jax: 0.10.0
libtpu: 0.0.40
codegen_flags: <defaults>
</compile_context>

<pallas_src>
import math

import jax
import jax.numpy as jnp
from jax.experimental import pallas as pl
from jax.experimental.pallas import tpu as pltpu

# ----------------------------- configuration (small shapes) -----------------------------
STATE_DIM = 32           # state_dim
INPUT_DIM = 16           # input_dim
CODE_DIM = 16            # code_dim
SIG_DIM = 8              # signature_dim
NUM_INPUT_LATENTS = 4
NUM_MEDIATOR_LATENTS = 8
NUM_OUTPUT_LATENTS = 4
NUM_ITERATIONS = 2
NUM_HEADS = 1            # default num_heads=1
HEAD_DIM = 16            # small head_dim
FFN_DIM = 4 * STATE_DIM  # ffn_capacity_factor=1.0 -> 4x expansion
LAYER_SCALE_INIT = 1e-6
BATCH = 2
SEQ = 8


# --------------------------------- fused Pallas kernel -----------------------------------
def _latent_graph_kernel(
    x_ref,                                            # (S, Din)        raw inputs (batch-squeezed)
    isig_ref, icode_ref,                              # (NI, SIG), (NI, C)
    msig_ref, mcode_ref,                              # (NM, SIG), (NM, C)
    osig_ref, ocode_ref,                              # (NO, SIG), (NO, C)
    seedw_ref, seedb_ref,                             # (C, D) bf16, (1, D)
    lnr_ref, ls_ref,                                  # (3, 4, D), (3, 2, D)   [read_in, prop, read_out]
    wq_ref, bq_ref,                                   # (3, D, Hd) bf16, (3, 1, Hd)
    bkv_ref,                                          # (3, 1, 2Hd)
    wo_ref, bo_ref,                                   # (3, Hd, D) bf16, (3, 1, D)
    w1_ref, b1_ref,                                   # (3, D, F) bf16, (3, 1, F)
    w2_ref, b2_ref,                                   # (3, F, D) bf16, (3, 1, D)
    wcr_ref,                                          # (3, C, Hd+D+F+D) bf16  [wcq|wco|wc1|wc2]
    lns_in_ref, wkv_in_ref,                           # (2, Din), (Din, 2Hd) bf16
    lns_pm_ref, wkv_pm_ref, wcs_ref,                  # (2, 2, D), (2, D, 2Hd) bf16, (2, C, 2Hd) bf16
    inp_out_ref, med_out_ref, out_out_ref,            # (NI, D), (NM, D), (NO, D)
):
    D, Hd, F = STATE_DIM, HEAD_DIM, FFN_DIM
    inv_sqrt_hd = 1.0 / math.sqrt(Hd)
    inv_sqrt_sig = 1.0 / math.sqrt(SIG_DIM)

    def bdot(a, b):
        # bf16 operands, f32 accumulation (fewer MXU passes than f32 x f32).
        return jnp.dot(a.astype(jnp.bfloat16), b.astype(jnp.bfloat16),
                       preferred_element_type=jnp.float32)

    def bdot_t(a, b):
        # a @ b.T with bf16 operands, f32 accumulation.
        return jnp.dot(a.astype(jnp.bfloat16), b.T.astype(jnp.bfloat16),
                       preferred_element_type=jnp.float32)

    def layer_norm(x, g, b):
        mu = jnp.mean(x, axis=-1, keepdims=True)
        xc = x - mu
        var = jnp.mean(xc * xc, axis=-1, keepdims=True)
        return xc * jax.lax.rsqrt(var + 1e-5) * g + b

    def receiver_mods(bidx, rcode):
        # Merged ModFC code projections for the receiver side:
        #   1 + rcode @ [wcq | wco | wc1 | wc2]  (single matmul, then lane slices).
        m = 1.0 + bdot(rcode, wcr_ref[bidx])
        return (m[:, :Hd], m[:, Hd:Hd + D], m[:, Hd + D:Hd + D + F], m[:, Hd + D + F:])

    def sender_kv_latent(pidx, s, modkv):
        # Merged K|V projection for latent senders (pidx: 0=propagator, 1=read-out).
        lns = lns_pm_ref[pidx]
        s_n = layer_norm(s, lns[0:1], lns[1:2])
        kv = (bdot(s_n, wkv_pm_ref[pidx]) + bkv_ref[pidx + 1]) * modkv
        return kv[:, :Hd], kv[:, Hd:]

    def apply_block(bidx, r, mods, segments):
        """One code-modulated cross-attention + FFN block (pre-LN, layer-scale residuals).

        segments: list of (k, v, sig_bias) sender segments; softmax is computed jointly
        across segments — mathematically identical to attending over their concatenation,
        but avoids in-kernel concatenation and lets invariant segments be hoisted.
        """
        modq, modo, mod1, mod2 = mods
        lnr = lnr_ref[bidx]
        ls = ls_ref[bidx]

        # --- attention sub-block ---
        x = layer_norm(r, lnr[0:1], lnr[1:2])
        # 1/sqrt(head_dim) folded into q (one tiny VPU multiply instead of dividing logits).
        q = ((bdot(x, wq_ref[bidx]) + bq_ref[bidx]) * modq) * inv_sqrt_hd
        logits = []
        for k, v, bias in segments:
            l = bdot_t(q, k)
            if bias is not None:
                l = l + bias
            logits.append(l)
        m = logits[0].max(axis=-1, keepdims=True)
        for l in logits[1:]:
            m = jnp.maximum(m, l.max(axis=-1, keepdims=True))
        p0 = jnp.exp(logits[0] - m)
        den = jnp.sum(p0, axis=-1, keepdims=True)
        num = bdot(p0, segments[0][1])
        for l, (k, v, bias) in zip(logits[1:], segments[1:]):
            p = jnp.exp(l - m)
            den = den + jnp.sum(p, axis=-1, keepdims=True)
            num = num + bdot(p, v)
        o = num * pl.reciprocal(den, approx=True)            # softmax denom on the EUP slot
        o = (bdot(o, wo_ref[bidx]) + bo_ref[bidx]) * modo
        r = r + ls[0:1] * o                                   # DropPath(p=0.0) == identity

        # --- FFN sub-block ---
        y = layer_norm(r, lnr[2:3], lnr[3:4])
        # TODO(synk): PyTorch nn.GELU defaults to exact erf; tanh approximation used here.
        h = jax.nn.gelu((bdot(y, w1_ref[bidx]) + b1_ref[bidx]) * mod1, approximate=True)
        f = (bdot(h, w2_ref[bidx]) + b2_ref[bidx]) * mod2
        return r + ls[1:2] * f

    isig, msig, osig = isig_ref[...], msig_ref[...], osig_ref[...]
    icode, mcode, ocode = icode_ref[...], mcode_ref[...], ocode_ref[...]

    # ---- latent seeding (use_latent_seeder=True): states = Linear(codes) ----
    seed_w, seed_b = seedw_ref[...], seedb_ref[...]
    inp = bdot(icode, seed_w) + seed_b            # (NI, D)
    med = bdot(mcode, seed_w) + seed_b            # (NM, D)
    outp = bdot(ocode, seed_w) + seed_b           # (NO, D)

    # ---- read-in: input latents attend over raw inputs (no sender signatures / codes) ----
    lns_in = lns_in_ref[...]
    s_n = layer_norm(x_ref[...], lns_in[0:1], lns_in[1:2])
    kv = bdot(s_n, wkv_in_ref[...]) + bkv_ref[0]
    mods_in = receiver_mods(0, icode)
    inp = apply_block(0, inp, mods_in, [(kv[:, :Hd], kv[:, Hd:], None)])

    # ---- propagators: mediator latents attend over [input, mediator] latents ----
    # share_propagator_weights=True and share_codes_between_iterations=True, so the
    # receiver/sender code modulations, the signature bias and the K/V of the (frozen)
    # input-latent senders are loop-invariant: compute them once, outside the loop.
    mods_p = receiver_mods(1, mcode)
    modk_in_p = 1.0 + bdot(icode, wcs_ref[0])
    modk_med_p = 1.0 + bdot(mcode, wcs_ref[0])
    bias_p_in = jnp.dot(msig, isig.T, preferred_element_type=jnp.float32) * inv_sqrt_sig
    bias_p_med = jnp.dot(msig, msig.T, preferred_element_type=jnp.float32) * inv_sqrt_sig
    k_in_p, v_in_p = sender_kv_latent(0, inp, modk_in_p)
    for _ in range(NUM_ITERATIONS):
        k_med, v_med = sender_kv_latent(0, med, modk_med_p)
        med = apply_block(1, med, mods_p,
                          [(k_in_p, v_in_p, bias_p_in), (k_med, v_med, bias_p_med)])

    # ---- read-out: output latents attend over [input, mediator] latents ----
    mods_o = receiver_mods(2, ocode)
    modk_in_o = 1.0 + bdot(icode, wcs_ref[1])
    modk_med_o = 1.0 + bdot(mcode, wcs_ref[1])
    bias_o_in = jnp.dot(osig, isig.T, preferred_element_type=jnp.float32) * inv_sqrt_sig
    bias_o_med = jnp.dot(osig, msig.T, preferred_element_type=jnp.float32) * inv_sqrt_sig
    k_in_o, v_in_o = sender_kv_latent(1, inp, modk_in_o)
    k_med_o, v_med_o = sender_kv_latent(1, med, modk_med_o)
    outp = apply_block(2, outp, mods_o,
                       [(k_in_o, v_in_o, bias_o_in), (k_med_o, v_med_o, bias_o_med)])

    inp_out_ref[...] = inp
    med_out_ref[...] = med
    out_out_ref[...] = outp


# --------------------------------- parameters --------------------------------------------
def _dense(key, fan_in, fan_out):
    return jax.random.normal(key, (fan_in, fan_out), jnp.float32) * 0.02


def init_block_params(key, d_sender):
    """One cross-attention + FFN block with packed (merged) parameter slabs."""
    D, C, Hd, F = STATE_DIM, CODE_DIM, HEAD_DIM, FFN_DIM
    ks = jax.random.split(key, 8)
    return {
        # rows: [ln1_gamma, ln1_beta, ln2_gamma, ln2_beta]
        "ln_r": jnp.concatenate([jnp.ones((1, D)), jnp.zeros((1, D)),
                                 jnp.ones((1, D)), jnp.zeros((1, D))], axis=0),
        # rows: [lns_gamma, lns_beta] (sender LayerNorm)
        "ln_s": jnp.concatenate([jnp.ones((1, d_sender)), jnp.zeros((1, d_sender))], axis=0),
        # rows: [layer_scale_attn, layer_scale_ffn]
        "ls": jnp.full((2, D), LAYER_SCALE_INIT, jnp.float32),
        "wq": _dense(ks[0], D, Hd), "bq": jnp.zeros((1, Hd)),
        "wkv": _dense(ks[1], d_sender, 2 * Hd),            # [wk | wv]
        "bkv": jnp.zeros((1, 2 * Hd)),                     # [bk | bv]
        "wo": _dense(ks[2], Hd, D), "bo": jnp.zeros((1, D)),
        "w1": _dense(ks[3], D, F), "b1": jnp.zeros((1, F)),
        "w2": _dense(ks[4], F, D), "b2": jnp.zeros((1, D)),
        "wc_r": _dense(ks[5], C, Hd + D + F + D),          # [wcq | wco | wc1 | wc2]
        "wc_s": _dense(ks[6], C, 2 * Hd),                  # [wck | wcv]
    }


def init_latent_graph_params(key):
    ks = jax.random.split(key, 10)
    return {
        # Latents: signatures + codes
        "input_sigs": jax.random.normal(ks[0], (NUM_INPUT_LATENTS, SIG_DIM), jnp.float32),
        "input_codes": jax.random.normal(ks[1], (NUM_INPUT_LATENTS, CODE_DIM), jnp.float32),
        "mediator_sigs": jax.random.normal(ks[2], (NUM_MEDIATOR_LATENTS, SIG_DIM), jnp.float32),
        "mediator_codes": jax.random.normal(ks[3], (NUM_MEDIATOR_LATENTS, CODE_DIM), jnp.float32),
        "output_sigs": jax.random.normal(ks[4], (NUM_OUTPUT_LATENTS, SIG_DIM), jnp.float32),
        "output_codes": jax.random.normal(ks[5], (NUM_OUTPUT_LATENTS, CODE_DIM), jnp.float32),
        # LatentSeeder
        "seed_w": _dense(ks[6], CODE_DIM, STATE_DIM),
        "seed_b": jnp.zeros((1, STATE_DIM), jnp.float32),
        # Blocks (share_propagator_weights=True -> single propagator reused every iteration)
        "read_in": init_block_params(ks[7], INPUT_DIM),
        "propagator": init_block_params(ks[8], STATE_DIM),
        "read_out": init_block_params(ks[9], STATE_DIM),
    }


def _pack_operands(params):
    """Pack per-block params into a few stacked slabs; matmul weights stored in bf16."""
    bf = lambda a: a.astype(jnp.bfloat16)
    blocks = [params["read_in"], params["propagator"], params["read_out"]]
    pm = [params["propagator"], params["read_out"]]
    st = lambda name: jnp.stack([b[name] for b in blocks])
    st_pm = lambda name: jnp.stack([b[name] for b in pm])
    return [
        params["input_sigs"], params["input_codes"],
        params["mediator_sigs"], params["mediator_codes"],
        params["output_sigs"], params["output_codes"],
        bf(params["seed_w"]), params["seed_b"],
        st("ln_r"), st("ls"),
        bf(st("wq")), st("bq"),
        st("bkv"),
        bf(st("wo")), st("bo"),
        bf(st("w1")), st("b1"),
        bf(st("w2")), st("b2"),
        bf(st("wc_r")),
        params["read_in"]["ln_s"], bf(params["read_in"]["wkv"]),
        st_pm("ln_s"), bf(st_pm("wkv")), bf(st_pm("wc_s")),
    ]


# --------------------------------- forward -----------------------------------------------
def latent_graph_forward(params, inputs):
    B, S, Din = inputs.shape
    D = STATE_DIM
    operands = _pack_operands(params)

    in_specs = [pl.BlockSpec((None, S, Din), lambda b: (b, 0, 0))]
    # Parameter slabs: full-array blocks with constant block index -> fetched once.
    in_specs += [pl.BlockSpec(op.shape, lambda b, _nd=op.ndim: (0,) * _nd) for op in operands]

    out_shape = (
        jax.ShapeDtypeStruct((B, NUM_INPUT_LATENTS, D), jnp.float32),
        jax.ShapeDtypeStruct((B, NUM_MEDIATOR_LATENTS, D), jnp.float32),
        jax.ShapeDtypeStruct((B, NUM_OUTPUT_LATENTS, D), jnp.float32),
    )
    out_specs = (
        pl.BlockSpec((None, NUM_INPUT_LATENTS, D), lambda b: (b, 0, 0)),
        pl.BlockSpec((None, NUM_MEDIATOR_LATENTS, D), lambda b: (b, 0, 0)),
        pl.BlockSpec((None, NUM_OUTPUT_LATENTS, D), lambda b: (b, 0, 0)),
    )

    inp, med, outp = pl.pallas_call(
        _latent_graph_kernel,
        out_shape=out_shape,
        grid=(B,),                                           # parallel over batch (2 TCs on v7x)
        in_specs=in_specs,
        out_specs=out_specs,
        compiler_params=pltpu.CompilerParams(dimension_semantics=("parallel",)),
    )(inputs, *operands)

    return dict(input_states=inp, mediator_states=med, output_states=outp)


# --------------------------------- main ---------------------------------------------------
if __name__ == "__main__":
    key = jax.random.PRNGKey(0)
    k_params, k_inputs = jax.random.split(key)
    params = init_latent_graph_params(k_params)
    inputs = jax.random.normal(k_inputs, (BATCH, SEQ, INPUT_DIM), jnp.float32)

    fwd = jax.jit(latent_graph_forward)
    out = fwd(params, inputs)
    jax.block_until_ready(out)

    assert out["input_states"].shape == (BATCH, NUM_INPUT_LATENTS, STATE_DIM)
    assert out["mediator_states"].shape == (BATCH, NUM_MEDIATOR_LATENTS, STATE_DIM)
    assert out["output_states"].shape == (BATCH, NUM_OUTPUT_LATENTS, STATE_DIM)
    assert all(bool(jnp.all(jnp.isfinite(v))) for v in out.values())
    print("KERNEL_OK")
</pallas_src>

<mosaic_0001>
module attributes {stable_mosaic.version = 11 : i64} {
  func.func @_latent_graph_kernel(%arg0: i32, %arg1: memref<1x8x16xf32, #tpu.memory_space<vmem>>, %arg2: memref<4x8xf32, #tpu.memory_space<vmem>>, %arg3: memref<4x16xf32, #tpu.memory_space<vmem>>, %arg4: memref<8x8xf32, #tpu.memory_space<vmem>>, %arg5: memref<8x16xf32, #tpu.memory_space<vmem>>, %arg6: memref<4x8xf32, #tpu.memory_space<vmem>>, %arg7: memref<4x16xf32, #tpu.memory_space<vmem>>, %arg8: memref<16x32xbf16, #tpu.memory_space<vmem>>, %arg9: memref<1x32xf32, #tpu.memory_space<vmem>>, %arg10: memref<3x4x32xf32, #tpu.memory_space<vmem>>, %arg11: memref<3x2x32xf32, #tpu.memory_space<vmem>>, %arg12: memref<3x32x16xbf16, #tpu.memory_space<vmem>>, %arg13: memref<3x1x16xf32, #tpu.memory_space<vmem>>, %arg14: memref<3x1x32xf32, #tpu.memory_space<vmem>>, %arg15: memref<3x16x32xbf16, #tpu.memory_space<vmem>>, %arg16: memref<3x1x32xf32, #tpu.memory_space<vmem>>, %arg17: memref<3x32x128xbf16, #tpu.memory_space<vmem>>, %arg18: memref<3x1x128xf32, #tpu.memory_space<vmem>>, %arg19: memref<3x128x32xbf16, #tpu.memory_space<vmem>>, %arg20: memref<3x1x32xf32, #tpu.memory_space<vmem>>, %arg21: memref<3x16x208xbf16, #tpu.memory_space<vmem>>, %arg22: memref<2x16xf32, #tpu.memory_space<vmem>>, %arg23: memref<16x32xbf16, #tpu.memory_space<vmem>>, %arg24: memref<2x2x32xf32, #tpu.memory_space<vmem>>, %arg25: memref<2x32x32xbf16, #tpu.memory_space<vmem>>, %arg26: memref<2x16x32xbf16, #tpu.memory_space<vmem>>, %arg27: memref<1x4x32xf32, #tpu.memory_space<vmem>>, %arg28: memref<1x8x32xf32, #tpu.memory_space<vmem>>, %arg29: memref<1x4x32xf32, #tpu.memory_space<vmem>>) attributes {dimension_semantics = [#tpu.dimension_semantics<parallel>], iteration_bounds = array<i64: 2>, scalar_prefetch = 0 : i64, scratch_operands = 0 : i64, tpu.core_type = #tpu.core_type<tc>, window_params = [{transform_indices = @transform_0, window_bounds = array<i64: 1, 8, 16>}, {pipeline_mode = #tpu.pipeline_mode<synchronous>, transform_indices = @transform_1, window_bounds = array<i64: 4, 8>}, {pipeline_mode = #tpu.pipeline_mode<synchronous>, transform_indices = @transform_2, window_bounds = array<i64: 4, 16>}, {pipeline_mode = #tpu.pipeline_mode<synchronous>, transform_indices = @transform_3, window_bounds = array<i64: 8, 8>}, {pipeline_mode = #tpu.pipeline_mode<synchronous>, transform_indices = @transform_4, window_bounds = array<i64: 8, 16>}, {pipeline_mode = #tpu.pipeline_mode<synchronous>, transform_indices = @transform_5, window_bounds = array<i64: 4, 8>}, {pipeline_mode = #tpu.pipeline_mode<synchronous>, transform_indices = @transform_6, window_bounds = array<i64: 4, 16>}, {pipeline_mode = #tpu.pipeline_mode<synchronous>, transform_indices = @transform_7, window_bounds = array<i64: 16, 32>}, {pipeline_mode = #tpu.pipeline_mode<synchronous>, transform_indices = @transform_8, window_bounds = array<i64: 1, 32>}, {pipeline_mode = #tpu.pipeline_mode<synchronous>, transform_indices = @transform_9, window_bounds = array<i64: 3, 4, 32>}, {pipeline_mode = #tpu.pipeline_mode<synchronous>, transform_indices = @transform_10, window_bounds = array<i64: 3, 2, 32>}, {pipeline_mode = #tpu.pipeline_mode<synchronous>, transform_indices = @transform_11, window_bounds = array<i64: 3, 32, 16>}, {pipeline_mode = #tpu.pipeline_mode<synchronous>, transform_indices = @transform_12, window_bounds = array<i64: 3, 1, 16>}, {pipeline_mode = #tpu.pipeline_mode<synchronous>, transform_indices = @transform_13, window_bounds = array<i64: 3, 1, 32>}, {pipeline_mode = #tpu.pipeline_mode<synchronous>, transform_indices = @transform_14, window_bounds = array<i64: 3, 16, 32>}, {pipeline_mode = #tpu.pipeline_mode<synchronous>, transform_indices = @transform_15, window_bounds = array<i64: 3, 1, 32>}, {pipeline_mode = #tpu.pipeline_mode<synchronous>, transform_indices = @transform_16, window_bounds = array<i64: 3, 32, 128>}, {pipeline_mode = #tpu.pipeline_mode<synchronous>, transform_indices = @transform_17, window_bounds = array<i64: 3, 1, 128>}, {pipeline_mode = #tpu.pipeline_mode<synchronous>, transform_indices = @transform_18, window_bounds = array<i64: 3, 128, 32>}, {pipeline_mode = #tpu.pipeline_mode<synchronous>, transform_indices = @transform_19, window_bounds = array<i64: 3, 1, 32>}, {pipeline_mode = #tpu.pipeline_mode<synchronous>, transform_indices = @transform_20, window_bounds = array<i64: 3, 16, 208>}, {pipeline_mode = #tpu.pipeline_mode<synchronous>, transform_indices = @transform_21, window_bounds = array<i64: 2, 16>}, {pipeline_mode = #tpu.pipeline_mode<synchronous>, transform_indices = @transform_22, window_bounds = array<i64: 16, 32>}, {pipeline_mode = #tpu.pipeline_mode<synchronous>, transform_indices = @transform_23, window_bounds = array<i64: 2, 2, 32>}, {pipeline_mode = #tpu.pipeline_mode<synchronous>, transform_indices = @transform_24, window_bounds = array<i64: 2, 32, 32>}, {pipeline_mode = #tpu.pipeline_mode<synchronous>, transform_indices = @transform_25, window_bounds = array<i64: 2, 16, 32>}, {transform_indices = @transform_26, window_bounds = array<i64: 1, 4, 32>}, {transform_indices = @transform_27, window_bounds = array<i64: 1, 8, 32>}, {transform_indices = @transform_28, window_bounds = array<i64: 1, 4, 32>}]} {
    %c0 = arith.constant 0 : index
    %c0_0 = arith.constant 0 : index
    %0 = vector.load %arg2[%c0, %c0_0] : memref<4x8xf32, #tpu.memory_space<vmem>>, vector<4x8xf32>
    %c0_1 = arith.constant 0 : index
    %c0_2 = arith.constant 0 : index
    %1 = vector.load %arg4[%c0_1, %c0_2] : memref<8x8xf32, #tpu.memory_space<vmem>>, vector<8x8xf32>
    %c0_3 = arith.constant 0 : index
    %c0_4 = arith.constant 0 : index
    %2 = vector.load %arg6[%c0_3, %c0_4] : memref<4x8xf32, #tpu.memory_space<vmem>>, vector<4x8xf32>
    %c0_5 = arith.constant 0 : index
    %c0_6 = arith.constant 0 : index
    %3 = vector.load %arg3[%c0_5, %c0_6] : memref<4x16xf32, #tpu.memory_space<vmem>>, vector<4x16xf32>
    %c0_7 = arith.constant 0 : index
    %c0_8 = arith.constant 0 : index
    %4 = vector.load %arg5[%c0_7, %c0_8] : memref<8x16xf32, #tpu.memory_space<vmem>>, vector<8x16xf32>
    %c0_9 = arith.constant 0 : index
    %c0_10 = arith.constant 0 : index
    %5 = vector.load %arg7[%c0_9, %c0_10] : memref<4x16xf32, #tpu.memory_space<vmem>>, vector<4x16xf32>
    %c0_11 = arith.constant 0 : index
    %c0_12 = arith.constant 0 : index
    %6 = vector.load %arg8[%c0_11, %c0_12] : memref<16x32xbf16, #tpu.memory_space<vmem>>, vector<16x32xbf16>
    %c0_13 = arith.constant 0 : index
    %c0_14 = arith.constant 0 : index
    %7 = vector.load %arg9[%c0_13, %c0_14] : memref<1x32xf32, #tpu.memory_space<vmem>>, vector<1x32xf32>
    %8 = arith.truncf %3 : vector<4x16xf32> to vector<4x16xbf16>
    %cst = arith.constant dense<0.000000e+00> : vector<4x32xf32>
    %9 = tpu.matmul %8, %6, %cst {dimension_numbers = #tpu.dot_dimension_numbers<[1], [0], [0], [1], [0, 0, 1, 1], [], []>} : vector<4x16xbf16>, vector<16x32xbf16>, vector<4x32xf32> -> vector<4x32xf32>
    %10 = vector.broadcast %7 : vector<1x32xf32> to vector<4x32xf32>
    %11 = arith.addf %9, %10 : vector<4x32xf32>
    %12 = arith.truncf %4 : vector<8x16xf32> to vector<8x16xbf16>
    %cst_15 = arith.constant dense<0.000000e+00> : vector<8x32xf32>
    %13 = tpu.matmul %12, %6, %cst_15 {dimension_numbers = #tpu.dot_dimension_numbers<[1], [0], [0], [1], [0, 0, 1, 1], [], []>} : vector<8x16xbf16>, vector<16x32xbf16>, vector<8x32xf32> -> vector<8x32xf32>
    %14 = vector.broadcast %7 : vector<1x32xf32> to vector<8x32xf32>
    %15 = arith.addf %13, %14 : vector<8x32xf32>
    %16 = arith.truncf %5 : vector<4x16xf32> to vector<4x16xbf16>
    %cst_16 = arith.constant dense<0.000000e+00> : vector<4x32xf32>
    %17 = tpu.matmul %16, %6, %cst_16 {dimension_numbers = #tpu.dot_dimension_numbers<[1], [0], [0], [1], [0, 0, 1, 1], [], []>} : vector<4x16xbf16>, vector<16x32xbf16>, vector<4x32xf32> -> vector<4x32xf32>
    %18 = vector.broadcast %7 : vector<1x32xf32> to vector<4x32xf32>
    %19 = arith.addf %17, %18 : vector<4x32xf32>
    %c0_17 = arith.constant 0 : index
    %c0_18 = arith.constant 0 : index
    %20 = vector.load %arg22[%c0_17, %c0_18] : memref<2x16xf32, #tpu.memory_space<vmem>>, vector<2x16xf32>
    %c0_19 = arith.constant 0 : index
    %c0_20 = arith.constant 0 : index
    %c0_21 = arith.constant 0 : index
    %21 = vector.load %arg1[%c0_19, %c0_20, %c0_21] : memref<1x8x16xf32, #tpu.memory_space<vmem>>, vector<1x8x16xf32>
    %22 = vector.shape_cast %21 : vector<1x8x16xf32> to vector<8x16xf32>
    %23 = vector.extract_strided_slice %20 {offsets = [0, 0], sizes = [1, 16], strides = [1, 1]} : vector<2x16xf32> to vector<1x16xf32>
    %24 = vector.extract_strided_slice %20 {offsets = [1, 0], sizes = [1, 16], strides = [1, 1]} : vector<2x16xf32> to vector<1x16xf32>
    %cst_22 = arith.constant dense<0.000000e+00> : vector<8xf32>
    %25 = vector.multi_reduction <add>, %22, %cst_22 [1] : vector<8x16xf32> to vector<8xf32>
    %26 = vector.shape_cast %25 : vector<8xf32> to vector<8x1xf32>
    %cst_23 = arith.constant 1.600000e+01 : f32
    %27 = vector.broadcast %cst_23 : f32 to vector<8x1xf32>
    %28 = arith.divf %26, %27 : vector<8x1xf32>
    %29 = vector.broadcast %28 : vector<8x1xf32> to vector<8x16xf32>
    %30 = arith.subf %22, %29 : vector<8x16xf32>
    %31 = arith.mulf %30, %30 : vector<8x16xf32>
    %cst_24 = arith.constant dense<0.000000e+00> : vector<8xf32>
    %32 = vector.multi_reduction <add>, %31, %cst_24 [1] : vector<8x16xf32> to vector<8xf32>
    %33 = vector.shape_cast %32 : vector<8xf32> to vector<8x1xf32>
    %cst_25 = arith.constant 1.600000e+01 : f32
    %34 = vector.broadcast %cst_25 : f32 to vector<8x1xf32>
    %35 = arith.divf %33, %34 : vector<8x1xf32>
    %cst_26 = arith.constant 9.99999974E-6 : f32
    %36 = vector.broadcast %cst_26 : f32 to vector<8x1xf32>
    %37 = arith.addf %35, %36 : vector<8x1xf32>
    %38 = math.rsqrt %37 : vector<8x1xf32>
    %39 = vector.broadcast %38 : vector<8x1xf32> to vector<8x16xf32>
    %40 = arith.mulf %30, %39 : vector<8x16xf32>
    %41 = vector.broadcast %23 : vector<1x16xf32> to vector<8x16xf32>
    %42 = arith.mulf %40, %41 : vector<8x16xf32>
    %43 = vector.broadcast %24 : vector<1x16xf32> to vector<8x16xf32>
    %44 = arith.addf %42, %43 : vector<8x16xf32>
    %c0_27 = arith.constant 0 : index
    %c0_28 = arith.constant 0 : index
    %45 = vector.load %arg23[%c0_27, %c0_28] : memref<16x32xbf16, #tpu.memory_space<vmem>>, vector<16x32xbf16>
    %46 = arith.truncf %44 : vector<8x16xf32> to vector<8x16xbf16>
    %cst_29 = arith.constant dense<0.000000e+00> : vector<8x32xf32>
    %47 = tpu.matmul %46, %45, %cst_29 {dimension_numbers = #tpu.dot_dimension_numbers<[1], [0], [0], [1], [0, 0, 1, 1], [], []>} : vector<8x16xbf16>, vector<16x32xbf16>, vector<8x32xf32> -> vector<8x32xf32>
    %c0_30 = arith.constant 0 : index
    %c0_31 = arith.constant 0 : index
    %c0_32 = arith.constant 0 : index
    %48 = vector.load %arg14[%c0_30, %c0_31, %c0_32] : memref<3x1x32xf32, #tpu.memory_space<vmem>>, vector<1x1x32xf32>
    %49 = vector.shape_cast %48 : vector<1x1x32xf32> to vector<1x32xf32>
    %50 = vector.broadcast %49 : vector<1x32xf32> to vector<8x32xf32>
    %51 = arith.addf %47, %50 : vector<8x32xf32>
    %c0_33 = arith.constant 0 : index
    %c0_34 = arith.constant 0 : index
    %c0_35 = arith.constant 0 : index
    %52 = vector.load %arg21[%c0_33, %c0_34, %c0_35] : memref<3x16x208xbf16, #tpu.memory_space<vmem>>, vector<1x16x208xbf16>
    %53 = vector.shape_cast %52 : vector<1x16x208xbf16> to vector<16x208xbf16>
    %54 = arith.truncf %3 : vector<4x16xf32> to vector<4x16xbf16>
    %cst_36 = arith.constant dense<0.000000e+00> : vector<4x208xf32>
    %55 = tpu.matmul %54, %53, %cst_36 {dimension_numbers = #tpu.dot_dimension_numbers<[1], [0], [0], [1], [0, 0, 1, 1], [], []>} : vector<4x16xbf16>, vector<16x208xbf16>, vector<4x208xf32> -> vector<4x208xf32>
    %cst_37 = arith.constant 1.000000e+00 : f32
    %56 = vector.broadcast %cst_37 : f32 to vector<4x208xf32>
    %57 = arith.addf %56, %55 : vector<4x208xf32>
    %58 = vector.extract_strided_slice %57 {offsets = [0, 0], sizes = [4, 16], strides = [1, 1]} : vector<4x208xf32> to vector<4x16xf32>
    %59 = vector.extract_strided_slice %57 {offsets = [0, 16], sizes = [4, 32], strides = [1, 1]} : vector<4x208xf32> to vector<4x32xf32>
    %60 = vector.extract_strided_slice %57 {offsets = [0, 48], sizes = [4, 128], strides = [1, 1]} : vector<4x208xf32> to vector<4x128xf32>
    %61 = vector.extract_strided_slice %57 {offsets = [0, 176], sizes = [4, 32], strides = [1, 1]} : vector<4x208xf32> to vector<4x32xf32>
    %62 = vector.extract_strided_slice %51 {offsets = [0, 0], sizes = [8, 16], strides = [1, 1]} : vector<8x32xf32> to vector<8x16xf32>
    %63 = vector.extract_strided_slice %51 {offsets = [0, 16], sizes = [8, 16], strides = [1, 1]} : vector<8x32xf32> to vector<8x16xf32>
    %c0_38 = arith.constant 0 : index
    %c0_39 = arith.constant 0 : index
    %c0_40 = arith.constant 0 : index
    %64 = vector.load %arg10[%c0_38, %c0_39, %c0_40] : memref<3x4x32xf32, #tpu.memory_space<vmem>>, vector<1x4x32xf32>
    %65 = vector.shape_cast %64 : vector<1x4x32xf32> to vector<4x32xf32>
    %c0_41 = arith.constant 0 : index
    %c0_42 = arith.constant 0 : index
    %c0_43 = arith.constant 0 : index
    %66 = vector.load %arg11[%c0_41, %c0_42, %c0_43] : memref<3x2x32xf32, #tpu.memory_space<vmem>>, vector<1x2x32xf32>
    %67 = vector.shape_cast %66 : vector<1x2x32xf32> to vector<2x32xf32>
    %68 = vector.extract_strided_slice %65 {offsets = [0, 0], sizes = [1, 32], strides = [1, 1]} : vector<4x32xf32> to vector<1x32xf32>
    %69 = vector.extract_strided_slice %65 {offsets = [1, 0], sizes = [1, 32], strides = [1, 1]} : vector<4x32xf32> to vector<1x32xf32>
    %cst_44 = arith.constant dense<0.000000e+00> : vector<4xf32>
    %70 = vector.multi_reduction <add>, %11, %cst_44 [1] : vector<4x32xf32> to vector<4xf32>
    %71 = vector.shape_cast %70 : vector<4xf32> to vector<4x1xf32>
    %cst_45 = arith.constant 3.200000e+01 : f32
    %72 = vector.broadcast %cst_45 : f32 to vector<4x1xf32>
    %73 = arith.divf %71, %72 : vector<4x1xf32>
    %74 = vector.broadcast %73 : vector<4x1xf32> to vector<4x32xf32>
    %75 = arith.subf %11, %74 : vector<4x32xf32>
    %76 = arith.mulf %75, %75 : vector<4x32xf32>
    %cst_46 = arith.constant dense<0.000000e+00> : vector<4xf32>
    %77 = vector.multi_reduction <add>, %76, %cst_46 [1] : vector<4x32xf32> to vector<4xf32>
    %78 = vector.shape_cast %77 : vector<4xf32> to vector<4x1xf32>
    %cst_47 = arith.constant 3.200000e+01 : f32
    %79 = vector.broadcast %cst_47 : f32 to vector<4x1xf32>
    %80 = arith.divf %78, %79 : vector<4x1xf32>
    %cst_48 = arith.constant 9.99999974E-6 : f32
    %81 = vector.broadcast %cst_48 : f32 to vector<4x1xf32>
    %82 = arith.addf %80, %81 : vector<4x1xf32>
    %83 = math.rsqrt %82 : vector<4x1xf32>
    %84 = vector.broadcast %83 : vector<4x1xf32> to vector<4x32xf32>
    %85 = arith.mulf %75, %84 : vector<4x32xf32>
    %86 = vector.broadcast %68 : vector<1x32xf32> to vector<4x32xf32>
    %87 = arith.mulf %85, %86 : vector<4x32xf32>
    %88 = vector.broadcast %69 : vector<1x32xf32> to vector<4x32xf32>
    %89 = arith.addf %87, %88 : vector<4x32xf32>
    %c0_49 = arith.constant 0 : index
    %c0_50 = arith.constant 0 : index
    %c0_51 = arith.constant 0 : index
    %90 = vector.load %arg12[%c0_49, %c0_50, %c0_51] : memref<3x32x16xbf16, #tpu.memory_space<vmem>>, vector<1x32x16xbf16>
    %91 = vector.shape_cast %90 : vector<1x32x16xbf16> to vector<32x16xbf16>
    %92 = arith.truncf %89 : vector<4x32xf32> to vector<4x32xbf16>
    %cst_52 = arith.constant dense<0.000000e+00> : vector<4x16xf32>
    %93 = tpu.matmul %92, %91, %cst_52 {dimension_numbers = #tpu.dot_dimension_numbers<[1], [0], [0], [1], [0, 0, 1, 1], [], []>} : vector<4x32xbf16>, vector<32x16xbf16>, vector<4x16xf32> -> vector<4x16xf32>
    %c0_53 = arith.constant 0 : index
    %c0_54 = arith.constant 0 : index
    %c0_55 = arith.constant 0 : index
    %94 = vector.load %arg13[%c0_53, %c0_54, %c0_55] : memref<3x1x16xf32, #tpu.memory_space<vmem>>, vector<1x1x16xf32>
    %95 = vector.shape_cast %94 : vector<1x1x16xf32> to vector<1x16xf32>
    %96 = vector.broadcast %95 : vector<1x16xf32> to vector<4x16xf32>
    %97 = arith.addf %93, %96 : vector<4x16xf32>
    %98 = arith.mulf %97, %58 : vector<4x16xf32>
    %cst_56 = arith.constant 2.500000e-01 : f32
    %99 = vector.broadcast %cst_56 : f32 to vector<4x16xf32>
    %100 = arith.mulf %98, %99 : vector<4x16xf32>
    %101 = arith.truncf %100 : vector<4x16xf32> to vector<4x16xbf16>
    %102 = tpu.transpose %62, [1, 0] : vector<8x16xf32> -> vector<16x8xf32>
    %103 = arith.truncf %102 : vector<16x8xf32> to vector<16x8xbf16>
    %cst_57 = arith.constant dense<0.000000e+00> : vector<4x8xf32>
    %104 = tpu.matmul %101, %103, %cst_57 {dimension_numbers = #tpu.dot_dimension_numbers<[1], [0], [0], [1], [0, 0, 1, 1], [], []>} : vector<4x16xbf16>, vector<16x8xbf16>, vector<4x8xf32> -> vector<4x8xf32>
    %cst_58 = arith.constant dense<0xFF800000> : vector<4xf32>
    %105 = vector.multi_reduction <maximumf>, %104, %cst_58 [1] : vector<4x8xf32> to vector<4xf32>
    %106 = vector.shape_cast %105 : vector<4xf32> to vector<4x1xf32>
    %107 = vector.broadcast %106 : vector<4x1xf32> to vector<4x8xf32>
    %108 = arith.subf %104, %107 : vector<4x8xf32>
    %109 = math.exp %108 : vector<4x8xf32>
    %cst_59 = arith.constant dense<0.000000e+00> : vector<4xf32>
    %110 = vector.multi_reduction <add>, %109, %cst_59 [1] : vector<4x8xf32> to vector<4xf32>
    %111 = vector.shape_cast %110 : vector<4xf32> to vector<4x1xf32>
    %112 = arith.truncf %109 : vector<4x8xf32> to vector<4x8xbf16>
    %113 = arith.truncf %63 : vector<8x16xf32> to vector<8x16xbf16>
    %cst_60 = arith.constant dense<0.000000e+00> : vector<4x16xf32>
    %114 = tpu.matmul %112, %113, %cst_60 {dimension_numbers = #tpu.dot_dimension_numbers<[1], [0], [0], [1], [0, 0, 1, 1], [], []>} : vector<4x8xbf16>, vector<8x16xbf16>, vector<4x16xf32> -> vector<4x16xf32>
    %115 = tpu.reciprocal %111 {approx = true} : vector<4x1xf32> -> vector<4x1xf32>
    %116 = vector.broadcast %115 : vector<4x1xf32> to vector<4x16xf32>
    %117 = arith.mulf %114, %116 : vector<4x16xf32>
    %c0_61 = arith.constant 0 : index
    %c0_62 = arith.constant 0 : index
    %c0_63 = arith.constant 0 : index
    %118 = vector.load %arg15[%c0_61, %c0_62, %c0_63] : memref<3x16x32xbf16, #tpu.memory_space<vmem>>, vector<1x16x32xbf16>
    %119 = vector.shape_cast %118 : vector<1x16x32xbf16> to vector<16x32xbf16>
    %120 = arith.truncf %117 : vector<4x16xf32> to vector<4x16xbf16>
    %cst_64 = arith.constant dense<0.000000e+00> : vector<4x32xf32>
    %121 = tpu.matmul %120, %119, %cst_64 {dimension_numbers = #tpu.dot_dimension_numbers<[1], [0], [0], [1], [0, 0, 1, 1], [], []>} : vector<4x16xbf16>, vector<16x32xbf16>, vector<4x32xf32> -> vector<4x32xf32>
    %c0_65 = arith.constant 0 : index
    %c0_66 = arith.constant 0 : index
    %c0_67 = arith.constant 0 : index
    %122 = vector.load %arg16[%c0_65, %c0_66, %c0_67] : memref<3x1x32xf32, #tpu.memory_space<vmem>>, vector<1x1x32xf32>
    %123 = vector.shape_cast %122 : vector<1x1x32xf32> to vector<1x32xf32>
    %124 = vector.broadcast %123 : vector<1x32xf32> to vector<4x32xf32>
    %125 = arith.addf %121, %124 : vector<4x32xf32>
    %126 = arith.mulf %125, %59 : vector<4x32xf32>
    %127 = vector.extract_strided_slice %67 {offsets = [0, 0], sizes = [1, 32], strides = [1, 1]} : vector<2x32xf32> to vector<1x32xf32>
    %128 = vector.broadcast %127 : vector<1x32xf32> to vector<4x32xf32>
    %129 = arith.mulf %128, %126 : vector<4x32xf32>
    %130 = arith.addf %11, %129 : vector<4x32xf32>
    %131 = vector.extract_strided_slice %65 {offsets = [2, 0], sizes = [1, 32], strides = [1, 1]} : vector<4x32xf32> to vector<1x32xf32>
    %132 = vector.extract_strided_slice %65 {offsets = [3, 0], sizes = [1, 32], strides = [1, 1]} : vector<4x32xf32> to vector<1x32xf32>
    %cst_68 = arith.constant dense<0.000000e+00> : vector<4xf32>
    %133 = vector.multi_reduction <add>, %130, %cst_68 [1] : vector<4x32xf32> to vector<4xf32>
    %134 = vector.shape_cast %133 : vector<4xf32> to vector<4x1xf32>
    %cst_69 = arith.constant 3.200000e+01 : f32
    %135 = vector.broadcast %cst_69 : f32 to vector<4x1xf32>
    %136 = arith.divf %134, %135 : vector<4x1xf32>
    %137 = vector.broadcast %136 : vector<4x1xf32> to vector<4x32xf32>
    %138 = arith.subf %130, %137 : vector<4x32xf32>
    %139 = arith.mulf %138, %138 : vector<4x32xf32>
    %cst_70 = arith.constant dense<0.000000e+00> : vector<4xf32>
    %140 = vector.multi_reduction <add>, %139, %cst_70 [1] : vector<4x32xf32> to vector<4xf32>
    %141 = vector.shape_cast %140 : vector<4xf32> to vector<4x1xf32>
    %cst_71 = arith.constant 3.200000e+01 : f32
    %142 = vector.broadcast %cst_71 : f32 to vector<4x1xf32>
    %143 = arith.divf %141, %142 : vector<4x1xf32>
    %cst_72 = arith.constant 9.99999974E-6 : f32
    %144 = vector.broadcast %cst_72 : f32 to vector<4x1xf32>
    %145 = arith.addf %143, %144 : vector<4x1xf32>
    %146 = math.rsqrt %145 : vector<4x1xf32>
    %147 = vector.broadcast %146 : vector<4x1xf32> to vector<4x32xf32>
    %148 = arith.mulf %138, %147 : vector<4x32xf32>
    %149 = vector.broadcast %131 : vector<1x32xf32> to vector<4x32xf32>
    %150 = arith.mulf %148, %149 : vector<4x32xf32>
    %151 = vector.broadcast %132 : vector<1x32xf32> to vector<4x32xf32>
    %152 = arith.addf %150, %151 : vector<4x32xf32>
    %c0_73 = arith.constant 0 : index
    %c0_74 = arith.constant 0 : index
    %c0_75 = arith.constant 0 : index
    %153 = vector.load %arg17[%c0_73, %c0_74, %c0_75] : memref<3x32x128xbf16, #tpu.memory_space<vmem>>, vector<1x32x128xbf16>
    %154 = vector.shape_cast %153 : vector<1x32x128xbf16> to vector<32x128xbf16>
    %155 = arith.truncf %152 : vector<4x32xf32> to vector<4x32xbf16>
    %cst_76 = arith.constant dense<0.000000e+00> : vector<4x128xf32>
    %156 = tpu.matmul %155, %154, %cst_76 {dimension_numbers = #tpu.dot_dimension_numbers<[1], [0], [0], [1], [0, 0, 1, 1], [], []>} : vector<4x32xbf16>, vector<32x128xbf16>, vector<4x128xf32> -> vector<4x128xf32>
    %c0_77 = arith.constant 0 : index
    %c0_78 = arith.constant 0 : index
    %c0_79 = arith.constant 0 : index
    %157 = vector.load %arg18[%c0_77, %c0_78, %c0_79] : memref<3x1x128xf32, #tpu.memory_space<vmem>>, vector<1x1x128xf32>
    %158 = vector.shape_cast %157 : vector<1x1x128xf32> to vector<1x128xf32>
    %159 = vector.broadcast %158 : vector<1x128xf32> to vector<4x128xf32>
    %160 = arith.addf %156, %159 : vector<4x128xf32>
    %161 = arith.mulf %160, %60 : vector<4x128xf32>
    %162 = arith.mulf %161, %161 : vector<4x128xf32>
    %163 = arith.mulf %161, %162 : vector<4x128xf32>
    %cst_80 = arith.constant 4.471500e-02 : f32
    %164 = vector.broadcast %cst_80 : f32 to vector<4x128xf32>
    %165 = arith.mulf %164, %163 : vector<4x128xf32>
    %166 = arith.addf %161, %165 : vector<4x128xf32>
    %cst_81 = arith.constant 0.797884583 : f32
    %167 = vector.broadcast %cst_81 : f32 to vector<4x128xf32>
    %168 = arith.mulf %167, %166 : vector<4x128xf32>
    %169 = math.tanh %168 : vector<4x128xf32>
    %cst_82 = arith.constant 1.000000e+00 : f32
    %170 = vector.broadcast %cst_82 : f32 to vector<4x128xf32>
    %171 = arith.addf %170, %169 : vector<4x128xf32>
    %cst_83 = arith.constant 5.000000e-01 : f32
    %172 = vector.broadcast %cst_83 : f32 to vector<4x128xf32>
    %173 = arith.mulf %172, %171 : vector<4x128xf32>
    %174 = arith.mulf %161, %173 : vector<4x128xf32>
    %c0_84 = arith.constant 0 : index
    %c0_85 = arith.constant 0 : index
    %c0_86 = arith.constant 0 : index
    %175 = vector.load %arg19[%c0_84, %c0_85, %c0_86] : memref<3x128x32xbf16, #tpu.memory_space<vmem>>, vector<1x128x32xbf16>
    %176 = vector.shape_cast %175 : vector<1x128x32xbf16> to vector<128x32xbf16>
    %177 = arith.truncf %174 : vector<4x128xf32> to vector<4x128xbf16>
    %cst_87 = arith.constant dense<0.000000e+00> : vector<4x32xf32>
    %178 = tpu.matmul %177, %176, %cst_87 {dimension_numbers = #tpu.dot_dimension_numbers<[1], [0], [0], [1], [0, 0, 1, 1], [], []>} : vector<4x128xbf16>, vector<128x32xbf16>, vector<4x32xf32> -> vector<4x32xf32>
    %c0_88 = arith.constant 0 : index
    %c0_89 = arith.constant 0 : index
    %c0_90 = arith.constant 0 : index
    %179 = vector.load %arg20[%c0_88, %c0_89, %c0_90] : memref<3x1x32xf32, #tpu.memory_space<vmem>>, vector<1x1x32xf32>
    %180 = vector.shape_cast %179 : vector<1x1x32xf32> to vector<1x32xf32>
    %181 = vector.broadcast %180 : vector<1x32xf32> to vector<4x32xf32>
    %182 = arith.addf %178, %181 : vector<4x32xf32>
    %183 = arith.mulf %182, %61 : vector<4x32xf32>
    %184 = vector.extract_strided_slice %67 {offsets = [1, 0], sizes = [1, 32], strides = [1, 1]} : vector<2x32xf32> to vector<1x32xf32>
    %185 = vector.broadcast %184 : vector<1x32xf32> to vector<4x32xf32>
    %186 = arith.mulf %185, %183 : vector<4x32xf32>
    %187 = arith.addf %130, %186 : vector<4x32xf32>
    %c1 = arith.constant 1 : index
    %c0_91 = arith.constant 0 : index
    %c0_92 = arith.constant 0 : index
    %188 = vector.load %arg21[%c1, %c0_91, %c0_92] : memref<3x16x208xbf16, #tpu.memory_space<vmem>>, vector<1x16x208xbf16>
    %189 = vector.shape_cast %188 : vector<1x16x208xbf16> to vector<16x208xbf16>
    %190 = arith.truncf %4 : vector<8x16xf32> to vector<8x16xbf16>
    %cst_93 = arith.constant dense<0.000000e+00> : vector<8x208xf32>
    %191 = tpu.matmul %190, %189, %cst_93 {dimension_numbers = #tpu.dot_dimension_numbers<[1], [0], [0], [1], [0, 0, 1, 1], [], []>} : vector<8x16xbf16>, vector<16x208xbf16>, vector<8x208xf32> -> vector<8x208xf32>
    %cst_94 = arith.constant 1.000000e+00 : f32
    %192 = vector.broadcast %cst_94 : f32 to vector<8x208xf32>
    %193 = arith.addf %192, %191 : vector<8x208xf32>
    %194 = vector.extract_strided_slice %193 {offsets = [0, 0], sizes = [8, 16], strides = [1, 1]} : vector<8x208xf32> to vector<8x16xf32>
    %195 = vector.extract_strided_slice %193 {offsets = [0, 16], sizes = [8, 32], strides = [1, 1]} : vector<8x208xf32> to vector<8x32xf32>
    %196 = vector.extract_strided_slice %193 {offsets = [0, 48], sizes = [8, 128], strides = [1, 1]} : vector<8x208xf32> to vector<8x128xf32>
    %197 = vector.extract_strided_slice %193 {offsets = [0, 176], sizes = [8, 32], strides = [1, 1]} : vector<8x208xf32> to vector<8x32xf32>
    %c0_95 = arith.constant 0 : index
    %c0_96 = arith.constant 0 : index
    %c0_97 = arith.constant 0 : index
    %198 = vector.load %arg26[%c0_95, %c0_96, %c0_97] : memref<2x16x32xbf16, #tpu.memory_space<vmem>>, vector<1x16x32xbf16>
    %199 = vector.shape_cast %198 : vector<1x16x32xbf16> to vector<16x32xbf16>
    %200 = arith.truncf %3 : vector<4x16xf32> to vector<4x16xbf16>
    %cst_98 = arith.constant dense<0.000000e+00> : vector<4x32xf32>
    %201 = tpu.matmul %200, %199, %cst_98 {dimension_numbers = #tpu.dot_dimension_numbers<[1], [0], [0], [1], [0, 0, 1, 1], [], []>} : vector<4x16xbf16>, vector<16x32xbf16>, vector<4x32xf32> -> vector<4x32xf32>
    %cst_99 = arith.constant 1.000000e+00 : f32
    %202 = vector.broadcast %cst_99 : f32 to vector<4x32xf32>
    %203 = arith.addf %202, %201 : vector<4x32xf32>
    %c0_100 = arith.constant 0 : index
    %c0_101 = arith.constant 0 : index
    %c0_102 = arith.constant 0 : index
    %204 = vector.load %arg26[%c0_100, %c0_101, %c0_102] : memref<2x16x32xbf16, #tpu.memory_space<vmem>>, vector<1x16x32xbf16>
    %205 = vector.shape_cast %204 : vector<1x16x32xbf16> to vector<16x32xbf16>
    %206 = arith.truncf %4 : vector<8x16xf32> to vector<8x16xbf16>
    %cst_103 = arith.constant dense<0.000000e+00> : vector<8x32xf32>
    %207 = tpu.matmul %206, %205, %cst_103 {dimension_numbers = #tpu.dot_dimension_numbers<[1], [0], [0], [1], [0, 0, 1, 1], [], []>} : vector<8x16xbf16>, vector<16x32xbf16>, vector<8x32xf32> -> vector<8x32xf32>
    %cst_104 = arith.constant 1.000000e+00 : f32
    %208 = vector.broadcast %cst_104 : f32 to vector<8x32xf32>
    %209 = arith.addf %208, %207 : vector<8x32xf32>
    %210 = tpu.transpose %0, [1, 0] : vector<4x8xf32> -> vector<8x4xf32>
    %cst_105 = arith.constant dense<0.000000e+00> : vector<8x4xf32>
    %211 = tpu.matmul %1, %210, %cst_105 {dimension_numbers = #tpu.dot_dimension_numbers<[1], [0], [0], [1], [0, 0, 1, 1], [], []>} : vector<8x8xf32>, vector<8x4xf32>, vector<8x4xf32> -> vector<8x4xf32>
    %cst_106 = arith.constant 0.353553385 : f32
    %212 = vector.broadcast %cst_106 : f32 to vector<8x4xf32>
    %213 = arith.mulf %211, %212 : vector<8x4xf32>
    %214 = tpu.transpose %1, [1, 0] : vector<8x8xf32> -> vector<8x8xf32>
    %cst_107 = arith.constant dense<0.000000e+00> : vector<8x8xf32>
    %215 = tpu.matmul %1, %214, %cst_107 {dimension_numbers = #tpu.dot_dimension_numbers<[1], [0], [0], [1], [0, 0, 1, 1], [], []>} : vector<8x8xf32>, vector<8x8xf32>, vector<8x8xf32> -> vector<8x8xf32>
    %cst_108 = arith.constant 0.353553385 : f32
    %216 = vector.broadcast %cst_108 : f32 to vector<8x8xf32>
    %217 = arith.mulf %215, %216 : vector<8x8xf32>
    %c0_109 = arith.constant 0 : index
    %c0_110 = arith.constant 0 : index
    %c0_111 = arith.constant 0 : index
    %218 = vector.load %arg24[%c0_109, %c0_110, %c0_111] : memref<2x2x32xf32, #tpu.memory_space<vmem>>, vector<1x2x32xf32>
    %219 = vector.shape_cast %218 : vector<1x2x32xf32> to vector<2x32xf32>
    %220 = vector.extract_strided_slice %219 {offsets = [0, 0], sizes = [1, 32], strides = [1, 1]} : vector<2x32xf32> to vector<1x32xf32>
    %221 = vector.extract_strided_slice %219 {offsets = [1, 0], sizes = [1, 32], strides = [1, 1]} : vector<2x32xf32> to vector<1x32xf32>
    %cst_112 = arith.constant dense<0.000000e+00> : vector<4xf32>
    %222 = vector.multi_reduction <add>, %187, %cst_112 [1] : vector<4x32xf32> to vector<4xf32>
    %223 = vector.shape_cast %222 : vector<4xf32> to vector<4x1xf32>
    %cst_113 = arith.constant 3.200000e+01 : f32
    %224 = vector.broadcast %cst_113 : f32 to vector<4x1xf32>
    %225 = arith.divf %223, %224 : vector<4x1xf32>
    %226 = vector.broadcast %225 : vector<4x1xf32> to vector<4x32xf32>
    %227 = arith.subf %187, %226 : vector<4x32xf32>
    %228 = arith.mulf %227, %227 : vector<4x32xf32>
    %cst_114 = arith.constant dense<0.000000e+00> : vector<4xf32>
    %229 = vector.multi_reduction <add>, %228, %cst_114 [1] : vector<4x32xf32> to vector<4xf32>
    %230 = vector.shape_cast %229 : vector<4xf32> to vector<4x1xf32>
    %cst_115 = arith.constant 3.200000e+01 : f32
    %231 = vector.broadcast %cst_115 : f32 to vector<4x1xf32>
    %232 = arith.divf %230, %231 : vector<4x1xf32>
    %cst_116 = arith.constant 9.99999974E-6 : f32
    %233 = vector.broadcast %cst_116 : f32 to vector<4x1xf32>
    %234 = arith.addf %232, %233 : vector<4x1xf32>
    %235 = math.rsqrt %234 : vector<4x1xf32>
    %236 = vector.broadcast %235 : vector<4x1xf32> to vector<4x32xf32>
    %237 = arith.mulf %227, %236 : vector<4x32xf32>
    %238 = vector.broadcast %220 : vector<1x32xf32> to vector<4x32xf32>
    %239 = arith.mulf %237, %238 : vector<4x32xf32>
    %240 = vector.broadcast %221 : vector<1x32xf32> to vector<4x32xf32>
    %241 = arith.addf %239, %240 : vector<4x32xf32>
    %c0_117 = arith.constant 0 : index
    %c0_118 = arith.constant 0 : index
    %c0_119 = arith.constant 0 : index
    %242 = vector.load %arg25[%c0_117, %c0_118, %c0_119] : memref<2x32x32xbf16, #tpu.memory_space<vmem>>, vector<1x32x32xbf16>
    %243 = vector.shape_cast %242 : vector<1x32x32xbf16> to vector<32x32xbf16>
    %244 = arith.truncf %241 : vector<4x32xf32> to vector<4x32xbf16>
    %cst_120 = arith.constant dense<0.000000e+00> : vector<4x32xf32>
    %245 = tpu.matmul %244, %243, %cst_120 {dimension_numbers = #tpu.dot_dimension_numbers<[1], [0], [0], [1], [0, 0, 1, 1], [], []>} : vector<4x32xbf16>, vector<32x32xbf16>, vector<4x32xf32> -> vector<4x32xf32>
    %c1_121 = arith.constant 1 : index
    %c0_122 = arith.constant 0 : index
    %c0_123 = arith.constant 0 : index
    %246 = vector.load %arg14[%c1_121, %c0_122, %c0_123] : memref<3x1x32xf32, #tpu.memory_space<vmem>>, vector<1x1x32xf32>
    %247 = vector.shape_cast %246 : vector<1x1x32xf32> to vector<1x32xf32>
    %248 = vector.broadcast %247 : vector<1x32xf32> to vector<4x32xf32>
    %249 = arith.addf %245, %248 : vector<4x32xf32>
    %250 = arith.mulf %249, %203 : vector<4x32xf32>
    %251 = vector.extract_strided_slice %250 {offsets = [0, 0], sizes = [4, 16], strides = [1, 1]} : vector<4x32xf32> to vector<4x16xf32>
    %252 = vector.extract_strided_slice %250 {offsets = [0, 16], sizes = [4, 16], strides = [1, 1]} : vector<4x32xf32> to vector<4x16xf32>
    %c0_124 = arith.constant 0 : index
    %c0_125 = arith.constant 0 : index
    %c0_126 = arith.constant 0 : index
    %253 = vector.load %arg24[%c0_124, %c0_125, %c0_126] : memref<2x2x32xf32, #tpu.memory_space<vmem>>, vector<1x2x32xf32>
    %254 = vector.shape_cast %253 : vector<1x2x32xf32> to vector<2x32xf32>
    %255 = vector.extract_strided_slice %254 {offsets = [0, 0], sizes = [1, 32], strides = [1, 1]} : vector<2x32xf32> to vector<1x32xf32>
    %256 = vector.extract_strided_slice %254 {offsets = [1, 0], sizes = [1, 32], strides = [1, 1]} : vector<2x32xf32> to vector<1x32xf32>
    %cst_127 = arith.constant dense<0.000000e+00> : vector<8xf32>
    %257 = vector.multi_reduction <add>, %15, %cst_127 [1] : vector<8x32xf32> to vector<8xf32>
    %258 = vector.shape_cast %257 : vector<8xf32> to vector<8x1xf32>
    %cst_128 = arith.constant 3.200000e+01 : f32
    %259 = vector.broadcast %cst_128 : f32 to vector<8x1xf32>
    %260 = arith.divf %258, %259 : vector<8x1xf32>
    %261 = vector.broadcast %260 : vector<8x1xf32> to vector<8x32xf32>
    %262 = arith.subf %15, %261 : vector<8x32xf32>
    %263 = arith.mulf %262, %262 : vector<8x32xf32>
    %cst_129 = arith.constant dense<0.000000e+00> : vector<8xf32>
    %264 = vector.multi_reduction <add>, %263, %cst_129 [1] : vector<8x32xf32> to vector<8xf32>
    %265 = vector.shape_cast %264 : vector<8xf32> to vector<8x1xf32>
    %cst_130 = arith.constant 3.200000e+01 : f32
    %266 = vector.broadcast %cst_130 : f32 to vector<8x1xf32>
    %267 = arith.divf %265, %266 : vector<8x1xf32>
    %cst_131 = arith.constant 9.99999974E-6 : f32
    %268 = vector.broadcast %cst_131 : f32 to vector<8x1xf32>
    %269 = arith.addf %267, %268 : vector<8x1xf32>
    %270 = math.rsqrt %269 : vector<8x1xf32>
    %271 = vector.broadcast %270 : vector<8x1xf32> to vector<8x32xf32>
    %272 = arith.mulf %262, %271 : vector<8x32xf32>
    %273 = vector.broadcast %255 : vector<1x32xf32> to vector<8x32xf32>
    %274 = arith.mulf %272, %273 : vector<8x32xf32>
    %275 = vector.broadcast %256 : vector<1x32xf32> to vector<8x32xf32>
    %276 = arith.addf %274, %275 : vector<8x32xf32>
    %c0_132 = arith.constant 0 : index
    %c0_133 = arith.constant 0 : index
    %c0_134 = arith.constant 0 : index
    %277 = vector.load %arg25[%c0_132, %c0_133, %c0_134] : memref<2x32x32xbf16, #tpu.memory_space<vmem>>, vector<1x32x32xbf16>
    %278 = vector.shape_cast %277 : vector<1x32x32xbf16> to vector<32x32xbf16>
    %279 = arith.truncf %276 : vector<8x32xf32> to vector<8x32xbf16>
    %cst_135 = arith.constant dense<0.000000e+00> : vector<8x32xf32>
    %280 = tpu.matmul %279, %278, %cst_135 {dimension_numbers = #tpu.dot_dimension_numbers<[1], [0], [0], [1], [0, 0, 1, 1], [], []>} : vector<8x32xbf16>, vector<32x32xbf16>, vector<8x32xf32> -> vector<8x32xf32>
    %c1_136 = arith.constant 1 : index
    %c0_137 = arith.constant 0 : index
    %c0_138 = arith.constant 0 : index
    %281 = vector.load %arg14[%c1_136, %c0_137, %c0_138] : memref<3x1x32xf32, #tpu.memory_space<vmem>>, vector<1x1x32xf32>
    %282 = vector.shape_cast %281 : vector<1x1x32xf32> to vector<1x32xf32>
    %283 = vector.broadcast %282 : vector<1x32xf32> to vector<8x32xf32>
    %284 = arith.addf %280, %283 : vector<8x32xf32>
    %285 = arith.mulf %284, %209 : vector<8x32xf32>
    %286 = vector.extract_strided_slice %285 {offsets = [0, 0], sizes = [8, 16], strides = [1, 1]} : vector<8x32xf32> to vector<8x16xf32>
    %287 = vector.extract_strided_slice %285 {offsets = [0, 16], sizes = [8, 16], strides = [1, 1]} : vector<8x32xf32> to vector<8x16xf32>
    %c1_139 = arith.constant 1 : index
    %c0_140 = arith.constant 0 : index
    %c0_141 = arith.constant 0 : index
    %288 = vector.load %arg10[%c1_139, %c0_140, %c0_141] : memref<3x4x32xf32, #tpu.memory_space<vmem>>, vector<1x4x32xf32>
    %289 = vector.shape_cast %288 : vector<1x4x32xf32> to vector<4x32xf32>
    %c1_142 = arith.constant 1 : index
    %c0_143 = arith.constant 0 : index
    %c0_144 = arith.constant 0 : index
    %290 = vector.load %arg11[%c1_142, %c0_143, %c0_144] : memref<3x2x32xf32, #tpu.memory_space<vmem>>, vector<1x2x32xf32>
    %291 = vector.shape_cast %290 : vector<1x2x32xf32> to vector<2x32xf32>
    %292 = vector.extract_strided_slice %289 {offsets = [0, 0], sizes = [1, 32], strides = [1, 1]} : vector<4x32xf32> to vector<1x32xf32>
    %293 = vector.extract_strided_slice %289 {offsets = [1, 0], sizes = [1, 32], strides = [1, 1]} : vector<4x32xf32> to vector<1x32xf32>
    %cst_145 = arith.constant dense<0.000000e+00> : vector<8xf32>
    %294 = vector.multi_reduction <add>, %15, %cst_145 [1] : vector<8x32xf32> to vector<8xf32>
    %295 = vector.shape_cast %294 : vector<8xf32> to vector<8x1xf32>
    %cst_146 = arith.constant 3.200000e+01 : f32
    %296 = vector.broadcast %cst_146 : f32 to vector<8x1xf32>
    %297 = arith.divf %295, %296 : vector<8x1xf32>
    %298 = vector.broadcast %297 : vector<8x1xf32> to vector<8x32xf32>
    %299 = arith.subf %15, %298 : vector<8x32xf32>
    %300 = arith.mulf %299, %299 : vector<8x32xf32>
    %cst_147 = arith.constant dense<0.000000e+00> : vector<8xf32>
    %301 = vector.multi_reduction <add>, %300, %cst_147 [1] : vector<8x32xf32> to vector<8xf32>
    %302 = vector.shape_cast %301 : vector<8xf32> to vector<8x1xf32>
    %cst_148 = arith.constant 3.200000e+01 : f32
    %303 = vector.broadcast %cst_148 : f32 to vector<8x1xf32>
    %304 = arith.divf %302, %303 : vector<8x1xf32>
    %cst_149 = arith.constant 9.99999974E-6 : f32
    %305 = vector.broadcast %cst_149 : f32 to vector<8x1xf32>
    %306 = arith.addf %304, %305 : vector<8x1xf32>
    %307 = math.rsqrt %306 : vector<8x1xf32>
    %308 = vector.broadcast %307 : vector<8x1xf32> to vector<8x32xf32>
    %309 = arith.mulf %299, %308 : vector<8x32xf32>
    %310 = vector.broadcast %292 : vector<1x32xf32> to vector<8x32xf32>
    %311 = arith.mulf %309, %310 : vector<8x32xf32>
    %312 = vector.broadcast %293 : vector<1x32xf32> to vector<8x32xf32>
    %313 = arith.addf %311, %312 : vector<8x32xf32>
    %c1_150 = arith.constant 1 : index
    %c0_151 = arith.constant 0 : index
    %c0_152 = arith.constant 0 : index
    %314 = vector.load %arg12[%c1_150, %c0_151, %c0_152] : memref<3x32x16xbf16, #tpu.memory_space<vmem>>, vector<1x32x16xbf16>
    %315 = vector.shape_cast %314 : vector<1x32x16xbf16> to vector<32x16xbf16>
    %316 = arith.truncf %313 : vector<8x32xf32> to vector<8x32xbf16>
    %cst_153 = arith.constant dense<0.000000e+00> : vector<8x16xf32>
    %317 = tpu.matmul %316, %315, %cst_153 {dimension_numbers = #tpu.dot_dimension_numbers<[1], [0], [0], [1], [0, 0, 1, 1], [], []>} : vector<8x32xbf16>, vector<32x16xbf16>, vector<8x16xf32> -> vector<8x16xf32>
    %c1_154 = arith.constant 1 : index
    %c0_155 = arith.constant 0 : index
    %c0_156 = arith.constant 0 : index
    %318 = vector.load %arg13[%c1_154, %c0_155, %c0_156] : memref<3x1x16xf32, #tpu.memory_space<vmem>>, vector<1x1x16xf32>
    %319 = vector.shape_cast %318 : vector<1x1x16xf32> to vector<1x16xf32>
    %320 = vector.broadcast %319 : vector<1x16xf32> to vector<8x16xf32>
    %321 = arith.addf %317, %320 : vector<8x16xf32>
    %322 = arith.mulf %321, %194 : vector<8x16xf32>
    %cst_157 = arith.constant 2.500000e-01 : f32
    %323 = vector.broadcast %cst_157 : f32 to vector<8x16xf32>
    %324 = arith.mulf %322, %323 : vector<8x16xf32>
    %325 = arith.truncf %324 : vector<8x16xf32> to vector<8x16xbf16>
    %326 = tpu.transpose %251, [1, 0] : vector<4x16xf32> -> vector<16x4xf32>
    %327 = arith.truncf %326 : vector<16x4xf32> to vector<16x4xbf16>
    %cst_158 = arith.constant dense<0.000000e+00> : vector<8x4xf32>
    %328 = tpu.matmul %325, %327, %cst_158 {dimension_numbers = #tpu.dot_dimension_numbers<[1], [0], [0], [1], [0, 0, 1, 1], [], []>} : vector<8x16xbf16>, vector<16x4xbf16>, vector<8x4xf32> -> vector<8x4xf32>
    %329 = arith.addf %328, %213 : vector<8x4xf32>
    %330 = arith.truncf %324 : vector<8x16xf32> to vector<8x16xbf16>
    %331 = tpu.transpose %286, [1, 0] : vector<8x16xf32> -> vector<16x8xf32>
    %332 = arith.truncf %331 : vector<16x8xf32> to vector<16x8xbf16>
    %cst_159 = arith.constant dense<0.000000e+00> : vector<8x8xf32>
    %333 = tpu.matmul %330, %332, %cst_159 {dimension_numbers = #tpu.dot_dimension_numbers<[1], [0], [0], [1], [0, 0, 1, 1], [], []>} : vector<8x16xbf16>, vector<16x8xbf16>, vector<8x8xf32> -> vector<8x8xf32>
    %334 = arith.addf %333, %217 : vector<8x8xf32>
    %cst_160 = arith.constant dense<0xFF800000> : vector<8xf32>
    %335 = vector.multi_reduction <maximumf>, %329, %cst_160 [1] : vector<8x4xf32> to vector<8xf32>
    %336 = vector.shape_cast %335 : vector<8xf32> to vector<8x1xf32>
    %cst_161 = arith.constant dense<0xFF800000> : vector<8xf32>
    %337 = vector.multi_reduction <maximumf>, %334, %cst_161 [1] : vector<8x8xf32> to vector<8xf32>
    %338 = vector.shape_cast %337 : vector<8xf32> to vector<8x1xf32>
    %339 = arith.maximumf %336, %338 : vector<8x1xf32>
    %340 = vector.broadcast %339 : vector<8x1xf32> to vector<8x4xf32>
    %341 = arith.subf %329, %340 : vector<8x4xf32>
    %342 = math.exp %341 : vector<8x4xf32>
    %cst_162 = arith.constant dense<0.000000e+00> : vector<8xf32>
    %343 = vector.multi_reduction <add>, %342, %cst_162 [1] : vector<8x4xf32> to vector<8xf32>
    %344 = vector.shape_cast %343 : vector<8xf32> to vector<8x1xf32>
    %345 = arith.truncf %342 : vector<8x4xf32> to vector<8x4xbf16>
    %346 = arith.truncf %252 : vector<4x16xf32> to vector<4x16xbf16>
    %cst_163 = arith.constant dense<0.000000e+00> : vector<8x16xf32>
    %347 = tpu.matmul %345, %346, %cst_163 {dimension_numbers = #tpu.dot_dimension_numbers<[1], [0], [0], [1], [0, 0, 1, 1], [], []>} : vector<8x4xbf16>, vector<4x16xbf16>, vector<8x16xf32> -> vector<8x16xf32>
    %348 = vector.broadcast %339 : vector<8x1xf32> to vector<8x8xf32>
    %349 = arith.subf %334, %348 : vector<8x8xf32>
    %350 = math.exp %349 : vector<8x8xf32>
    %cst_164 = arith.constant dense<0.000000e+00> : vector<8xf32>
    %351 = vector.multi_reduction <add>, %350, %cst_164 [1] : vector<8x8xf32> to vector<8xf32>
    %352 = vector.shape_cast %351 : vector<8xf32> to vector<8x1xf32>
    %353 = arith.addf %344, %352 : vector<8x1xf32>
    %354 = arith.truncf %350 : vector<8x8xf32> to vector<8x8xbf16>
    %355 = arith.truncf %287 : vector<8x16xf32> to vector<8x16xbf16>
    %cst_165 = arith.constant dense<0.000000e+00> : vector<8x16xf32>
    %356 = tpu.matmul %354, %355, %cst_165 {dimension_numbers = #tpu.dot_dimension_numbers<[1], [0], [0], [1], [0, 0, 1, 1], [], []>} : vector<8x8xbf16>, vector<8x16xbf16>, vector<8x16xf32> -> vector<8x16xf32>
    %357 = arith.addf %347, %356 : vector<8x16xf32>
    %358 = tpu.reciprocal %353 {approx = true} : vector<8x1xf32> -> vector<8x1xf32>
    %359 = vector.broadcast %358 : vector<8x1xf32> to vector<8x16xf32>
    %360 = arith.mulf %357, %359 : vector<8x16xf32>
    %c1_166 = arith.constant 1 : index
    %c0_167 = arith.constant 0 : index
    %c0_168 = arith.constant 0 : index
    %361 = vector.load %arg15[%c1_166, %c0_167, %c0_168] : memref<3x16x32xbf16, #tpu.memory_space<vmem>>, vector<1x16x32xbf16>
    %362 = vector.shape_cast %361 : vector<1x16x32xbf16> to vector<16x32xbf16>
    %363 = arith.truncf %360 : vector<8x16xf32> to vector<8x16xbf16>
    %cst_169 = arith.constant dense<0.000000e+00> : vector<8x32xf32>
    %364 = tpu.matmul %363, %362, %cst_169 {dimension_numbers = #tpu.dot_dimension_numbers<[1], [0], [0], [1], [0, 0, 1, 1], [], []>} : vector<8x16xbf16>, vector<16x32xbf16>, vector<8x32xf32> -> vector<8x32xf32>
    %c1_170 = arith.constant 1 : index
    %c0_171 = arith.constant 0 : index
    %c0_172 = arith.constant 0 : index
    %365 = vector.load %arg16[%c1_170, %c0_171, %c0_172] : memref<3x1x32xf32, #tpu.memory_space<vmem>>, vector<1x1x32xf32>
    %366 = vector.shape_cast %365 : vector<1x1x32xf32> to vector<1x32xf32>
    %367 = vector.broadcast %366 : vector<1x32xf32> to vector<8x32xf32>
    %368 = arith.addf %364, %367 : vector<8x32xf32>
    %369 = arith.mulf %368, %195 : vector<8x32xf32>
    %370 = vector.extract_strided_slice %291 {offsets = [0, 0], sizes = [1, 32], strides = [1, 1]} : vector<2x32xf32> to vector<1x32xf32>
    %371 = vector.broadcast %370 : vector<1x32xf32> to vector<8x32xf32>
    %372 = arith.mulf %371, %369 : vector<8x32xf32>
    %373 = arith.addf %15, %372 : vector<8x32xf32>
    %374 = vector.extract_strided_slice %289 {offsets = [2, 0], sizes = [1, 32], strides = [1, 1]} : vector<4x32xf32> to vector<1x32xf32>
    %375 = vector.extract_strided_slice %289 {offsets = [3, 0], sizes = [1, 32], strides = [1, 1]} : vector<4x32xf32> to vector<1x32xf32>
    %cst_173 = arith.constant dense<0.000000e+00> : vector<8xf32>
    %376 = vector.multi_reduction <add>, %373, %cst_173 [1] : vector<8x32xf32> to vector<8xf32>
    %377 = vector.shape_cast %376 : vector<8xf32> to vector<8x1xf32>
    %cst_174 = arith.constant 3.200000e+01 : f32
    %378 = vector.broadcast %cst_174 : f32 to vector<8x1xf32>
    %379 = arith.divf %377, %378 : vector<8x1xf32>
    %380 = vector.broadcast %379 : vector<8x1xf32> to vector<8x32xf32>
    %381 = arith.subf %373, %380 : vector<8x32xf32>
    %382 = arith.mulf %381, %381 : vector<8x32xf32>
    %cst_175 = arith.constant dense<0.000000e+00> : vector<8xf32>
    %383 = vector.multi_reduction <add>, %382, %cst_175 [1] : vector<8x32xf32> to vector<8xf32>
    %384 = vector.shape_cast %383 : vector<8xf32> to vector<8x1xf32>
    %cst_176 = arith.constant 3.200000e+01 : f32
    %385 = vector.broadcast %cst_176 : f32 to vector<8x1xf32>
    %386 = arith.divf %384, %385 : vector<8x1xf32>
    %cst_177 = arith.constant 9.99999974E-6 : f32
    %387 = vector.broadcast %cst_177 : f32 to vector<8x1xf32>
    %388 = arith.addf %386, %387 : vector<8x1xf32>
    %389 = math.rsqrt %388 : vector<8x1xf32>
    %390 = vector.broadcast %389 : vector<8x1xf32> to vector<8x32xf32>
    %391 = arith.mulf %381, %390 : vector<8x32xf32>
    %392 = vector.broadcast %374 : vector<1x32xf32> to vector<8x32xf32>
    %393 = arith.mulf %391, %392 : vector<8x32xf32>
    %394 = vector.broadcast %375 : vector<1x32xf32> to vector<8x32xf32>
    %395 = arith.addf %393, %394 : vector<8x32xf32>
    %c1_178 = arith.constant 1 : index
    %c0_179 = arith.constant 0 : index
    %c0_180 = arith.constant 0 : index
    %396 = vector.load %arg17[%c1_178, %c0_179, %c0_180] : memref<3x32x128xbf16, #tpu.memory_space<vmem>>, vector<1x32x128xbf16>
    %397 = vector.shape_cast %396 : vector<1x32x128xbf16> to vector<32x128xbf16>
    %398 = arith.truncf %395 : vector<8x32xf32> to vector<8x32xbf16>
    %cst_181 = arith.constant dense<0.000000e+00> : vector<8x128xf32>
    %399 = tpu.matmul %398, %397, %cst_181 {dimension_numbers = #tpu.dot_dimension_numbers<[1], [0], [0], [1], [0, 0, 1, 1], [], []>} : vector<8x32xbf16>, vector<32x128xbf16>, vector<8x128xf32> -> vector<8x128xf32>
    %c1_182 = arith.constant 1 : index
    %c0_183 = arith.constant 0 : index
    %c0_184 = arith.constant 0 : index
    %400 = vector.load %arg18[%c1_182, %c0_183, %c0_184] : memref<3x1x128xf32, #tpu.memory_space<vmem>>, vector<1x1x128xf32>
    %401 = vector.shape_cast %400 : vector<1x1x128xf32> to vector<1x128xf32>
    %402 = vector.broadcast %401 : vector<1x128xf32> to vector<8x128xf32>
    %403 = arith.addf %399, %402 : vector<8x128xf32>
    %404 = arith.mulf %403, %196 : vector<8x128xf32>
    %405 = arith.mulf %404, %404 : vector<8x128xf32>
    %406 = arith.mulf %404, %405 : vector<8x128xf32>
    %cst_185 = arith.constant 4.471500e-02 : f32
    %407 = vector.broadcast %cst_185 : f32 to vector<8x128xf32>
    %408 = arith.mulf %407, %406 : vector<8x128xf32>
    %409 = arith.addf %404, %408 : vector<8x128xf32>
    %cst_186 = arith.constant 0.797884583 : f32
    %410 = vector.broadcast %cst_186 : f32 to vector<8x128xf32>
    %411 = arith.mulf %410, %409 : vector<8x128xf32>
    %412 = math.tanh %411 : vector<8x128xf32>
    %cst_187 = arith.constant 1.000000e+00 : f32
    %413 = vector.broadcast %cst_187 : f32 to vector<8x128xf32>
    %414 = arith.addf %413, %412 : vector<8x128xf32>
    %cst_188 = arith.constant 5.000000e-01 : f32
    %415 = vector.broadcast %cst_188 : f32 to vector<8x128xf32>
    %416 = arith.mulf %415, %414 : vector<8x128xf32>
    %417 = arith.mulf %404, %416 : vector<8x128xf32>
    %c1_189 = arith.constant 1 : index
    %c0_190 = arith.constant 0 : index
    %c0_191 = arith.constant 0 : index
    %418 = vector.load %arg19[%c1_189, %c0_190, %c0_191] : memref<3x128x32xbf16, #tpu.memory_space<vmem>>, vector<1x128x32xbf16>
    %419 = vector.shape_cast %418 : vector<1x128x32xbf16> to vector<128x32xbf16>
    %420 = arith.truncf %417 : vector<8x128xf32> to vector<8x128xbf16>
    %cst_192 = arith.constant dense<0.000000e+00> : vector<8x32xf32>
    %421 = tpu.matmul %420, %419, %cst_192 {dimension_numbers = #tpu.dot_dimension_numbers<[1], [0], [0], [1], [0, 0, 1, 1], [], []>} : vector<8x128xbf16>, vector<128x32xbf16>, vector<8x32xf32> -> vector<8x32xf32>
    %c1_193 = arith.constant 1 : index
    %c0_194 = arith.constant 0 : index
    %c0_195 = arith.constant 0 : index
    %422 = vector.load %arg20[%c1_193, %c0_194, %c0_195] : memref<3x1x32xf32, #tpu.memory_space<vmem>>, vector<1x1x32xf32>
    %423 = vector.shape_cast %422 : vector<1x1x32xf32> to vector<1x32xf32>
    %424 = vector.broadcast %423 : vector<1x32xf32> to vector<8x32xf32>
    %425 = arith.addf %421, %424 : vector<8x32xf32>
    %426 = arith.mulf %425, %197 : vector<8x32xf32>
    %427 = vector.extract_strided_slice %291 {offsets = [1, 0], sizes = [1, 32], strides = [1, 1]} : vector<2x32xf32> to vector<1x32xf32>
    %428 = vector.broadcast %427 : vector<1x32xf32> to vector<8x32xf32>
    %429 = arith.mulf %428, %426 : vector<8x32xf32>
    %430 = arith.addf %373, %429 : vector<8x32xf32>
    %c0_196 = arith.constant 0 : index
    %c0_197 = arith.constant 0 : index
    %c0_198 = arith.constant 0 : index
    %431 = vector.load %arg24[%c0_196, %c0_197, %c0_198] : memref<2x2x32xf32, #tpu.memory_space<vmem>>, vector<1x2x32xf32>
    %432 = vector.shape_cast %431 : vector<1x2x32xf32> to vector<2x32xf32>
    %433 = vector.extract_strided_slice %432 {offsets = [0, 0], sizes = [1, 32], strides = [1, 1]} : vector<2x32xf32> to vector<1x32xf32>
    %434 = vector.extract_strided_slice %432 {offsets = [1, 0], sizes = [1, 32], strides = [1, 1]} : vector<2x32xf32> to vector<1x32xf32>
    %cst_199 = arith.constant dense<0.000000e+00> : vector<8xf32>
    %435 = vector.multi_reduction <add>, %430, %cst_199 [1] : vector<8x32xf32> to vector<8xf32>
    %436 = vector.shape_cast %435 : vector<8xf32> to vector<8x1xf32>
    %cst_200 = arith.constant 3.200000e+01 : f32
    %437 = vector.broadcast %cst_200 : f32 to vector<8x1xf32>
    %438 = arith.divf %436, %437 : vector<8x1xf32>
    %439 = vector.broadcast %438 : vector<8x1xf32> to vector<8x32xf32>
    %440 = arith.subf %430, %439 : vector<8x32xf32>
    %441 = arith.mulf %440, %440 : vector<8x32xf32>
    %cst_201 = arith.constant dense<0.000000e+00> : vector<8xf32>
    %442 = vector.multi_reduction <add>, %441, %cst_201 [1] : vector<8x32xf32> to vector<8xf32>
    %443 = vector.shape_cast %442 : vector<8xf32> to vector<8x1xf32>
    %cst_202 = arith.constant 3.200000e+01 : f32
    %444 = vector.broadcast %cst_202 : f32 to vector<8x1xf32>
    %445 = arith.divf %443, %444 : vector<8x1xf32>
    %cst_203 = arith.constant 9.99999974E-6 : f32
    %446 = vector.broadcast %cst_203 : f32 to vector<8x1xf32>
    %447 = arith.addf %445, %446 : vector<8x1xf32>
    %448 = math.rsqrt %447 : vector<8x1xf32>
    %449 = vector.broadcast %448 : vector<8x1xf32> to vector<8x32xf32>
    %450 = arith.mulf %440, %449 : vector<8x32xf32>
    %451 = vector.broadcast %433 : vector<1x32xf32> to vector<8x32xf32>
    %452 = arith.mulf %450, %451 : vector<8x32xf32>
    %453 = vector.broadcast %434 : vector<1x32xf32> to vector<8x32xf32>
    %454 = arith.addf %452, %453 : vector<8x32xf32>
    %c0_204 = arith.constant 0 : index
    %c0_205 = arith.constant 0 : index
    %c0_206 = arith.constant 0 : index
    %455 = vector.load %arg25[%c0_204, %c0_205, %c0_206] : memref<2x32x32xbf16, #tpu.memory_space<vmem>>, vector<1x32x32xbf16>
    %456 = vector.shape_cast %455 : vector<1x32x32xbf16> to vector<32x32xbf16>
    %457 = arith.truncf %454 : vector<8x32xf32> to vector<8x32xbf16>
    %cst_207 = arith.constant dense<0.000000e+00> : vector<8x32xf32>
    %458 = tpu.matmul %457, %456, %cst_207 {dimension_numbers = #tpu.dot_dimension_numbers<[1], [0], [0], [1], [0, 0, 1, 1], [], []>} : vector<8x32xbf16>, vector<32x32xbf16>, vector<8x32xf32> -> vector<8x32xf32>
    %c1_208 = arith.constant 1 : index
    %c0_209 = arith.constant 0 : index
    %c0_210 = arith.constant 0 : index
    %459 = vector.load %arg14[%c1_208, %c0_209, %c0_210] : memref<3x1x32xf32, #tpu.memory_space<vmem>>, vector<1x1x32xf32>
    %460 = vector.shape_cast %459 : vector<1x1x32xf32> to vector<1x32xf32>
    %461 = vector.broadcast %460 : vector<1x32xf32> to vector<8x32xf32>
    %462 = arith.addf %458, %461 : vector<8x32xf32>
    %463 = arith.mulf %462, %209 : vector<8x32xf32>
    %464 = vector.extract_strided_slice %463 {offsets = [0, 0], sizes = [8, 16], strides = [1, 1]} : vector<8x32xf32> to vector<8x16xf32>
    %465 = vector.extract_strided_slice %463 {offsets = [0, 16], sizes = [8, 16], strides = [1, 1]} : vector<8x32xf32> to vector<8x16xf32>
    %c1_211 = arith.constant 1 : index
    %c0_212 = arith.constant 0 : index
    %c0_213 = arith.constant 0 : index
    %466 = vector.load %arg10[%c1_211, %c0_212, %c0_213] : memref<3x4x32xf32, #tpu.memory_space<vmem>>, vector<1x4x32xf32>
    %467 = vector.shape_cast %466 : vector<1x4x32xf32> to vector<4x32xf32>
    %c1_214 = arith.constant 1 : index
    %c0_215 = arith.constant 0 : index
    %c0_216 = arith.constant 0 : index
    %468 = vector.load %arg11[%c1_214, %c0_215, %c0_216] : memref<3x2x32xf32, #tpu.memory_space<vmem>>, vector<1x2x32xf32>
    %469 = vector.shape_cast %468 : vector<1x2x32xf32> to vector<2x32xf32>
    %470 = vector.extract_strided_slice %467 {offsets = [0, 0], sizes = [1, 32], strides = [1, 1]} : vector<4x32xf32> to vector<1x32xf32>
    %471 = vector.extract_strided_slice %467 {offsets = [1, 0], sizes = [1, 32], strides = [1, 1]} : vector<4x32xf32> to vector<1x32xf32>
    %cst_217 = arith.constant dense<0.000000e+00> : vector<8xf32>
    %472 = vector.multi_reduction <add>, %430, %cst_217 [1] : vector<8x32xf32> to vector<8xf32>
    %473 = vector.shape_cast %472 : vector<8xf32> to vector<8x1xf32>
    %cst_218 = arith.constant 3.200000e+01 : f32
    %474 = vector.broadcast %cst_218 : f32 to vector<8x1xf32>
    %475 = arith.divf %473, %474 : vector<8x1xf32>
    %476 = vector.broadcast %475 : vector<8x1xf32> to vector<8x32xf32>
    %477 = arith.subf %430, %476 : vector<8x32xf32>
    %478 = arith.mulf %477, %477 : vector<8x32xf32>
    %cst_219 = arith.constant dense<0.000000e+00> : vector<8xf32>
    %479 = vector.multi_reduction <add>, %478, %cst_219 [1] : vector<8x32xf32> to vector<8xf32>
    %480 = vector.shape_cast %479 : vector<8xf32> to vector<8x1xf32>
    %cst_220 = arith.constant 3.200000e+01 : f32
    %481 = vector.broadcast %cst_220 : f32 to vector<8x1xf32>
    %482 = arith.divf %480, %481 : vector<8x1xf32>
    %cst_221 = arith.constant 9.99999974E-6 : f32
    %483 = vector.broadcast %cst_221 : f32 to vector<8x1xf32>
    %484 = arith.addf %482, %483 : vector<8x1xf32>
    %485 = math.rsqrt %484 : vector<8x1xf32>
    %486 = vector.broadcast %485 : vector<8x1xf32> to vector<8x32xf32>
    %487 = arith.mulf %477, %486 : vector<8x32xf32>
    %488 = vector.broadcast %470 : vector<1x32xf32> to vector<8x32xf32>
    %489 = arith.mulf %487, %488 : vector<8x32xf32>
    %490 = vector.broadcast %471 : vector<1x32xf32> to vector<8x32xf32>
    %491 = arith.addf %489, %490 : vector<8x32xf32>
    %c1_222 = arith.constant 1 : index
    %c0_223 = arith.constant 0 : index
    %c0_224 = arith.constant 0 : index
    %492 = vector.load %arg12[%c1_222, %c0_223, %c0_224] : memref<3x32x16xbf16, #tpu.memory_space<vmem>>, vector<1x32x16xbf16>
    %493 = vector.shape_cast %492 : vector<1x32x16xbf16> to vector<32x16xbf16>
    %494 = arith.truncf %491 : vector<8x32xf32> to vector<8x32xbf16>
    %cst_225 = arith.constant dense<0.000000e+00> : vector<8x16xf32>
    %495 = tpu.matmul %494, %493, %cst_225 {dimension_numbers = #tpu.dot_dimension_numbers<[1], [0], [0], [1], [0, 0, 1, 1], [], []>} : vector<8x32xbf16>, vector<32x16xbf16>, vector<8x16xf32> -> vector<8x16xf32>
    %c1_226 = arith.constant 1 : index
    %c0_227 = arith.constant 0 : index
    %c0_228 = arith.constant 0 : index
    %496 = vector.load %arg13[%c1_226, %c0_227, %c0_228] : memref<3x1x16xf32, #tpu.memory_space<vmem>>, vector<1x1x16xf32>
    %497 = vector.shape_cast %496 : vector<1x1x16xf32> to vector<1x16xf32>
    %498 = vector.broadcast %497 : vector<1x16xf32> to vector<8x16xf32>
    %499 = arith.addf %495, %498 : vector<8x16xf32>
    %500 = arith.mulf %499, %194 : vector<8x16xf32>
    %cst_229 = arith.constant 2.500000e-01 : f32
    %501 = vector.broadcast %cst_229 : f32 to vector<8x16xf32>
    %502 = arith.mulf %500, %501 : vector<8x16xf32>
    %503 = arith.truncf %502 : vector<8x16xf32> to vector<8x16xbf16>
    %504 = tpu.transpose %251, [1, 0] : vector<4x16xf32> -> vector<16x4xf32>
    %505 = arith.truncf %504 : vector<16x4xf32> to vector<16x4xbf16>
    %cst_230 = arith.constant dense<0.000000e+00> : vector<8x4xf32>
    %506 = tpu.matmul %503, %505, %cst_230 {dimension_numbers = #tpu.dot_dimension_numbers<[1], [0], [0], [1], [0, 0, 1, 1], [], []>} : vector<8x16xbf16>, vector<16x4xbf16>, vector<8x4xf32> -> vector<8x4xf32>
    %507 = arith.addf %506, %213 : vector<8x4xf32>
    %508 = arith.truncf %502 : vector<8x16xf32> to vector<8x16xbf16>
    %509 = tpu.transpose %464, [1, 0] : vector<8x16xf32> -> vector<16x8xf32>
    %510 = arith.truncf %509 : vector<16x8xf32> to vector<16x8xbf16>
    %cst_231 = arith.constant dense<0.000000e+00> : vector<8x8xf32>
    %511 = tpu.matmul %508, %510, %cst_231 {dimension_numbers = #tpu.dot_dimension_numbers<[1], [0], [0], [1], [0, 0, 1, 1], [], []>} : vector<8x16xbf16>, vector<16x8xbf16>, vector<8x8xf32> -> vector<8x8xf32>
    %512 = arith.addf %511, %217 : vector<8x8xf32>
    %cst_232 = arith.constant dense<0xFF800000> : vector<8xf32>
    %513 = vector.multi_reduction <maximumf>, %507, %cst_232 [1] : vector<8x4xf32> to vector<8xf32>
    %514 = vector.shape_cast %513 : vector<8xf32> to vector<8x1xf32>
    %cst_233 = arith.constant dense<0xFF800000> : vector<8xf32>
    %515 = vector.multi_reduction <maximumf>, %512, %cst_233 [1] : vector<8x8xf32> to vector<8xf32>
    %516 = vector.shape_cast %515 : vector<8xf32> to vector<8x1xf32>
    %517 = arith.maximumf %514, %516 : vector<8x1xf32>
    %518 = vector.broadcast %517 : vector<8x1xf32> to vector<8x4xf32>
    %519 = arith.subf %507, %518 : vector<8x4xf32>
    %520 = math.exp %519 : vector<8x4xf32>
    %cst_234 = arith.constant dense<0.000000e+00> : vector<8xf32>
    %521 = vector.multi_reduction <add>, %520, %cst_234 [1] : vector<8x4xf32> to vector<8xf32>
    %522 = vector.shape_cast %521 : vector<8xf32> to vector<8x1xf32>
    %523 = arith.truncf %520 : vector<8x4xf32> to vector<8x4xbf16>
    %524 = arith.truncf %252 : vector<4x16xf32> to vector<4x16xbf16>
    %cst_235 = arith.constant dense<0.000000e+00> : vector<8x16xf32>
    %525 = tpu.matmul %523, %524, %cst_235 {dimension_numbers = #tpu.dot_dimension_numbers<[1], [0], [0], [1], [0, 0, 1, 1], [], []>} : vector<8x4xbf16>, vector<4x16xbf16>, vector<8x16xf32> -> vector<8x16xf32>
    %526 = vector.broadcast %517 : vector<8x1xf32> to vector<8x8xf32>
    %527 = arith.subf %512, %526 : vector<8x8xf32>
    %528 = math.exp %527 : vector<8x8xf32>
    %cst_236 = arith.constant dense<0.000000e+00> : vector<8xf32>
    %529 = vector.multi_reduction <add>, %528, %cst_236 [1] : vector<8x8xf32> to vector<8xf32>
    %530 = vector.shape_cast %529 : vector<8xf32> to vector<8x1xf32>
    %531 = arith.addf %522, %530 : vector<8x1xf32>
    %532 = arith.truncf %528 : vector<8x8xf32> to vector<8x8xbf16>
    %533 = arith.truncf %465 : vector<8x16xf32> to vector<8x16xbf16>
    %cst_237 = arith.constant dense<0.000000e+00> : vector<8x16xf32>
    %534 = tpu.matmul %532, %533, %cst_237 {dimension_numbers = #tpu.dot_dimension_numbers<[1], [0], [0], [1], [0, 0, 1, 1], [], []>} : vector<8x8xbf16>, vector<8x16xbf16>, vector<8x16xf32> -> vector<8x16xf32>
    %535 = arith.addf %525, %534 : vector<8x16xf32>
    %536 = tpu.reciprocal %531 {approx = true} : vector<8x1xf32> -> vector<8x1xf32>
    %537 = vector.broadcast %536 : vector<8x1xf32> to vector<8x16xf32>
    %538 = arith.mulf %535, %537 : vector<8x16xf32>
    %c1_238 = arith.constant 1 : index
    %c0_239 = arith.constant 0 : index
    %c0_240 = arith.constant 0 : index
    %539 = vector.load %arg15[%c1_238, %c0_239, %c0_240] : memref<3x16x32xbf16, #tpu.memory_space<vmem>>, vector<1x16x32xbf16>
    %540 = vector.shape_cast %539 : vector<1x16x32xbf16> to vector<16x32xbf16>
    %541 = arith.truncf %538 : vector<8x16xf32> to vector<8x16xbf16>
    %cst_241 = arith.constant dense<0.000000e+00> : vector<8x32xf32>
    %542 = tpu.matmul %541, %540, %cst_241 {dimension_numbers = #tpu.dot_dimension_numbers<[1], [0], [0], [1], [0, 0, 1, 1], [], []>} : vector<8x16xbf16>, vector<16x32xbf16>, vector<8x32xf32> -> vector<8x32xf32>
    %c1_242 = arith.constant 1 : index
    %c0_243 = arith.constant 0 : index
    %c0_244 = arith.constant 0 : index
    %543 = vector.load %arg16[%c1_242, %c0_243, %c0_244] : memref<3x1x32xf32, #tpu.memory_space<vmem>>, vector<1x1x32xf32>
    %544 = vector.shape_cast %543 : vector<1x1x32xf32> to vector<1x32xf32>
    %545 = vector.broadcast %544 : vector<1x32xf32> to vector<8x32xf32>
    %546 = arith.addf %542, %545 : vector<8x32xf32>
    %547 = arith.mulf %546, %195 : vector<8x32xf32>
    %548 = vector.extract_strided_slice %469 {offsets = [0, 0], sizes = [1, 32], strides = [1, 1]} : vector<2x32xf32> to vector<1x32xf32>
    %549 = vector.broadcast %548 : vector<1x32xf32> to vector<8x32xf32>
    %550 = arith.mulf %549, %547 : vector<8x32xf32>
    %551 = arith.addf %430, %550 : vector<8x32xf32>
    %552 = vector.extract_strided_slice %467 {offsets = [2, 0], sizes = [1, 32], strides = [1, 1]} : vector<4x32xf32> to vector<1x32xf32>
    %553 = vector.extract_strided_slice %467 {offsets = [3, 0], sizes = [1, 32], strides = [1, 1]} : vector<4x32xf32> to vector<1x32xf32>
    %cst_245 = arith.constant dense<0.000000e+00> : vector<8xf32>
    %554 = vector.multi_reduction <add>, %551, %cst_245 [1] : vector<8x32xf32> to vector<8xf32>
    %555 = vector.shape_cast %554 : vector<8xf32> to vector<8x1xf32>
    %cst_246 = arith.constant 3.200000e+01 : f32
    %556 = vector.broadcast %cst_246 : f32 to vector<8x1xf32>
    %557 = arith.divf %555, %556 : vector<8x1xf32>
    %558 = vector.broadcast %557 : vector<8x1xf32> to vector<8x32xf32>
    %559 = arith.subf %551, %558 : vector<8x32xf32>
    %560 = arith.mulf %559, %559 : vector<8x32xf32>
    %cst_247 = arith.constant dense<0.000000e+00> : vector<8xf32>
    %561 = vector.multi_reduction <add>, %560, %cst_247 [1] : vector<8x32xf32> to vector<8xf32>
    %562 = vector.shape_cast %561 : vector<8xf32> to vector<8x1xf32>
    %cst_248 = arith.constant 3.200000e+01 : f32
    %563 = vector.broadcast %cst_248 : f32 to vector<8x1xf32>
    %564 = arith.divf %562, %563 : vector<8x1xf32>
    %cst_249 = arith.constant 9.99999974E-6 : f32
    %565 = vector.broadcast %cst_249 : f32 to vector<8x1xf32>
    %566 = arith.addf %564, %565 : vector<8x1xf32>
    %567 = math.rsqrt %566 : vector<8x1xf32>
    %568 = vector.broadcast %567 : vector<8x1xf32> to vector<8x32xf32>
    %569 = arith.mulf %559, %568 : vector<8x32xf32>
    %570 = vector.broadcast %552 : vector<1x32xf32> to vector<8x32xf32>
    %571 = arith.mulf %569, %570 : vector<8x32xf32>
    %572 = vector.broadcast %553 : vector<1x32xf32> to vector<8x32xf32>
    %573 = arith.addf %571, %572 : vector<8x32xf32>
    %c1_250 = arith.constant 1 : index
    %c0_251 = arith.constant 0 : index
    %c0_252 = arith.constant 0 : index
    %574 = vector.load %arg17[%c1_250, %c0_251, %c0_252] : memref<3x32x128xbf16, #tpu.memory_space<vmem>>, vector<1x32x128xbf16>
    %575 = vector.shape_cast %574 : vector<1x32x128xbf16> to vector<32x128xbf16>
    %576 = arith.truncf %573 : vector<8x32xf32> to vector<8x32xbf16>
    %cst_253 = arith.constant dense<0.000000e+00> : vector<8x128xf32>
    %577 = tpu.matmul %576, %575, %cst_253 {dimension_numbers = #tpu.dot_dimension_numbers<[1], [0], [0], [1], [0, 0, 1, 1], [], []>} : vector<8x32xbf16>, vector<32x128xbf16>, vector<8x128xf32> -> vector<8x128xf32>
    %c1_254 = arith.constant 1 : index
    %c0_255 = arith.constant 0 : index
    %c0_256 = arith.constant 0 : index
    %578 = vector.load %arg18[%c1_254, %c0_255, %c0_256] : memref<3x1x128xf32, #tpu.memory_space<vmem>>, vector<1x1x128xf32>
    %579 = vector.shape_cast %578 : vector<1x1x128xf32> to vector<1x128xf32>
    %580 = vector.broadcast %579 : vector<1x128xf32> to vector<8x128xf32>
    %581 = arith.addf %577, %580 : vector<8x128xf32>
    %582 = arith.mulf %581, %196 : vector<8x128xf32>
    %583 = arith.mulf %582, %582 : vector<8x128xf32>
    %584 = arith.mulf %582, %583 : vector<8x128xf32>
    %cst_257 = arith.constant 4.471500e-02 : f32
    %585 = vector.broadcast %cst_257 : f32 to vector<8x128xf32>
    %586 = arith.mulf %585, %584 : vector<8x128xf32>
    %587 = arith.addf %582, %586 : vector<8x128xf32>
    %cst_258 = arith.constant 0.797884583 : f32
    %588 = vector.broadcast %cst_258 : f32 to vector<8x128xf32>
    %589 = arith.mulf %588, %587 : vector<8x128xf32>
    %590 = math.tanh %589 : vector<8x128xf32>
    %cst_259 = arith.constant 1.000000e+00 : f32
    %591 = vector.broadcast %cst_259 : f32 to vector<8x128xf32>
    %592 = arith.addf %591, %590 : vector<8x128xf32>
    %cst_260 = arith.constant 5.000000e-01 : f32
    %593 = vector.broadcast %cst_260 : f32 to vector<8x128xf32>
    %594 = arith.mulf %593, %592 : vector<8x128xf32>
    %595 = arith.mulf %582, %594 : vector<8x128xf32>
    %c1_261 = arith.constant 1 : index
    %c0_262 = arith.constant 0 : index
    %c0_263 = arith.constant 0 : index
    %596 = vector.load %arg19[%c1_261, %c0_262, %c0_263] : memref<3x128x32xbf16, #tpu.memory_space<vmem>>, vector<1x128x32xbf16>
    %597 = vector.shape_cast %596 : vector<1x128x32xbf16> to vector<128x32xbf16>
    %598 = arith.truncf %595 : vector<8x128xf32> to vector<8x128xbf16>
    %cst_264 = arith.constant dense<0.000000e+00> : vector<8x32xf32>
    %599 = tpu.matmul %598, %597, %cst_264 {dimension_numbers = #tpu.dot_dimension_numbers<[1], [0], [0], [1], [0, 0, 1, 1], [], []>} : vector<8x128xbf16>, vector<128x32xbf16>, vector<8x32xf32> -> vector<8x32xf32>
    %c1_265 = arith.constant 1 : index
    %c0_266 = arith.constant 0 : index
    %c0_267 = arith.constant 0 : index
    %600 = vector.load %arg20[%c1_265, %c0_266, %c0_267] : memref<3x1x32xf32, #tpu.memory_space<vmem>>, vector<1x1x32xf32>
    %601 = vector.shape_cast %600 : vector<1x1x32xf32> to vector<1x32xf32>
    %602 = vector.broadcast %601 : vector<1x32xf32> to vector<8x32xf32>
    %603 = arith.addf %599, %602 : vector<8x32xf32>
    %604 = arith.mulf %603, %197 : vector<8x32xf32>
    %605 = vector.extract_strided_slice %469 {offsets = [1, 0], sizes = [1, 32], strides = [1, 1]} : vector<2x32xf32> to vector<1x32xf32>
    %606 = vector.broadcast %605 : vector<1x32xf32> to vector<8x32xf32>
    %607 = arith.mulf %606, %604 : vector<8x32xf32>
    %608 = arith.addf %551, %607 : vector<8x32xf32>
    %c2 = arith.constant 2 : index
    %c0_268 = arith.constant 0 : index
    %c0_269 = arith.constant 0 : index
    %609 = vector.load %arg21[%c2, %c0_268, %c0_269] : memref<3x16x208xbf16, #tpu.memory_space<vmem>>, vector<1x16x208xbf16>
    %610 = vector.shape_cast %609 : vector<1x16x208xbf16> to vector<16x208xbf16>
    %611 = arith.truncf %5 : vector<4x16xf32> to vector<4x16xbf16>
    %cst_270 = arith.constant dense<0.000000e+00> : vector<4x208xf32>
    %612 = tpu.matmul %611, %610, %cst_270 {dimension_numbers = #tpu.dot_dimension_numbers<[1], [0], [0], [1], [0, 0, 1, 1], [], []>} : vector<4x16xbf16>, vector<16x208xbf16>, vector<4x208xf32> -> vector<4x208xf32>
    %cst_271 = arith.constant 1.000000e+00 : f32
    %613 = vector.broadcast %cst_271 : f32 to vector<4x208xf32>
    %614 = arith.addf %613, %612 : vector<4x208xf32>
    %615 = vector.extract_strided_slice %614 {offsets = [0, 0], sizes = [4, 16], strides = [1, 1]} : vector<4x208xf32> to vector<4x16xf32>
    %616 = vector.extract_strided_slice %614 {offsets = [0, 16], sizes = [4, 32], strides = [1, 1]} : vector<4x208xf32> to vector<4x32xf32>
    %617 = vector.extract_strided_slice %614 {offsets = [0, 48], sizes = [4, 128], strides = [1, 1]} : vector<4x208xf32> to vector<4x128xf32>
    %618 = vector.extract_strided_slice %614 {offsets = [0, 176], sizes = [4, 32], strides = [1, 1]} : vector<4x208xf32> to vector<4x32xf32>
    %c1_272 = arith.constant 1 : index
    %c0_273 = arith.constant 0 : index
    %c0_274 = arith.constant 0 : index
    %619 = vector.load %arg26[%c1_272, %c0_273, %c0_274] : memref<2x16x32xbf16, #tpu.memory_space<vmem>>, vector<1x16x32xbf16>
    %620 = vector.shape_cast %619 : vector<1x16x32xbf16> to vector<16x32xbf16>
    %621 = arith.truncf %3 : vector<4x16xf32> to vector<4x16xbf16>
    %cst_275 = arith.constant dense<0.000000e+00> : vector<4x32xf32>
    %622 = tpu.matmul %621, %620, %cst_275 {dimension_numbers = #tpu.dot_dimension_numbers<[1], [0], [0], [1], [0, 0, 1, 1], [], []>} : vector<4x16xbf16>, vector<16x32xbf16>, vector<4x32xf32> -> vector<4x32xf32>
    %cst_276 = arith.constant 1.000000e+00 : f32
    %623 = vector.broadcast %cst_276 : f32 to vector<4x32xf32>
    %624 = arith.addf %623, %622 : vector<4x32xf32>
    %c1_277 = arith.constant 1 : index
    %c0_278 = arith.constant 0 : index
    %c0_279 = arith.constant 0 : index
    %625 = vector.load %arg26[%c1_277, %c0_278, %c0_279] : memref<2x16x32xbf16, #tpu.memory_space<vmem>>, vector<1x16x32xbf16>
    %626 = vector.shape_cast %625 : vector<1x16x32xbf16> to vector<16x32xbf16>
    %627 = arith.truncf %4 : vector<8x16xf32> to vector<8x16xbf16>
    %cst_280 = arith.constant dense<0.000000e+00> : vector<8x32xf32>
    %628 = tpu.matmul %627, %626, %cst_280 {dimension_numbers = #tpu.dot_dimension_numbers<[1], [0], [0], [1], [0, 0, 1, 1], [], []>} : vector<8x16xbf16>, vector<16x32xbf16>, vector<8x32xf32> -> vector<8x32xf32>
    %cst_281 = arith.constant 1.000000e+00 : f32
    %629 = vector.broadcast %cst_281 : f32 to vector<8x32xf32>
    %630 = arith.addf %629, %628 : vector<8x32xf32>
    %631 = tpu.transpose %0, [1, 0] : vector<4x8xf32> -> vector<8x4xf32>
    %cst_282 = arith.constant dense<0.000000e+00> : vector<4x4xf32>
    %632 = tpu.matmul %2, %631, %cst_282 {dimension_numbers = #tpu.dot_dimension_numbers<[1], [0], [0], [1], [0, 0, 1, 1], [], []>} : vector<4x8xf32>, vector<8x4xf32>, vector<4x4xf32> -> vector<4x4xf32>
    %cst_283 = arith.constant 0.353553385 : f32
    %633 = vector.broadcast %cst_283 : f32 to vector<4x4xf32>
    %634 = arith.mulf %632, %633 : vector<4x4xf32>
    %635 = tpu.transpose %1, [1, 0] : vector<8x8xf32> -> vector<8x8xf32>
    %cst_284 = arith.constant dense<0.000000e+00> : vector<4x8xf32>
    %636 = tpu.matmul %2, %635, %cst_284 {dimension_numbers = #tpu.dot_dimension_numbers<[1], [0], [0], [1], [0, 0, 1, 1], [], []>} : vector<4x8xf32>, vector<8x8xf32>, vector<4x8xf32> -> vector<4x8xf32>
    %cst_285 = arith.constant 0.353553385 : f32
    %637 = vector.broadcast %cst_285 : f32 to vector<4x8xf32>
    %638 = arith.mulf %636, %637 : vector<4x8xf32>
    %c1_286 = arith.constant 1 : index
    %c0_287 = arith.constant 0 : index
    %c0_288 = arith.constant 0 : index
    %639 = vector.load %arg24[%c1_286, %c0_287, %c0_288] : memref<2x2x32xf32, #tpu.memory_space<vmem>>, vector<1x2x32xf32>
    %640 = vector.shape_cast %639 : vector<1x2x32xf32> to vector<2x32xf32>
    %641 = vector.extract_strided_slice %640 {offsets = [0, 0], sizes = [1, 32], strides = [1, 1]} : vector<2x32xf32> to vector<1x32xf32>
    %642 = vector.extract_strided_slice %640 {offsets = [1, 0], sizes = [1, 32], strides = [1, 1]} : vector<2x32xf32> to vector<1x32xf32>
    %cst_289 = arith.constant dense<0.000000e+00> : vector<4xf32>
    %643 = vector.multi_reduction <add>, %187, %cst_289 [1] : vector<4x32xf32> to vector<4xf32>
    %644 = vector.shape_cast %643 : vector<4xf32> to vector<4x1xf32>
    %cst_290 = arith.constant 3.200000e+01 : f32
    %645 = vector.broadcast %cst_290 : f32 to vector<4x1xf32>
    %646 = arith.divf %644, %645 : vector<4x1xf32>
    %647 = vector.broadcast %646 : vector<4x1xf32> to vector<4x32xf32>
    %648 = arith.subf %187, %647 : vector<4x32xf32>
    %649 = arith.mulf %648, %648 : vector<4x32xf32>
    %cst_291 = arith.constant dense<0.000000e+00> : vector<4xf32>
    %650 = vector.multi_reduction <add>, %649, %cst_291 [1] : vector<4x32xf32> to vector<4xf32>
    %651 = vector.shape_cast %650 : vector<4xf32> to vector<4x1xf32>
    %cst_292 = arith.constant 3.200000e+01 : f32
    %652 = vector.broadcast %cst_292 : f32 to vector<4x1xf32>
    %653 = arith.divf %651, %652 : vector<4x1xf32>
    %cst_293 = arith.constant 9.99999974E-6 : f32
    %654 = vector.broadcast %cst_293 : f32 to vector<4x1xf32>
    %655 = arith.addf %653, %654 : vector<4x1xf32>
    %656 = math.rsqrt %655 : vector<4x1xf32>
    %657 = vector.broadcast %656 : vector<4x1xf32> to vector<4x32xf32>
    %658 = arith.mulf %648, %657 : vector<4x32xf32>
    %659 = vector.broadcast %641 : vector<1x32xf32> to vector<4x32xf32>
    %660 = arith.mulf %658, %659 : vector<4x32xf32>
    %661 = vector.broadcast %642 : vector<1x32xf32> to vector<4x32xf32>
    %662 = arith.addf %660, %661 : vector<4x32xf32>
    %c1_294 = arith.constant 1 : index
    %c0_295 = arith.constant 0 : index
    %c0_296 = arith.constant 0 : index
    %663 = vector.load %arg25[%c1_294, %c0_295, %c0_296] : memref<2x32x32xbf16, #tpu.memory_space<vmem>>, vector<1x32x32xbf16>
    %664 = vector.shape_cast %663 : vector<1x32x32xbf16> to vector<32x32xbf16>
    %665 = arith.truncf %662 : vector<4x32xf32> to vector<4x32xbf16>
    %cst_297 = arith.constant dense<0.000000e+00> : vector<4x32xf32>
    %666 = tpu.matmul %665, %664, %cst_297 {dimension_numbers = #tpu.dot_dimension_numbers<[1], [0], [0], [1], [0, 0, 1, 1], [], []>} : vector<4x32xbf16>, vector<32x32xbf16>, vector<4x32xf32> -> vector<4x32xf32>
    %c2_298 = arith.constant 2 : index
    %c0_299 = arith.constant 0 : index
    %c0_300 = arith.constant 0 : index
    %667 = vector.load %arg14[%c2_298, %c0_299, %c0_300] : memref<3x1x32xf32, #tpu.memory_space<vmem>>, vector<1x1x32xf32>
    %668 = vector.shape_cast %667 : vector<1x1x32xf32> to vector<1x32xf32>
    %669 = vector.broadcast %668 : vector<1x32xf32> to vector<4x32xf32>
    %670 = arith.addf %666, %669 : vector<4x32xf32>
    %671 = arith.mulf %670, %624 : vector<4x32xf32>
    %672 = vector.extract_strided_slice %671 {offsets = [0, 0], sizes = [4, 16], strides = [1, 1]} : vector<4x32xf32> to vector<4x16xf32>
    %673 = vector.extract_strided_slice %671 {offsets = [0, 16], sizes = [4, 16], strides = [1, 1]} : vector<4x32xf32> to vector<4x16xf32>
    %c1_301 = arith.constant 1 : index
    %c0_302 = arith.constant 0 : index
    %c0_303 = arith.constant 0 : index
    %674 = vector.load %arg24[%c1_301, %c0_302, %c0_303] : memref<2x2x32xf32, #tpu.memory_space<vmem>>, vector<1x2x32xf32>
    %675 = vector.shape_cast %674 : vector<1x2x32xf32> to vector<2x32xf32>
    %676 = vector.extract_strided_slice %675 {offsets = [0, 0], sizes = [1, 32], strides = [1, 1]} : vector<2x32xf32> to vector<1x32xf32>
    %677 = vector.extract_strided_slice %675 {offsets = [1, 0], sizes = [1, 32], strides = [1, 1]} : vector<2x32xf32> to vector<1x32xf32>
    %cst_304 = arith.constant dense<0.000000e+00> : vector<8xf32>
    %678 = vector.multi_reduction <add>, %608, %cst_304 [1] : vector<8x32xf32> to vector<8xf32>
    %679 = vector.shape_cast %678 : vector<8xf32> to vector<8x1xf32>
    %cst_305 = arith.constant 3.200000e+01 : f32
    %680 = vector.broadcast %cst_305 : f32 to vector<8x1xf32>
    %681 = arith.divf %679, %680 : vector<8x1xf32>
    %682 = vector.broadcast %681 : vector<8x1xf32> to vector<8x32xf32>
    %683 = arith.subf %608, %682 : vector<8x32xf32>
    %684 = arith.mulf %683, %683 : vector<8x32xf32>
    %cst_306 = arith.constant dense<0.000000e+00> : vector<8xf32>
    %685 = vector.multi_reduction <add>, %684, %cst_306 [1] : vector<8x32xf32> to vector<8xf32>
    %686 = vector.shape_cast %685 : vector<8xf32> to vector<8x1xf32>
    %cst_307 = arith.constant 3.200000e+01 : f32
    %687 = vector.broadcast %cst_307 : f32 to vector<8x1xf32>
    %688 = arith.divf %686, %687 : vector<8x1xf32>
    %cst_308 = arith.constant 9.99999974E-6 : f32
    %689 = vector.broadcast %cst_308 : f32 to vector<8x1xf32>
    %690 = arith.addf %688, %689 : vector<8x1xf32>
    %691 = math.rsqrt %690 : vector<8x1xf32>
    %692 = vector.broadcast %691 : vector<8x1xf32> to vector<8x32xf32>
    %693 = arith.mulf %683, %692 : vector<8x32xf32>
    %694 = vector.broadcast %676 : vector<1x32xf32> to vector<8x32xf32>
    %695 = arith.mulf %693, %694 : vector<8x32xf32>
    %696 = vector.broadcast %677 : vector<1x32xf32> to vector<8x32xf32>
    %697 = arith.addf %695, %696 : vector<8x32xf32>
    %c1_309 = arith.constant 1 : index
    %c0_310 = arith.constant 0 : index
    %c0_311 = arith.constant 0 : index
    %698 = vector.load %arg25[%c1_309, %c0_310, %c0_311] : memref<2x32x32xbf16, #tpu.memory_space<vmem>>, vector<1x32x32xbf16>
    %699 = vector.shape_cast %698 : vector<1x32x32xbf16> to vector<32x32xbf16>
    %700 = arith.truncf %697 : vector<8x32xf32> to vector<8x32xbf16>
    %cst_312 = arith.constant dense<0.000000e+00> : vector<8x32xf32>
    %701 = tpu.matmul %700, %699, %cst_312 {dimension_numbers = #tpu.dot_dimension_numbers<[1], [0], [0], [1], [0, 0, 1, 1], [], []>} : vector<8x32xbf16>, vector<32x32xbf16>, vector<8x32xf32> -> vector<8x32xf32>
    %c2_313 = arith.constant 2 : index
    %c0_314 = arith.constant 0 : index
    %c0_315 = arith.constant 0 : index
    %702 = vector.load %arg14[%c2_313, %c0_314, %c0_315] : memref<3x1x32xf32, #tpu.memory_space<vmem>>, vector<1x1x32xf32>
    %703 = vector.shape_cast %702 : vector<1x1x32xf32> to vector<1x32xf32>
    %704 = vector.broadcast %703 : vector<1x32xf32> to vector<8x32xf32>
    %705 = arith.addf %701, %704 : vector<8x32xf32>
    %706 = arith.mulf %705, %630 : vector<8x32xf32>
    %707 = vector.extract_strided_slice %706 {offsets = [0, 0], sizes = [8, 16], strides = [1, 1]} : vector<8x32xf32> to vector<8x16xf32>
    %708 = vector.extract_strided_slice %706 {offsets = [0, 16], sizes = [8, 16], strides = [1, 1]} : vector<8x32xf32> to vector<8x16xf32>
    %c2_316 = arith.constant 2 : index
    %c0_317 = arith.constant 0 : index
    %c0_318 = arith.constant 0 : index
    %709 = vector.load %arg10[%c2_316, %c0_317, %c0_318] : memref<3x4x32xf32, #tpu.memory_space<vmem>>, vector<1x4x32xf32>
    %710 = vector.shape_cast %709 : vector<1x4x32xf32> to vector<4x32xf32>
    %c2_319 = arith.constant 2 : index
    %c0_320 = arith.constant 0 : index
    %c0_321 = arith.constant 0 : index
    %711 = vector.load %arg11[%c2_319, %c0_320, %c0_321] : memref<3x2x32xf32, #tpu.memory_space<vmem>>, vector<1x2x32xf32>
    %712 = vector.shape_cast %711 : vector<1x2x32xf32> to vector<2x32xf32>
    %713 = vector.extract_strided_slice %710 {offsets = [0, 0], sizes = [1, 32], strides = [1, 1]} : vector<4x32xf32> to vector<1x32xf32>
    %714 = vector.extract_strided_slice %710 {offsets = [1, 0], sizes = [1, 32], strides = [1, 1]} : vector<4x32xf32> to vector<1x32xf32>
    %cst_322 = arith.constant dense<0.000000e+00> : vector<4xf32>
    %715 = vector.multi_reduction <add>, %19, %cst_322 [1] : vector<4x32xf32> to vector<4xf32>
    %716 = vector.shape_cast %715 : vector<4xf32> to vector<4x1xf32>
    %cst_323 = arith.constant 3.200000e+01 : f32
    %717 = vector.broadcast %cst_323 : f32 to vector<4x1xf32>
    %718 = arith.divf %716, %717 : vector<4x1xf32>
    %719 = vector.broadcast %718 : vector<4x1xf32> to vector<4x32xf32>
    %720 = arith.subf %19, %719 : vector<4x32xf32>
    %721 = arith.mulf %720, %720 : vector<4x32xf32>
    %cst_324 = arith.constant dense<0.000000e+00> : vector<4xf32>
    %722 = vector.multi_reduction <add>, %721, %cst_324 [1] : vector<4x32xf32> to vector<4xf32>
    %723 = vector.shape_cast %722 : vector<4xf32> to vector<4x1xf32>
    %cst_325 = arith.constant 3.200000e+01 : f32
    %724 = vector.broadcast %cst_325 : f32 to vector<4x1xf32>
    %725 = arith.divf %723, %724 : vector<4x1xf32>
    %cst_326 = arith.constant 9.99999974E-6 : f32
    %726 = vector.broadcast %cst_326 : f32 to vector<4x1xf32>
    %727 = arith.addf %725, %726 : vector<4x1xf32>
    %728 = math.rsqrt %727 : vector<4x1xf32>
    %729 = vector.broadcast %728 : vector<4x1xf32> to vector<4x32xf32>
    %730 = arith.mulf %720, %729 : vector<4x32xf32>
    %731 = vector.broadcast %713 : vector<1x32xf32> to vector<4x32xf32>
    %732 = arith.mulf %730, %731 : vector<4x32xf32>
    %733 = vector.broadcast %714 : vector<1x32xf32> to vector<4x32xf32>
    %734 = arith.addf %732, %733 : vector<4x32xf32>
    %c2_327 = arith.constant 2 : index
    %c0_328 = arith.constant 0 : index
    %c0_329 = arith.constant 0 : index
    %735 = vector.load %arg12[%c2_327, %c0_328, %c0_329] : memref<3x32x16xbf16, #tpu.memory_space<vmem>>, vector<1x32x16xbf16>
    %736 = vector.shape_cast %735 : vector<1x32x16xbf16> to vector<32x16xbf16>
    %737 = arith.truncf %734 : vector<4x32xf32> to vector<4x32xbf16>
    %cst_330 = arith.constant dense<0.000000e+00> : vector<4x16xf32>
    %738 = tpu.matmul %737, %736, %cst_330 {dimension_numbers = #tpu.dot_dimension_numbers<[1], [0], [0], [1], [0, 0, 1, 1], [], []>} : vector<4x32xbf16>, vector<32x16xbf16>, vector<4x16xf32> -> vector<4x16xf32>
    %c2_331 = arith.constant 2 : index
    %c0_332 = arith.constant 0 : index
    %c0_333 = arith.constant 0 : index
    %739 = vector.load %arg13[%c2_331, %c0_332, %c0_333] : memref<3x1x16xf32, #tpu.memory_space<vmem>>, vector<1x1x16xf32>
    %740 = vector.shape_cast %739 : vector<1x1x16xf32> to vector<1x16xf32>
    %741 = vector.broadcast %740 : vector<1x16xf32> to vector<4x16xf32>
    %742 = arith.addf %738, %741 : vector<4x16xf32>
    %743 = arith.mulf %742, %615 : vector<4x16xf32>
    %cst_334 = arith.constant 2.500000e-01 : f32
    %744 = vector.broadcast %cst_334 : f32 to vector<4x16xf32>
    %745 = arith.mulf %743, %744 : vector<4x16xf32>
    %746 = arith.truncf %745 : vector<4x16xf32> to vector<4x16xbf16>
    %747 = tpu.transpose %672, [1, 0] : vector<4x16xf32> -> vector<16x4xf32>
    %748 = arith.truncf %747 : vector<16x4xf32> to vector<16x4xbf16>
    %cst_335 = arith.constant dense<0.000000e+00> : vector<4x4xf32>
    %749 = tpu.matmul %746, %748, %cst_335 {dimension_numbers = #tpu.dot_dimension_numbers<[1], [0], [0], [1], [0, 0, 1, 1], [], []>} : vector<4x16xbf16>, vector<16x4xbf16>, vector<4x4xf32> -> vector<4x4xf32>
    %750 = arith.addf %749, %634 : vector<4x4xf32>
    %751 = arith.truncf %745 : vector<4x16xf32> to vector<4x16xbf16>
    %752 = tpu.transpose %707, [1, 0] : vector<8x16xf32> -> vector<16x8xf32>
    %753 = arith.truncf %752 : vector<16x8xf32> to vector<16x8xbf16>
    %cst_336 = arith.constant dense<0.000000e+00> : vector<4x8xf32>
    %754 = tpu.matmul %751, %753, %cst_336 {dimension_numbers = #tpu.dot_dimension_numbers<[1], [0], [0], [1], [0, 0, 1, 1], [], []>} : vector<4x16xbf16>, vector<16x8xbf16>, vector<4x8xf32> -> vector<4x8xf32>
    %755 = arith.addf %754, %638 : vector<4x8xf32>
    %cst_337 = arith.constant dense<0xFF800000> : vector<4xf32>
    %756 = vector.multi_reduction <maximumf>, %750, %cst_337 [1] : vector<4x4xf32> to vector<4xf32>
    %757 = vector.shape_cast %756 : vector<4xf32> to vector<4x1xf32>
    %cst_338 = arith.constant dense<0xFF800000> : vector<4xf32>
    %758 = vector.multi_reduction <maximumf>, %755, %cst_338 [1] : vector<4x8xf32> to vector<4xf32>
    %759 = vector.shape_cast %758 : vector<4xf32> to vector<4x1xf32>
    %760 = arith.maximumf %757, %759 : vector<4x1xf32>
    %761 = vector.broadcast %760 : vector<4x1xf32> to vector<4x4xf32>
    %762 = arith.subf %750, %761 : vector<4x4xf32>
    %763 = math.exp %762 : vector<4x4xf32>
    %cst_339 = arith.constant dense<0.000000e+00> : vector<4xf32>
    %764 = vector.multi_reduction <add>, %763, %cst_339 [1] : vector<4x4xf32> to vector<4xf32>
    %765 = vector.shape_cast %764 : vector<4xf32> to vector<4x1xf32>
    %766 = arith.truncf %763 : vector<4x4xf32> to vector<4x4xbf16>
    %767 = arith.truncf %673 : vector<4x16xf32> to vector<4x16xbf16>
    %cst_340 = arith.constant dense<0.000000e+00> : vector<4x16xf32>
    %768 = tpu.matmul %766, %767, %cst_340 {dimension_numbers = #tpu.dot_dimension_numbers<[1], [0], [0], [1], [0, 0, 1, 1], [], []>} : vector<4x4xbf16>, vector<4x16xbf16>, vector<4x16xf32> -> vector<4x16xf32>
    %769 = vector.broadcast %760 : vector<4x1xf32> to vector<4x8xf32>
    %770 = arith.subf %755, %769 : vector<4x8xf32>
    %771 = math.exp %770 : vector<4x8xf32>
    %cst_341 = arith.constant dense<0.000000e+00> : vector<4xf32>
    %772 = vector.multi_reduction <add>, %771, %cst_341 [1] : vector<4x8xf32> to vector<4xf32>
    %773 = vector.shape_cast %772 : vector<4xf32> to vector<4x1xf32>
    %774 = arith.addf %765, %773 : vector<4x1xf32>
    %775 = arith.truncf %771 : vector<4x8xf32> to vector<4x8xbf16>
    %776 = arith.truncf %708 : vector<8x16xf32> to vector<8x16xbf16>
    %cst_342 = arith.constant dense<0.000000e+00> : vector<4x16xf32>
    %777 = tpu.matmul %775, %776, %cst_342 {dimension_numbers = #tpu.dot_dimension_numbers<[1], [0], [0], [1], [0, 0, 1, 1], [], []>} : vector<4x8xbf16>, vector<8x16xbf16>, vector<4x16xf32> -> vector<4x16xf32>
    %778 = arith.addf %768, %777 : vector<4x16xf32>
    %779 = tpu.reciprocal %774 {approx = true} : vector<4x1xf32> -> vector<4x1xf32>
    %780 = vector.broadcast %779 : vector<4x1xf32> to vector<4x16xf32>
    %781 = arith.mulf %778, %780 : vector<4x16xf32>
    %c2_343 = arith.constant 2 : index
    %c0_344 = arith.constant 0 : index
    %c0_345 = arith.constant 0 : index
    %782 = vector.load %arg15[%c2_343, %c0_344, %c0_345] : memref<3x16x32xbf16, #tpu.memory_space<vmem>>, vector<1x16x32xbf16>
    %783 = vector.shape_cast %782 : vector<1x16x32xbf16> to vector<16x32xbf16>
    %784 = arith.truncf %781 : vector<4x16xf32> to vector<4x16xbf16>
    %cst_346 = arith.constant dense<0.000000e+00> : vector<4x32xf32>
    %785 = tpu.matmul %784, %783, %cst_346 {dimension_numbers = #tpu.dot_dimension_numbers<[1], [0], [0], [1], [0, 0, 1, 1], [], []>} : vector<4x16xbf16>, vector<16x32xbf16>, vector<4x32xf32> -> vector<4x32xf32>
    %c2_347 = arith.constant 2 : index
    %c0_348 = arith.constant 0 : index
    %c0_349 = arith.constant 0 : index
    %786 = vector.load %arg16[%c2_347, %c0_348, %c0_349] : memref<3x1x32xf32, #tpu.memory_space<vmem>>, vector<1x1x32xf32>
    %787 = vector.shape_cast %786 : vector<1x1x32xf32> to vector<1x32xf32>
    %788 = vector.broadcast %787 : vector<1x32xf32> to vector<4x32xf32>
    %789 = arith.addf %785, %788 : vector<4x32xf32>
    %790 = arith.mulf %789, %616 : vector<4x32xf32>
    %791 = vector.extract_strided_slice %712 {offsets = [0, 0], sizes = [1, 32], strides = [1, 1]} : vector<2x32xf32> to vector<1x32xf32>
    %792 = vector.broadcast %791 : vector<1x32xf32> to vector<4x32xf32>
    %793 = arith.mulf %792, %790 : vector<4x32xf32>
    %794 = arith.addf %19, %793 : vector<4x32xf32>
    %795 = vector.extract_strided_slice %710 {offsets = [2, 0], sizes = [1, 32], strides = [1, 1]} : vector<4x32xf32> to vector<1x32xf32>
    %796 = vector.extract_strided_slice %710 {offsets = [3, 0], sizes = [1, 32], strides = [1, 1]} : vector<4x32xf32> to vector<1x32xf32>
    %cst_350 = arith.constant dense<0.000000e+00> : vector<4xf32>
    %797 = vector.multi_reduction <add>, %794, %cst_350 [1] : vector<4x32xf32> to vector<4xf32>
    %798 = vector.shape_cast %797 : vector<4xf32> to vector<4x1xf32>
    %cst_351 = arith.constant 3.200000e+01 : f32
    %799 = vector.broadcast %cst_351 : f32 to vector<4x1xf32>
    %800 = arith.divf %798, %799 : vector<4x1xf32>
    %801 = vector.broadcast %800 : vector<4x1xf32> to vector<4x32xf32>
    %802 = arith.subf %794, %801 : vector<4x32xf32>
    %803 = arith.mulf %802, %802 : vector<4x32xf32>
    %cst_352 = arith.constant dense<0.000000e+00> : vector<4xf32>
    %804 = vector.multi_reduction <add>, %803, %cst_352 [1] : vector<4x32xf32> to vector<4xf32>
    %805 = vector.shape_cast %804 : vector<4xf32> to vector<4x1xf32>
    %cst_353 = arith.constant 3.200000e+01 : f32
    %806 = vector.broadcast %cst_353 : f32 to vector<4x1xf32>
    %807 = arith.divf %805, %806 : vector<4x1xf32>
    %cst_354 = arith.constant 9.99999974E-6 : f32
    %808 = vector.broadcast %cst_354 : f32 to vector<4x1xf32>
    %809 = arith.addf %807, %808 : vector<4x1xf32>
    %810 = math.rsqrt %809 : vector<4x1xf32>
    %811 = vector.broadcast %810 : vector<4x1xf32> to vector<4x32xf32>
    %812 = arith.mulf %802, %811 : vector<4x32xf32>
    %813 = vector.broadcast %795 : vector<1x32xf32> to vector<4x32xf32>
    %814 = arith.mulf %812, %813 : vector<4x32xf32>
    %815 = vector.broadcast %796 : vector<1x32xf32> to vector<4x32xf32>
    %816 = arith.addf %814, %815 : vector<4x32xf32>
    %c2_355 = arith.constant 2 : index
    %c0_356 = arith.constant 0 : index
    %c0_357 = arith.constant 0 : index
    %817 = vector.load %arg17[%c2_355, %c0_356, %c0_357] : memref<3x32x128xbf16, #tpu.memory_space<vmem>>, vector<1x32x128xbf16>
    %818 = vector.shape_cast %817 : vector<1x32x128xbf16> to vector<32x128xbf16>
    %819 = arith.truncf %816 : vector<4x32xf32> to vector<4x32xbf16>
    %cst_358 = arith.constant dense<0.000000e+00> : vector<4x128xf32>
    %820 = tpu.matmul %819, %818, %cst_358 {dimension_numbers = #tpu.dot_dimension_numbers<[1], [0], [0], [1], [0, 0, 1, 1], [], []>} : vector<4x32xbf16>, vector<32x128xbf16>, vector<4x128xf32> -> vector<4x128xf32>
    %c2_359 = arith.constant 2 : index
    %c0_360 = arith.constant 0 : index
    %c0_361 = arith.constant 0 : index
    %821 = vector.load %arg18[%c2_359, %c0_360, %c0_361] : memref<3x1x128xf32, #tpu.memory_space<vmem>>, vector<1x1x128xf32>
    %822 = vector.shape_cast %821 : vector<1x1x128xf32> to vector<1x128xf32>
    %823 = vector.broadcast %822 : vector<1x128xf32> to vector<4x128xf32>
    %824 = arith.addf %820, %823 : vector<4x128xf32>
    %825 = arith.mulf %824, %617 : vector<4x128xf32>
    %826 = arith.mulf %825, %825 : vector<4x128xf32>
    %827 = arith.mulf %825, %826 : vector<4x128xf32>
    %cst_362 = arith.constant 4.471500e-02 : f32
    %828 = vector.broadcast %cst_362 : f32 to vector<4x128xf32>
    %829 = arith.mulf %828, %827 : vector<4x128xf32>
    %830 = arith.addf %825, %829 : vector<4x128xf32>
    %cst_363 = arith.constant 0.797884583 : f32
    %831 = vector.broadcast %cst_363 : f32 to vector<4x128xf32>
    %832 = arith.mulf %831, %830 : vector<4x128xf32>
    %833 = math.tanh %832 : vector<4x128xf32>
    %cst_364 = arith.constant 1.000000e+00 : f32
    %834 = vector.broadcast %cst_364 : f32 to vector<4x128xf32>
    %835 = arith.addf %834, %833 : vector<4x128xf32>
    %cst_365 = arith.constant 5.000000e-01 : f32
    %836 = vector.broadcast %cst_365 : f32 to vector<4x128xf32>
    %837 = arith.mulf %836, %835 : vector<4x128xf32>
    %838 = arith.mulf %825, %837 : vector<4x128xf32>
    %c2_366 = arith.constant 2 : index
    %c0_367 = arith.constant 0 : index
    %c0_368 = arith.constant 0 : index
    %839 = vector.load %arg19[%c2_366, %c0_367, %c0_368] : memref<3x128x32xbf16, #tpu.memory_space<vmem>>, vector<1x128x32xbf16>
    %840 = vector.shape_cast %839 : vector<1x128x32xbf16> to vector<128x32xbf16>
    %841 = arith.truncf %838 : vector<4x128xf32> to vector<4x128xbf16>
    %cst_369 = arith.constant dense<0.000000e+00> : vector<4x32xf32>
    %842 = tpu.matmul %841, %840, %cst_369 {dimension_numbers = #tpu.dot_dimension_numbers<[1], [0], [0], [1], [0, 0, 1, 1], [], []>} : vector<4x128xbf16>, vector<128x32xbf16>, vector<4x32xf32> -> vector<4x32xf32>
    %c2_370 = arith.constant 2 : index
    %c0_371 = arith.constant 0 : index
    %c0_372 = arith.constant 0 : index
    %843 = vector.load %arg20[%c2_370, %c0_371, %c0_372] : memref<3x1x32xf32, #tpu.memory_space<vmem>>, vector<1x1x32xf32>
    %844 = vector.shape_cast %843 : vector<1x1x32xf32> to vector<1x32xf32>
    %845 = vector.broadcast %844 : vector<1x32xf32> to vector<4x32xf32>
    %846 = arith.addf %842, %845 : vector<4x32xf32>
    %847 = arith.mulf %846, %618 : vector<4x32xf32>
    %848 = vector.extract_strided_slice %712 {offsets = [1, 0], sizes = [1, 32], strides = [1, 1]} : vector<2x32xf32> to vector<1x32xf32>
    %849 = vector.broadcast %848 : vector<1x32xf32> to vector<4x32xf32>
    %850 = arith.mulf %849, %847 : vector<4x32xf32>
    %851 = arith.addf %794, %850 : vector<4x32xf32>
    %c0_373 = arith.constant 0 : index
    %c0_374 = arith.constant 0 : index
    %c0_375 = arith.constant 0 : index
    %852 = vector.load %arg27[%c0_373, %c0_374, %c0_375] : memref<1x4x32xf32, #tpu.memory_space<vmem>>, vector<1x4x32xf32>
    %853 = vector.shape_cast %852 : vector<1x4x32xf32> to vector<4x32xf32>
    %854 = vector.shape_cast %187 : vector<4x32xf32> to vector<1x4x32xf32>
    tpu.vector_store %arg27[%c0_373, %c0_374, %c0_375], %854 {strides = array<i32>} : memref<1x4x32xf32, #tpu.memory_space<vmem>>, vector<1x4x32xf32>,
    %c0_376 = arith.constant 0 : index
    %c0_377 = arith.constant 0 : index
    %c0_378 = arith.constant 0 : index
    %855 = vector.load %arg28[%c0_376, %c0_377, %c0_378] : memref<1x8x32xf32, #tpu.memory_space<vmem>>, vector<1x8x32xf32>
    %856 = vector.shape_cast %855 : vector<1x8x32xf32> to vector<8x32xf32>
    %857 = vector.shape_cast %608 : vector<8x32xf32> to vector<1x8x32xf32>
    tpu.vector_store %arg28[%c0_376, %c0_377, %c0_378], %857 {strides = array<i32>} : memref<1x8x32xf32, #tpu.memory_space<vmem>>, vector<1x8x32xf32>,
    %c0_379 = arith.constant 0 : index
    %c0_380 = arith.constant 0 : index
    %c0_381 = arith.constant 0 : index
    %858 = vector.load %arg29[%c0_379, %c0_380, %c0_381] : memref<1x4x32xf32, #tpu.memory_space<vmem>>, vector<1x4x32xf32>
    %859 = vector.shape_cast %858 : vector<1x4x32xf32> to vector<4x32xf32>
    %860 = vector.shape_cast %851 : vector<4x32xf32> to vector<1x4x32xf32>
    tpu.vector_store %arg29[%c0_379, %c0_380, %c0_381], %860 {strides = array<i32>} : memref<1x4x32xf32, #tpu.memory_space<vmem>>, vector<1x4x32xf32>,
    return
  }
  func.func @transform_0(%arg0: i32) -> (i32, i32, i32) {
    %c0_i32 = arith.constant 0 : i32
    %c0_i32_0 = arith.constant 0 : i32
    %c0_i32_1 = arith.constant 0 : i32
    return %arg0, %c0_i32, %c0_i32_0 : i32, i32, i32
  }
  func.func @transform_1(%arg0: i32) -> (i32, i32) {
    %c0_i32 = arith.constant 0 : i32
    %c0_i32_0 = arith.constant 0 : i32
    %c0_i32_1 = arith.constant 0 : i32
    return %c0_i32, %c0_i32_0 : i32, i32
  }
  func.func @transform_2(%arg0: i32) -> (i32, i32) {
    %c0_i32 = arith.constant 0 : i32
    %c0_i32_0 = arith.constant 0 : i32
    %c0_i32_1 = arith.constant 0 : i32
    return %c0_i32, %c0_i32_0 : i32, i32
  }
  func.func @transform_3(%arg0: i32) -> (i32, i32) {
    %c0_i32 = arith.constant 0 : i32
    %c0_i32_0 = arith.constant 0 : i32
    %c0_i32_1 = arith.constant 0 : i32
    return %c0_i32, %c0_i32_0 : i32, i32
  }
  func.func @transform_4(%arg0: i32) -> (i32, i32) {
    %c0_i32 = arith.constant 0 : i32
    %c0_i32_0 = arith.constant 0 : i32
    %c0_i32_1 = arith.constant 0 : i32
    return %c0_i32, %c0_i32_0 : i32, i32
  }
  func.func @transform_5(%arg0: i32) -> (i32, i32) {
    %c0_i32 = arith.constant 0 : i32
    %c0_i32_0 = arith.constant 0 : i32
    %c0_i32_1 = arith.constant 0 : i32
    return %c0_i32, %c0_i32_0 : i32, i32
  }
  func.func @transform_6(%arg0: i32) -> (i32, i32) {
    %c0_i32 = arith.constant 0 : i32
    %c0_i32_0 = arith.constant 0 : i32
    %c0_i32_1 = arith.constant 0 : i32
    return %c0_i32, %c0_i32_0 : i32, i32
  }
  func.func @transform_7(%arg0: i32) -> (i32, i32) {
    %c0_i32 = arith.constant 0 : i32
    %c0_i32_0 = arith.constant 0 : i32
    %c0_i32_1 = arith.constant 0 : i32
    return %c0_i32, %c0_i32_0 : i32, i32
  }
  func.func @transform_8(%arg0: i32) -> (i32, i32) {
    %c0_i32 = arith.constant 0 : i32
    %c0_i32_0 = arith.constant 0 : i32
    %c0_i32_1 = arith.constant 0 : i32
    return %c0_i32, %c0_i32_0 : i32, i32
  }
  func.func @transform_9(%arg0: i32) -> (i32, i32, i32) {
    %c0_i32 = arith.constant 0 : i32
    %c0_i32_0 = arith.constant 0 : i32
    %c0_i32_1 = arith.constant 0 : i32
    %c0_i32_2 = arith.constant 0 : i32
    return %c0_i32, %c0_i32_0, %c0_i32_1 : i32, i32, i32
  }
  func.func @transform_10(%arg0: i32) -> (i32, i32, i32) {
    %c0_i32 = arith.constant 0 : i32
    %c0_i32_0 = arith.constant 0 : i32
    %c0_i32_1 = arith.constant 0 : i32
    %c0_i32_2 = arith.constant 0 : i32
    return %c0_i32, %c0_i32_0, %c0_i32_1 : i32, i32, i32
  }
  func.func @transform_11(%arg0: i32) -> (i32, i32, i32) {
    %c0_i32 = arith.constant 0 : i32
    %c0_i32_0 = arith.constant 0 : i32
    %c0_i32_1 = arith.constant 0 : i32
    %c0_i32_2 = arith.constant 0 : i32
    return %c0_i32, %c0_i32_0, %c0_i32_1 : i32, i32, i32
  }
  func.func @transform_12(%arg0: i32) -> (i32, i32, i32) {
    %c0_i32 = arith.constant 0 : i32
    %c0_i32_0 = arith.constant 0 : i32
    %c0_i32_1 = arith.constant 0 : i32
    %c0_i32_2 = arith.constant 0 : i32
    return %c0_i32, %c0_i32_0, %c0_i32_1 : i32, i32, i32
  }
  func.func @transform_13(%arg0: i32) -> (i32, i32, i32) {
    %c0_i32 = arith.constant 0 : i32
    %c0_i32_0 = arith.constant 0 : i32
    %c0_i32_1 = arith.constant 0 : i32
    %c0_i32_2 = arith.constant 0 : i32
    return %c0_i32, %c0_i32_0, %c0_i32_1 : i32, i32, i32
  }
  func.func @transform_14(%arg0: i32) -> (i32, i32, i32) {
    %c0_i32 = arith.constant 0 : i32
    %c0_i32_0 = arith.constant 0 : i32
    %c0_i32_1 = arith.constant 0 : i32
    %c0_i32_2 = arith.constant 0 : i32
    return %c0_i32, %c0_i32_0, %c0_i32_1 : i32, i32, i32
  }
  func.func @transform_15(%arg0: i32) -> (i32, i32, i32) {
    %c0_i32 = arith.constant 0 : i32
    %c0_i32_0 = arith.constant 0 : i32
    %c0_i32_1 = arith.constant 0 : i32
    %c0_i32_2 = arith.constant 0 : i32
    return %c0_i32, %c0_i32_0, %c0_i32_1 : i32, i32, i32
  }
  func.func @transform_16(%arg0: i32) -> (i32, i32, i32) {
    %c0_i32 = arith.constant 0 : i32
    %c0_i32_0 = arith.constant 0 : i32
    %c0_i32_1 = arith.constant 0 : i32
    %c0_i32_2 = arith.constant 0 : i32
    return %c0_i32, %c0_i32_0, %c0_i32_1 : i32, i32, i32
  }
  func.func @transform_17(%arg0: i32) -> (i32, i32, i32) {
    %c0_i32 = arith.constant 0 : i32
    %c0_i32_0 = arith.constant 0 : i32
    %c0_i32_1 = arith.constant 0 : i32
    %c0_i32_2 = arith.constant 0 : i32
    return %c0_i32, %c0_i32_0, %c0_i32_1 : i32, i32, i32
  }
  func.func @transform_18(%arg0: i32) -> (i32, i32, i32) {
    %c0_i32 = arith.constant 0 : i32
    %c0_i32_0 = arith.constant 0 : i32
    %c0_i32_1 = arith.constant 0 : i32
    %c0_i32_2 = arith.constant 0 : i32
    return %c0_i32, %c0_i32_0, %c0_i32_1 : i32, i32, i32
  }
  func.func @transform_19(%arg0: i32) -> (i32, i32, i32) {
    %c0_i32 = arith.constant 0 : i32
    %c0_i32_0 = arith.constant 0 : i32
    %c0_i32_1 = arith.constant 0 : i32
    %c0_i32_2 = arith.constant 0 : i32
    return %c0_i32, %c0_i32_0, %c0_i32_1 : i32, i32, i32
  }
  func.func @transform_20(%arg0: i32) -> (i32, i32, i32) {
    %c0_i32 = arith.constant 0 : i32
    %c0_i32_0 = arith.constant 0 : i32
    %c0_i32_1 = arith.constant 0 : i32
    %c0_i32_2 = arith.constant 0 : i32
    return %c0_i32, %c0_i32_0, %c0_i32_1 : i32, i32, i32
  }
  func.func @transform_21(%arg0: i32) -> (i32, i32) {
    %c0_i32 = arith.constant 0 : i32
    %c0_i32_0 = arith.constant 0 : i32
    %c0_i32_1 = arith.constant 0 : i32
    return %c0_i32, %c0_i32_0 : i32, i32
  }
  func.func @transform_22(%arg0: i32) -> (i32, i32) {
    %c0_i32 = arith.constant 0 : i32
    %c0_i32_0 = arith.constant 0 : i32
    %c0_i32_1 = arith.constant 0 : i32
    return %c0_i32, %c0_i32_0 : i32, i32
  }
  func.func @transform_23(%arg0: i32) -> (i32, i32, i32) {
    %c0_i32 = arith.constant 0 : i32
    %c0_i32_0 = arith.constant 0 : i32
    %c0_i32_1 = arith.constant 0 : i32
    %c0_i32_2 = arith.constant 0 : i32
    return %c0_i32, %c0_i32_0, %c0_i32_1 : i32, i32, i32
  }
  func.func @transform_24(%arg0: i32) -> (i32, i32, i32) {
    %c0_i32 = arith.constant 0 : i32
    %c0_i32_0 = arith.constant 0 : i32
    %c0_i32_1 = arith.constant 0 : i32
    %c0_i32_2 = arith.constant 0 : i32
    return %c0_i32, %c0_i32_0, %c0_i32_1 : i32, i32, i32
  }
  func.func @transform_25(%arg0: i32) -> (i32, i32, i32) {
    %c0_i32 = arith.constant 0 : i32
    %c0_i32_0 = arith.constant 0 : i32
    %c0_i32_1 = arith.constant 0 : i32
    %c0_i32_2 = arith.constant 0 : i32
    return %c0_i32, %c0_i32_0, %c0_i32_1 : i32, i32, i32
  }
  func.func @transform_26(%arg0: i32) -> (i32, i32, i32) {
    %c0_i32 = arith.constant 0 : i32
    %c0_i32_0 = arith.constant 0 : i32
    %c0_i32_1 = arith.constant 0 : i32
    return %arg0, %c0_i32, %c0_i32_0 : i32, i32, i32
  }
  func.func @transform_27(%arg0: i32) -> (i32, i32, i32) {
    %c0_i32 = arith.constant 0 : i32
    %c0_i32_0 = arith.constant 0 : i32
    %c0_i32_1 = arith.constant 0 : i32
    return %arg0, %c0_i32, %c0_i32_0 : i32, i32, i32
  }
  func.func @transform_28(%arg0: i32) -> (i32, i32, i32) {
    %c0_i32 = arith.constant 0 : i32
    %c0_i32_0 = arith.constant 0 : i32
    %c0_i32_1 = arith.constant 0 : i32
    return %arg0, %c0_i32, %c0_i32_0 : i32, i32, i32
  }
}

</mosaic_0001>

<bundles_post_ra>
// kernel: latent_graph_forward.1
= control target key start
LH: loop header
LB: loop body
LE: loop exit
PB: predicated region body
PF: predicated region fallthrough
CT: control target
= control target key end

     0   :  { %s6834_s0 = inlined_call_operand.vmem [shape: f32[2,8,16], index: 0, kind: input, shape index: {}]   ;;  %s6835_s1 = inlined_call_operand.vmem [shape: f32[4,8], index: 1, kind: input, shape index: {}]   ;;  %s6836_s2 = inlined_call_operand.vmem [shape: f32[4,16], index: 2, kind: input, shape index: {}]   ;;  %s6837_s3 = inlined_call_operand.vmem [shape: f32[8,8], index: 3, kind: input, shape index: {}]   ;;  %s6838_s4 = inlined_call_operand.vmem [shape: f32[8,16], index: 4, kind: input, shape index: {}]   ;;  %s6839_s5 = inlined_call_operand.vmem [shape: f32[4,8], index: 5, kind: input, shape index: {}]   ;;  %s6840_s6 = inlined_call_operand.vmem [shape: f32[4,16], index: 6, kind: input, shape index: {}]   ;;  %s6841_s7 = inlined_call_operand.vmem [shape: bf16[16,32], index: 7, kind: input, shape index: {}]   ;;  %s6842_s8 = inlined_call_operand.vmem [shape: f32[1,32], index: 8, kind: input, shape index: {}]   ;;  %s6843_s9 = inlined_call_operand.vmem [shape: f32[3,4,32], index: 9, kind: input, shape index: {}]   ;;  %s6844_s10 = inlined_call_operand.vmem [shape: f32[3,2,32], index: 10, kind: input, shape index: {}]   ;;  %s6845_s11 = inlined_call_operand.vmem [shape: bf16[3,32,16], index: 11, kind: input, shape index: {}]   ;;  %s6846_s12 = inlined_call_operand.vmem [shape: f32[3,1,16], index: 12, kind: input, shape index: {}]   ;;  %s6847_s13 = inlined_call_operand.vmem [shape: f32[3,1,32], index: 13, kind: input, shape index: {}]   ;;  %s6848_s14 = inlined_call_operand.vmem [shape: bf16[3,16,32], index: 14, kind: input, shape index: {}]   ;;  %s6849_s15 = inlined_call_operand.vmem [shape: f32[3,1,32], index: 15, kind: input, shape index: {}]   ;;  %s6850_s16 = inlined_call_operand.vmem [shape: bf16[3,32,128], index: 16, kind: input, shape index: {}]   ;;  %s6851_s17 = inlined_call_operand.vmem [shape: f32[3,1,128], index: 17, kind: input, shape index: {}]   ;;  %s6852_s18 = inlined_call_operand.vmem [shape: bf16[3,128,32], index: 18, kind: input, shape index: {}]   ;;  %s6853_s19 = inlined_call_operand.vmem [shape: f32[3,1,32], index: 19, kind: input, shape index: {}]   ;;  %s6854_s20 = inlined_call_operand.vmem [shape: bf16[3,16,208], index: 20, kind: input, shape index: {}]   ;;  %s6855_s21 = inlined_call_operand.vmem [shape: f32[2,16], index: 21, kind: input, shape index: {}]   ;;  %s6856_s22 = inlined_call_operand.vmem [shape: bf16[16,32], index: 22, kind: input, shape index: {}]   ;;  %s6857_s23 = inlined_call_operand.vmem [shape: f32[2,2,32], index: 23, kind: input, shape index: {}]   ;;  %s6858_s24 = inlined_call_operand.vmem [shape: bf16[2,32,32], index: 24, kind: input, shape index: {}]   ;;  %s6859_s25 = inlined_call_operand.vmem [shape: bf16[2,16,32], index: 25, kind: input, shape index: {}]   ;;  %s6860_s26 = inlined_call_operand.hbm [shape: f32[2,4,32], index: 26, kind: output, shape index: {0}]   ;;  %s6861_s27 = inlined_call_operand.hbm [shape: f32[2,8,32], index: 27, kind: output, shape index: {1}]   ;;  %s6862_s28 = inlined_call_operand.hbm [shape: f32[2,4,32], index: 28, kind: output, shape index: {2}]  }
   0x1   :  { %6889 = sst [smem:[#allocation16_spill]] %s6834_s0 }
   0x2   :  { %6890 = sst [smem:[#allocation17_spill]] %s6835_s1 }
   0x3   :  { %6891 = sst [smem:[#allocation18_spill]] %s6836_s2 }
   0x4   :  { %6892 = sst [smem:[#allocation19_spill]] %s6837_s3 }
   0x5   :  { %6893 = sst [smem:[#allocation20_spill]] %s6838_s4 }
   0x6   :  { %6894 = sst [smem:[#allocation21_spill]] %s6839_s5 }
   0x7   :  { %6895 = sst [smem:[#allocation22_spill]] %s6840_s6 }
   0x8   :  { %6896 = sst [smem:[#allocation23_spill]] %s6841_s7 }
   0x9   :  { %6897 = sst [smem:[#allocation24_spill]] %s6842_s8 }
   0xa   :  { %6898 = sst [smem:[#allocation25_spill]] %s6843_s9 }
   0xb   :  { %6899 = sst [smem:[#allocation26_spill]] %s6844_s10 }
   0xc   :  { %6900 = sst [smem:[#allocation27_spill]] %s6845_s11 }
   0xd   :  { %6901 = sst [smem:[#allocation28_spill]] %s6846_s12 }
   0xe   :  { %6902 = sst [smem:[#allocation29_spill]] %s6855_s21 }
   0xf   :  { %6903 = sst [smem:[#allocation30_spill]] %s6856_s22 }
  0x10   :  { %6904 = sst [smem:[#allocation31_spill]] %s6862_s28 }
  0x11   :  { %34 = vsyncpa [#allocation3], 0 }
  0x12   :  { %36 = vsyncpa [#allocation3 + $0x1], 0 }
  0x13   :  { %37 = vsyncpa [#allocation5], 0 }
  0x14   :  { %39 = vsyncpa [#allocation5 + $0x1], 0  ;;  %s5761_s8 = smov 0   ;;  %s5763_s5 = smov 0  }
  0x15   :  { %s5765_s9 = smov 0   ;;  %s5767_s30 = smov 0  }
  0x16 LB: > { %6905 = sst [smem:[#allocation9_spill]] %s5594_s8  ;;  %s5782_s3 = sadd.s32 4294967295, %s5606_s30   ;;  %s5606_s30 = sphi %s5767_s30, %s6939_s30   ;;  %s5602_s9 = sphi %s5765_s9, %s6942_s9   ;;  %s5598_s5 = sphi %s5763_s5, %s6941_s5   ;;  %s5594_s8 = sphi %s5761_s8, %s6940_s8  }
  0x17   : > { %6906 = sst [smem:[#allocation10_spill]] %s5598_s5  ;;  %s6869_s6 = sadd.s32 4294967294, %s5606_s30  }
  0x18   : > { %6907 = sst [smem:[#allocation11_spill]] %s5602_s9  ;;  %s5786_s10 = sadd.s32 1, %s5606_s30  }
  0x19   : > { %6908 = sst [smem:[#allocation12_spill]] %s5606_s30  ;;  %s603_s0 = sadd.s32 1, %s5602_s9 }
  0x1a   : > { %6909 = sst [smem:[#allocation13_spill]] %s5786_s10  ;;  %s600_s11 = ssub.s32 %s5606_s30, %s5786_s10 }
  0x1b   : > { %p613_p0 = scmp.ne.s32.totalorder %s5602_s9, %s5598_s5  ;;  %p601_p1 = scmp.eq.s32.totalorder %s600_s11, 0 }
  0x1c   : > { %p614_p2 = scmp.eq.s32.totalorder %s5782_s3, 1  ;;  %p619_p3 = scmp.ne.s32.totalorder %s5598_s5, %s5594_s8 }
  0x1d   : > { %p620_p4 = scmp.eq.s32.totalorder %s6869_s6, 1  ;;  %p4580_p7 = scmp.ge.s32.totalorder %s5606_s30, 1 }
  0x1e   : > { %s5799_s29 = scalar_select %p601_p1, %s5602_s9, %s603_s0  }
  0x1f   : > { %p5801_p5 = por %p614_p2, %p613_p0  ;;  %p5805_p6 = por %p620_p4, %p619_p3 }
  0x20   : > { %6910 = sst [smem:[#allocation14_spill]] %s5799_s29  ;;  %p772_p8 = scmp.lt.s32.totalorder %s5606_s30, 3 }
  0x21   : > { %s6912_s7 = scalar_select %p5805_p6, 1, 0 }
  0x22   : > { %p773_p9 = pnand %p4580_p7, %p772_p8 }
  0x23   : > { %6913 = sst [smem:[#allocation15_spill]] %s6912_s7  ;;  %s6914_s4 = sld [smem:[#allocation23_spill]] (!%p773_p9)  ;;  %v5608_v1 = vmov (!%p773_p9), 0.0   ;;  %vm5609_vm0 = vmmov (!%p773_p9), 0   ;;  %vm882_vm1 = vcmask (!%p773_p9), 130048   ;;  %vm1154_vm2 = vcmask (!%p773_p9), 257024  }
  0x24   : > { %776 = sbr.rel (%p773_p9) target bundleno = 9234 (0x2412), region = 124  ;;  %4924 = vmatprep.subr.bf16.mxu1 (!%p773_p9), %v5608_v1  ;;  %s6915_s6 = sld [smem:[#allocation18_spill]] (!%p773_p9)  ;;  %4936 = vmatprep.subr.bf16.mxu0 (!%p773_p9), %v5608_v1  ;;  %v5378_v23 = vld [vmem:[%s6854_s20 + $0x4] ss:$8 sps:$4 sm:$0xff] (!%p773_p9)   ;;  %v5376_v24 = vld [vmem:[%s6854_s20] ss:$8 sps:$4 sm:$0xff] (!%p773_p9)   ;;  %v1030_v28 = vlaneseq (!%p773_p9) }
  0x25   : > { %p855_p10 = scmp.lt.s32.totalorder (!%p773_p9), %s5782_s3, 1  ;;  %4926 = vmatprep.mubr.msk.bf16.mxu1 (!%p773_p9), %vm5609_vm0, %v5608_v1  ;;  %4938 = vmatprep.mubr.msk.bf16.mxu0 (!%p773_p9), %vm5609_vm0, %v5608_v1  ;;  %s6916_s0 = sld [smem:[#allocation16_spill]] (!%p773_p9)  ;;  %v5610_v25 = vmov (!%p773_p9), 0   ;;  %vm1203_vm3 = vcmask (!%p773_p9), 261120   ;;  %vm1326_vm4 = vcmask (!%p773_p9), 60416   ;;  %vm1345_vm5 = vcmask (!%p773_p9), 1043456  }
  0x26   : > { %s6918_s22 = sld [smem:[#allocation30_spill]] (!%p773_p9)  ;;  %v5880_v30 = vshrl.u32 (!%p773_p9), %v1030_v28, 7  ;;  %s6921_s21 = sld [smem:[#allocation29_spill]] (!%p773_p9)  ;;  %vm1341_vm6 = vcmask (!%p773_p9), 64512   ;;  %vm1556_vm7 = vcmask (!%p773_p9), 654336   ;;  %vm2367_vm8 = vcmask (!%p773_p9), 31744  }
  0x27   : > { %s6919_s9 = sld [smem:[#allocation22_spill]] (!%p773_p9)  ;;  %s6922_s29 = sld [smem:[#allocation27_spill]] (!%p773_p9)  ;;  %vm2447_vm9 = vcmask (!%p773_p9), 1041408   ;;  %vm3976_vm10 = vcmask (!%p773_p9), 27648  }
  0x28   : > { %v5883_v31 = vsub.s32 (!%p773_p9), 0, %v5880_v30  ;;  %v5889_v33 = vsub.s32 (!%p773_p9), 1, %v5880_v30  ;;  %s6923_s1 = sld [smem:[#allocation25_spill]] (!%p773_p9)  ;;  %s6929_s7 = smov (!%p773_p9), 112  }
  0x29   : > { %v5374_v0 = vld [vmem:[%s6914_s4] sm:$0xff] (!%p773_p9)   ;;  %s6927_s8 = sld [smem:[#allocation17_spill]] (!%p773_p9)  ;;  %s6931_s30 = sld [smem:[#allocation21_spill]] (!%p773_p9) }
  0x2a   : > { %v863_v2 = vld [vmem:[%s6915_s6] sm:$0xf] (!%p773_p9)  ;;  %4925 = vmatpush3.bf16.msra.mxu1 (!%p773_p9), %v5374_v0  ;;  %4937 = vmatpush3.bf16.msra.mxu0 (!%p773_p9), %v5374_v0 }
  0x2b   : > { %v5822_v3 = vpack.c.bf16 %v863_v2, %v863_v2  ;;  %s856_s12 = scalar_select %p855_p10, %s5782_s3, 1  ;;  %4930 = vmatprep.subr.bf16.mxu1 %v5608_v1  ;;  %1111 = vmatprep.subr.bf16.mxu0 %v5378_v23 }
  0x2c   : > { %v5375_v13 = vld [vmem:[%s6918_s22] sm:$0xff]  }
  0x2d   : > { %4927 = vmatmul.mubr.msk.bf16.vlgmr.msra.gmra.mrb[0].mxu1 %vm882_vm1, %v5822_v3  ;;  %s4584_s6 = sshll.u32 %s856_s12, 3  ;;  %v865_v14 = vld [vmem:[%s6919_s9] sm:$0xf]  ;;  %v5380_v50 = vld [vmem:[%s6922_s29 + $0x8] sm:$0xff]   ;;  %s6924_s9 = sld [smem:[#allocation28_spill]] }
  0x2e   : > { %s858_s11 = scalar_lea.vmem %s6916_s0, %s4584_s6  ;;  %4931 = vmatpush3.bf16.msra.mxu1 %v5374_v0  ;;  %4932 = vmatprep.mubr.msk.bf16.mxu1 %vm5609_vm0, %v5608_v1  ;;  %s6917_s6 = sld [smem:[#allocation20_spill]]  ;;  %v5854_v15 = vpack.c.bf16 %v865_v14, %v865_v14  ;;  %v1014_v32 = vld [vmem:[%s6921_s21] sm:$0x3] }
  0x2f   : > { %v1015_v4 = vld [vmem:[%s858_s11] sm:$0xff]  ;;  %4942 = vmatprep.subr.bf16.mxu1 %v5608_v1  ;;  %v1033_v34 = vrot.slane %v1014_v32, %v5883_v31  ;;  %v1038_v37 = vrot.slane %v1014_v32, %v5889_v33  ;;  %s6871_s0 = smov 112   ;;  %s6926_s12 = sld [smem:[#allocation26_spill]] }
  0x30   : > { %v1016_v5 = vsel %vm882_vm1, %v1015_v4, 0.0  ;;  %4939 = vmatmul.mubr.msk.bf16.vlgmr.msra.gmra.mrb[0].mxu0 %vm882_vm1, %v5854_v15  ;;  %v5379_v46 = vld [vmem:[%s6922_s29] sm:$0xff]   ;;  %s6873_s21 = smov 80  }
  0x31   : > { %1017 = vadd.xlane.f32.xlu0 %v1016_v5  ;;  %1112 = vmatpush1.bf16.msra.mxu0 %v5376_v24  ;;  %v5911_v60 = vld [vmem:[%s6923_s1] sm:$0xf] }
  0x32   : > { %1143 = vmatprep.mubr.bf16.mxu0 %v5610_v25  ;;  %4956 = vmatprep.subr.bf16.mxu0 %v5608_v1  ;;  %v1172_v61 = vrot.slane %v5911_v60, %v5883_v31  ;;  %v1177_v0 = vrot.slane %v5911_v60, %v5889_v33  ;;  %v4590_v5 = vld [vmem:[%s6847_s13] ss:$0 sm:$0xff] }
  0x33   : > { %s6925_s4 = smov %s6924_s9 }
  0x34   : > { %v864_v11 = vld [vmem:[%s6917_s6] sm:$0xff]  ;;  %s6920_s6 = sld [smem:[#allocation24_spill]] }
  0x35   : > { %v5841_v12 = vpack.c.bf16 %v864_v11, %v864_v11 }
  0x37   : > { %4933 = vmatmul.mubr.msk.bf16.vlgmr.msra.gmra.mrb[4].mxu1 %vm882_vm1, %v5841_v12 }
  0x38   : > { %4944 = vmatprep.mubr.msk.bf16.mxu1 %vm5609_vm0, %v5608_v1  ;;  %4943 = vmatpush3.bf16.msra.mxu1 %v5375_v13 }
  0x39   : > { %4948 = vmatprep.subr.bf16.mxu1 %v5608_v1  ;;  %4595 = vmatmul.mubr.msk.bf16.vlgmr.msra.gmra.mrb[4].mxu0 %vm882_vm1, %v5822_v3 }
  0x3a   : > { %v5861_v16 = vld [vmem:[%s6920_s6] ss:$0 sm:$0xff]  ;;  %4958 = vmatprep.mubr.msk.bf16.mxu0 %vm5609_vm0, %v5608_v1 }
  0xbe   : > { %v1018_v6 = vpop.xlane.xlu0 %1017 }
  0xbf   : > { %v1020_v7 = vmul.f32 0.0625, %v1018_v6 }
  0xc1   : > { %v1021_v8 = vsub.f32 %v1015_v4, %v1020_v7 }
  0xc3   : > { %v1022_v9 = vmul.f32 %v1021_v8, %v1021_v8 }
  0xc5   : > { %v1023_v10 = vsel %vm882_vm1, %v1022_v9, 0.0 }
  0xc6   : > { %1024 = vadd.xlane.f32.xlu1 %v1023_v10 }
 0x100   : > { %v920_v17 = vpop.f32.mrb[0].mxu1 }
 0x101   : > { %v5864_v18 = vadd.f32 %v5861_v16, %v920_v17  ;;  %v4928_v19 = vpop.f32.mrb[1].mxu1 }
 0x102   : > { %v923_v20 = vpop.f32.mrb[2].mxu1 }
 0x103   : > { %v4929_v21 = vpop.f32.mrb[3].mxu1  ;;  %v1155_v22 = vsel %vm1154_vm2, %v5864_v18, 0.0  ;;  %v5906_v52 = vpop.f32.mrb[0].mxu0 }
 0x104   : > { %1156 = vadd.xlane.f32.xlu0 %v1155_v22  ;;  %v4940_v53 = vpop.f32.mrb[1].mxu0 }
 0x105   : > { %v1011_v54 = vpop.f32.mrb[2].mxu0 }
 0x106   : > { %v4941_v55 = vpop.f32.mrb[3].mxu0 }
 0x10a   : > { %v964_v47 = vpop.f32.mrb[4].mxu1 }
 0x10b   : > { %v4934_v48 = vpop.f32.mrb[5].mxu1  ;;  %v5930_v20 = vadd.f32 %v5861_v16, %v964_v47 }
 0x10c   : > { %v967_v49 = vpop.f32.mrb[6].mxu1  ;;  %v1145_v56 = vpop.f32.mrb[4].mxu0 }
 0x10d   : > { %v4935_v51 = vpop.f32.mrb[7].mxu1  ;;  %v5923_v13 = vpop.f32.mrb[5].mxu0  ;;  %v5925_v19 = vadd.f32 1.0, %v1145_v56  ;;  %v2072_v21 = vsel %vm1203_vm3, %v5930_v20, 0.0 }
 0x10e   : > { %v1149_v14 = vpop.f32.mrb[6].mxu0  ;;  %v5381_v51 = vld [vmem:[%s6848_s14] sm:$0xff]  }
 0x10f   : > { %v1150_v17 = vpop.f32.mrb[7].mxu0 }
 0x153   : > { %v1025_v26 = vpop.xlane.xlu1 %1024 }
 0x154   : > { %v1026_v27 = vmul.f32 0.0625, %v1025_v26  ;;  %v4596_v26 = vld [vmem:[%s6924_s9] ss:$0 sm:$0xff]  ;;  %s6063_s9 = sand.u32 1, %s5598_s5  }
 0x155   : > { %s6879_s11 = sshll.u32 %s6063_s9, 2  ;;  %s4582_s28 = sshll.u32 %s6063_s9, 3 }
 0x156   : > { %v1027_v29 = vadd.f32 1e-05, %v1026_v27  ;;  %s6073_s10 = scalar_lea.vmem [#allocation2], %s6879_s11  ;;  %s6928_s11 = sld [smem:[#allocation19_spill]] }
 0x158   : > { %5430 = vrsqrt.f32 %v1027_v29 }
 0x162   : > { %v5431_v35 = vpop.eup %5430 }
 0x163   : > { %v1029_v36 = vmul.f32 %v5431_v35, %v1021_v8 }
 0x165   : > { %v1034_v38 = vmul.f32 %v1033_v34, %v1029_v36 }
 0x167   : > { %v1039_v39 = vadd.f32 %v1038_v37, %v1034_v38 }
 0x169   : > { %v1042_v40 = vpack.c.bf16 %v1039_v39, %v1039_v39 }
 0x16b   : > { %4945 = vmatmul.mubr.msk.bf16.vlgmr.msra.gmra.mrb[8].mxu1 %vm882_vm1, %v1042_v40 }
 0x16c   : > { %4952 = vmatprep.mubr.msk.bf16.mxu1 %vm5609_vm0, %v5608_v1  ;;  %4949 = vmatpush3.bf16.msra.mxu1 %v5379_v46 }
 0x16d   : > { %4950 = vmatprep.subr.bf16.mxu1 %v5608_v1 }
 0x170   : > { %4951 = vmatpush3.bf16.msra.mxu1 %v5380_v50 }
 0x171   : > { %4962 = vmatprep.subr.bf16.mxu1 %v5608_v1 }
 0x191   : > { %v1157_v41 = vpop.xlane.xlu0 %1156 }
 0x192   : > { %v1159_v42 = vmul.f32 0.03125, %v1157_v41 }
 0x194   : > { %v1160_v43 = vsub.f32 %v5864_v18, %v1159_v42 }
 0x196   : > { %v1161_v44 = vmul.f32 %v1160_v43, %v1160_v43 }
 0x198   : > { %v1162_v45 = vsel %vm1154_vm2, %v1161_v44, 0.0 }
 0x199   : > { %1163 = vadd.xlane.f32.xlu1 %v1162_v45 }
 0x226   : > { %v1164_v57 = vpop.xlane.xlu1 %1163 }
 0x227   : > { %v1165_v58 = vmul.f32 0.03125, %v1164_v57 }
 0x229   : > { %v1166_v59 = vadd.f32 1e-05, %v1165_v58 }
 0x22b   : > { %5432 = vrsqrt.f32 %v1166_v59 }
 0x235   : > { %v5433_v62 = vpop.eup %5432 }
 0x236   : > { %v1168_v63 = vmul.f32 %v5433_v62, %v1160_v43  ;;  %v5960_v62 = vld [vmem:[%s6926_s12] sm:$0x3] }
 0x238   : > { %v1173_v2 = vmul.f32 %v1172_v61, %v1168_v63  ;;  %v4602_v63 = vld [vmem:[%s6849_s15] ss:$0 sm:$0xff] }
 0x23a   : > { %v1178_v4 = vadd.f32 %v1177_v0, %v1173_v2 }
 0x23c   : > { %v1183_v6 = vpack.c.bf16 %v1178_v4, %v1178_v4  ;;  %v1458_v4 = vrot.slane %v5960_v62, %v5883_v31 }
 0x23e   : > { %v1093_v7 = vpop.f32.mrb[8].mxu1  ;;  %4953 = vmatmul.mubr.msk.bf16.vlgmr.msra.gmra.mrb[12].mxu1 %vm1203_vm3, %v1183_v6 }
 0x23f   : > { %v1094_v8 = vadd.f32 %v4590_v5, %v1093_v7  ;;  %v4946_v9 = vpop.f32.mrb[9].mxu1  ;;  %4964 = vmatprep.mubr.msk.bf16.mxu1 %vm5609_vm0, %v5608_v1 }
 0x240   : > { %v1096_v10 = vpop.f32.mrb[10].mxu1 }
 0x241   : > { %1250 = vxpose.xlu0.b32.start.end [1/1] (short) (narrow) %v1094_v8, 16  ;;  %v4947_v11 = vpop.f32.mrb[11].mxu1  ;;  %v1337_v42 = vpack.c.bf16 %v1094_v8, %v1094_v8 }
 0x26e   : > { %1451 = vrot.lane.b32.xlu0 %v5925_v19, %s6871_s0 }
 0x28d   : > { %2073 = vadd.xlane.f32.xlu0 %v2072_v21 }
 0x2c1   : > { %v1266_v22 = vpop.trf.xlu0 }
 0x2c5   : > { %v1267_v23 = vpop.trf.xlu0 }
 0x2c6   : > { %v1282_v24 = vpack.c.bf16 %v1267_v23, %v1266_v22 }
 0x2c8   : > { %4957 = vmatpush3.bf16.msra.mxu0 %v1282_v24 }
 0x2c9   : > { %4968 = vmatprep.subr.bf16.mxu0 %v5608_v1 }
 0x2e0   : > { %v1452_v6 = vpop.permute.xlu0 %1451 }
 0x311   : > { %v1241_v27 = vpop.f32.mrb[12].mxu1 }
 0x312   : > { %v1242_v28 = vadd.f32 %v4596_v26, %v1241_v27  ;;  %v4954_v29 = vpop.f32.mrb[13].mxu1  ;;  %v1148_v26 = vadd.f32 1.0, %v5923_v13  ;;  %v5383_v27 = vld [vmem:[%s6850_s16 + $0x8] sm:$0xff]   ;;  %v5986_v13 = vsub.s32 2, %v5880_v30 }
 0x313   : > { %v1244_v32 = vpop.f32.mrb[14].mxu1 }
 0x314   : > { %v1247_v16 = vmul.f32 %v1242_v28, %v5925_v19  ;;  %v4955_v34 = vpop.f32.mrb[15].mxu1 }
 0x316   : > { %v1248_v35 = vmul.f32 0.25, %v1247_v16  ;;  %v1477_v16 = vrot.slane %v5911_v60, %v5986_v13 }
 0x318   : > { %v1249_v36 = vpack.c.bf16 %v1248_v35, %v1248_v35 }
 0x31a   : > { %4959 = vmatmul.mubr.msk.bf16.vlgmr.msra.gmra.mrb[8].mxu0 %vm882_vm1, %v1249_v36 }
 0x31b   : > { %4970 = vmatprep.mubr.msk.bf16.mxu0 %vm5609_vm0, %v5608_v1  ;;  %4969 = vmatpush3.bf16.msra.mxu0 %v5381_v51 }
 0x31c   : > { %4982 = vmatprep.subr.bf16.mxu0 %v5608_v1 }
 0x3ed   : > { %v1320_v37 = vpop.f32.mrb[8].mxu0 }
 0x3ee   : > { %v4960_v38 = vpop.f32.mrb[9].mxu0  ;;  %v1327_v39 = vsel %vm1326_vm4, %v1320_v37, -inf }
 0x3ef   : > { %1328 = vmax.xlane.f32.xlu1 %v1327_v39  ;;  %v1323_v40 = vpop.f32.mrb[10].mxu0 }
 0x3f0   : > { %v4961_v41 = vpop.f32.mrb[11].mxu0  ;;  %v5385_v40 = vld [vmem:[%s6852_s18 + $0x8] sm:$0xff]  }
 0x3f1   : > { %v5387_v41 = vld [vmem:[%s6852_s18 + $0x18] sm:$0xff]  }
 0x400   : > { %1339 = vrot.lane.b32.xlu1 %v1337_v42, %s6871_s0  ;;  %v5388_v42 = vld [vmem:[%s6852_s18 + $0x20] sm:$0xff]   ;;  %s6930_s0 = smov 80  }
 0x47c   : > { %v1329_v43 = vpop.xlane.xlu1 %1328 }
 0x47d   : > { %v1330_v44 = vsub.f32 %v1320_v37, %v1329_v43  ;;  %v5389_v43 = vld [vmem:[%s6852_s18 + $0x28] sm:$0xff]  }
 0x47f   : > { %v1331_v45 = vmul.f32 1.442695, %v1330_v44  ;;  %v5390_v44 = vld [vmem:[%s6852_s18 + $0x30] sm:$0xff]  }
 0x480   : > { %v1340_v46 = vpop.permute.xlu1 %1339 }
 0x481   : > { %5434 = vpow2.f32 %v1331_v45  ;;  %v1347_v47 = vsel %vm1345_vm5, %v1340_v46, 0  ;;  %v5391_v45 = vld [vmem:[%s6852_s18 + $0x38] sm:$0xff]  }
 0x482   : > { %4963 = vmatpush3.bf16.msra.mxu1 %v1347_v47  ;;  %v4605_v47 = vld [vmem:[%s6851_s17] ss:$0 sm:$0xff] }
 0x483   : > { %4974 = vmatprep.subr.bf16.mxu1 %v5608_v1 }
 0x48b   : > { %v5435_v48 = vpop.eup %5434 }
 0x48c   : > { %v1333_v49 = vsel %vm1326_vm4, %v5435_v48, 0.0  ;;  %v1336_v50 = vpack.c.bf16 %v5435_v48, %v5435_v48 }
 0x48d   : > { %1334 = vadd.xlane.f32.xlu1 %v1333_v49 }
 0x48e   : > { %4965 = vmatmul.mubr.msk.bf16.vlgmr.msra.gmra.mrb[16].mxu1 %vm1341_vm6, %v1336_v50 }
 0x48f   : > { %4978 = vmatprep.mubr.msk.bf16.mxu1 %vm5609_vm0, %v5608_v1 }
 0x51a   : > { %v1335_v53 = vpop.xlane.xlu1 %1334 }
 0x51b   : > { %5436 = vrcp.f32 %v1335_v53 }
 0x525   : > { %v5437_v54 = vpop.eup %5436 }
 0x561   : > { %v1383_v55 = vpop.f32.mrb[16].mxu1 }
 0x562   : > { %v1390_v56 = vmul.f32 %v5437_v54, %v1383_v55  ;;  %v4966_v57 = vpop.f32.mrb[17].mxu1 }
 0x563   : > { %v1386_v58 = vpop.f32.mrb[18].mxu1 }
 0x564   : > { %v1393_v59 = vpack.c.bf16 %v1390_v56, %v1390_v56  ;;  %v4967_v61 = vpop.f32.mrb[19].mxu1 }
 0x566   : > { %4971 = vmatmul.mubr.msk.bf16.vlgmr.msra.gmra.mrb[12].mxu0 %vm882_vm1, %v1393_v59 }
 0x567   : > { %4998 = vmatprep.mubr.msk.bf16.mxu0 %vm5609_vm0, %v5608_v1 }
 0x639   : > { %v1444_v0 = vpop.f32.mrb[12].mxu0 }
 0x63a   : > { %v1445_v2 = vadd.f32 %v4602_v63, %v1444_v0  ;;  %v4972_v5 = vpop.f32.mrb[13].mxu0 }
 0x63b   : > { %v1447_v7 = vpop.f32.mrb[14].mxu0 }
 0x63c   : > { %v1454_v8 = vmul.f32 %v1452_v6, %v1445_v2  ;;  %v4973_v9 = vpop.f32.mrb[15].mxu0  ;;  %v5392_v7 = vld [vmem:[%s6854_s20 + $0x10] ss:$8 sps:$4 sm:$0xff]  }
 0x63d   : > { %v5395_v9 = vld [vmem:[%s6859_s25] sm:$0xff]  }
 0x63e   : > { %v1459_v10 = vmul.f32 %v1458_v4, %v1454_v8  ;;  %v5394_v8 = vld [vmem:[%s6854_s20 + $0x14] ss:$8 sps:$4 sm:$0xff]  }
 0x640   : > { %v5968_v11 = vadd.f32 %v1459_v10, %v5864_v18  ;;  %v5382_v18 = vld [vmem:[%s6850_s16] sm:$0xff]   ;;  %v2074_v10 = vpop.xlane.xlu0 %2073 }
 0x641   : > { %4975 = vmatpush3.bf16.msra.mxu1 %v5382_v18 }
 0x642   : > { %v1461_v14 = vsel %vm1154_vm2, %v5968_v11, 0.0  ;;  %4976 = vmatprep.subr.bf16.mxu1 %v5608_v1 }
 0x643   : > { %1462 = vadd.xlane.f32.xlu1 %v1461_v14  ;;  %v4609_v14 = vld [vmem:[%s6853_s19] ss:$0 sm:$0xff] }
 0x645   : > { %4977 = vmatpush3.bf16.msra.mxu1 %v5383_v27 }
 0x646   : > { %1702 = vmatprep.subr.bf16.mxu1 %v5394_v8 }
 0x6d0   : > { %v1463_v17 = vpop.xlane.xlu1 %1462 }
 0x6d1   : > { %v1464_v21 = vmul.f32 0.03125, %v1463_v17 }
 0x6d3   : > { %v1465_v22 = vsub.f32 %v5968_v11, %v1464_v21  ;;  %v2075_v21 = vmul.f32 0.03125, %v2074_v10 }
 0x6d5   : > { %v1466_v23 = vmul.f32 %v1465_v22, %v1465_v22 }
 0x6d7   : > { %v1467_v24 = vsel %vm1154_vm2, %v1466_v23, 0.0  ;;  %v1686_v23 = vrot.slane %v5960_v62, %v5889_v33 }
 0x6d8   : > { %1468 = vadd.xlane.f32.xlu1 %v1467_v24 }
 0x6e9   : > { %1552 = vrot.lane.b32.xlu1 %v5925_v19, %s6873_s21  ;;  %v5989_v19 = vsub.s32 3, %v5880_v30  ;;  %v5384_v30 = vld [vmem:[%s6852_s18] sm:$0xff]  }
 0x6ea   : > { %4983 = vmatpush3.bf16.msra.mxu0 %v5384_v30 }
 0x6eb   : > { %v1482_v36 = vrot.slane %v5911_v60, %v5989_v19  ;;  %4984 = vmatprep.subr.bf16.mxu0 %v5608_v1  ;;  %v5386_v60 = vld [vmem:[%s6852_s18 + $0x10] sm:$0xff]  }
 0x6ed   : > { %1554 = vrot.lane.b32.xlu1 %v1148_v26, %s6873_s21  ;;  %s6564_s21 = scalar_lea.vmem [#allocation4], %s4582_s28  ;;  %s4412_s28 = sand.u32 1, %s5782_s3  }
 0x6ee   : > { %4985 = vmatpush3.bf16.msra.mxu0 %v5385_v40 }
 0x6ef   : > { %4986 = vmatprep.subr.bf16.mxu0 %v5608_v1 }
 0x6f2   : > { %4987 = vmatpush3.bf16.msra.mxu0 %v5386_v60 }
 0x6f3   : > { %4988 = vmatprep.subr.bf16.mxu0 %v5608_v1 }
 0x6f6   : > { %4989 = vmatpush3.bf16.msra.mxu0 %v5387_v41 }
 0x6f7   : > { %4990 = vmatprep.subr.bf16.mxu0 %v5608_v1 }
 0x6fa   : > { %4991 = vmatpush3.bf16.msra.mxu0 %v5388_v42 }
 0x6fb   : > { %4992 = vmatprep.subr.bf16.mxu0 %v5608_v1 }
 0x6fe   : > { %4993 = vmatpush3.bf16.msra.mxu0 %v5389_v43 }
 0x6ff   : > { %4994 = vmatprep.subr.bf16.mxu0 %v5608_v1 }
 0x702   : > { %4995 = vmatpush3.bf16.msra.mxu0 %v5390_v44  ;;  %v1979_v44 = vld [vmem:[%s6857_s23] sm:$0x3] }
 0x703   : > { %4996 = vmatprep.subr.bf16.mxu0 %v5608_v1 }
 0x706   : > { %4997 = vmatpush3.bf16.msra.mxu0 %v5391_v45  ;;  %v6120_v45 = vrot.slane %v1979_v44, %v5883_v31 }
 0x707   : > { %5024 = vmatprep.subr.bf16.mxu0 %v5608_v1 }
 0x765   : > { %v1469_v28 = vpop.xlane.xlu1 %1468 }
 0x766   : > { %v1470_v29 = vmul.f32 0.03125, %v1469_v28  ;;  %v2076_v28 = vsub.f32 %v5930_v20, %v2075_v21  ;;  %v6141_v21 = vld [vmem:[%s6923_s1 + $0x4] sm:$0xf] }
 0x768   : > { %v1471_v32 = vadd.f32 1e-05, %v1470_v29 }
 0x769   : > { %v1553_v46 = vpop.permute.xlu1 %1552 }
 0x76a   : > { %5438 = vrsqrt.f32 %v1471_v32 }
 0x76d   : > { %v1555_v48 = vpop.permute.xlu1 %1554 }
 0x76e   : > { %v1557_v53 = vsel %vm1556_vm7, %v1553_v46, %v1555_v48 }
 0x774   : > { %v5439_v34 = vpop.eup %5438 }
 0x775   : > { %v1473_v35 = vmul.f32 %v5439_v34, %v1465_v22  ;;  %v2077_v34 = vmul.f32 %v2076_v28, %v2076_v28 }
 0x777   : > { %v1478_v37 = vmul.f32 %v1477_v16, %v1473_v35  ;;  %v2078_v62 = vsel %vm1203_vm3, %v2077_v34, 0.0  ;;  %v6081_v35 = vld [vmem:[%s6927_s8] sm:$0xf] }
 0x779   : > { %v1483_v38 = vadd.f32 %v1482_v36, %v1478_v37  ;;  %v6097_v36 = vld [vmem:[%s6858_s24] sm:$0xff]   ;;  %v6105_v37 = vld [vmem:[%s6858_s24 + $0x8] sm:$0xff]  }
 0x77b   : > { %v1488_v39 = vpack.c.bf16 %v1483_v38, %v1483_v38 }
 0x77d   : > { %4979 = vmatmul.mubr.msk.bf16.vlgmr.msra.gmra.mrb[20].mxu1 %vm1203_vm3, %v1488_v39 }
 0x77e   : > { %1734 = vmatprep.mubr.bf16.mxu1 %v5610_v25  ;;  %1703 = vmatpush1.bf16.msra.mxu1 %v5392_v7 }
 0x77f   : > { %5002 = vmatprep.subr.bf16.mxu1 %v5608_v1 }
 0x785   : > { %4622 = vmatmul.mubr.msk.bf16.vlgmr.msra.gmra.mrb[24].mxu1 %vm882_vm1, %v5841_v12 }
 0x786   : > { %5003 = vmatpush3.bf16.msra.mxu1 %v5395_v9  ;;  %5004 = vmatprep.mubr.msk.bf16.mxu1 %vm5609_vm0, %v5608_v1 }
 0x787   : > { %5008 = vmatprep.subr.bf16.mxu1 %v5608_v1 }
 0x78d   : > { %5005 = vmatmul.mubr.msk.bf16.vlgmr.msra.gmra.mrb[28].mxu1 %vm882_vm1, %v5822_v3 }
 0x78e   : > { %5009 = vmatpush3.bf16.msra.mxu1 %v5395_v9  ;;  %5010 = vmatprep.mubr.msk.bf16.mxu1 %vm5609_vm0, %v5608_v1 }
 0x78f   : > { %5014 = vmatprep.subr.mxu1 %v5608_v1 }
 0x795   : > { %5011 = vmatmul.mubr.msk.bf16.vlgmr.msra.gmra.mrb[32].mxu1 %vm882_vm1, %v5841_v12 }
 0x796   : > { %5016 = vmatprep.mubr.msk.f32.mxu1 %vm5609_vm0, %v5608_v1 }
 0x797   : > { %5015 = vmatpush3.xpose.msk.msra.mxu1 %vm1341_vm6, %v6081_v35 }
 0x798   : > { %5019 = vmatprep.subr.mxu1 %v5608_v1 }
 0x850   : > { %v1545_v49 = vpop.f32.mrb[20].mxu1 }
 0x851   : > { %v1546_v50 = vadd.f32 %v4605_v47, %v1545_v49  ;;  %v4980_v51 = vpop.f32.mrb[21].mxu1 }
 0x852   : > { %v1548_v54 = vpop.f32.mrb[22].mxu1 }
 0x853   : > { %v1559_v55 = vmul.f32 %v1557_v53, %v1546_v50  ;;  %v4981_v56 = vpop.f32.mrb[23].mxu1 }
 0x855   : > { %v1560_v57 = vmul.f32 %v1559_v55, %v1559_v55 }
 0x857   : > { %v1561_v58 = vmul.f32 %v1560_v57, %v1559_v55 }
 0x858   : > { %v6130_v53 = vpop.f32.mrb[24].mxu1 }
 0x859   : > { %v1562_v59 = vmul.f32 0.044715, %v1561_v58  ;;  %v6132_v54 = vpop.f32.mrb[25].mxu1 }
 0x85b   : > { %v1563_v61 = vadd.f32 %v1562_v59, %v1559_v55 }
 0x85d   : > { %v1564_v63 = vmul.f32 0.7978846, %v1563_v61 }
 0x85f   : > { %5440 = vtanh.f32 %v1564_v63 }
 0x869   : > { %v5441_v0 = vpop.eup %5440 }
 0x86a   : > { %v1566_v2 = vadd.f32 1.0, %v5441_v0 }
 0x86c   : > { %v1567_v4 = vmul.f32 0.5, %v1566_v2 }
 0x86e   : > { %v1568_v5 = vmul.f32 %v1567_v4, %v1559_v55  ;;  %v1740_v55 = vpop.f32.mrb[26].mxu1 }
 0x86f   : > { %v1741_v56 = vpop.f32.mrb[27].mxu1 }
 0x870   : > { %v1585_v6 = vpack.c.bf16 %v1568_v5, %v1568_v5  ;;  %v1785_v57 = vpop.f32.mrb[28].mxu1 }
 0x871   : > { %v5006_v58 = vpop.f32.mrb[29].mxu1 }
 0x872   : > { %4999 = vmatmul.mubr.bf16.vlgmr.msra.gmra.mrb[16].mxu0 %v1585_v6  ;;  %v1788_v59 = vpop.f32.mrb[30].mxu1 }
 0x873   : > { %5028 = vmatprep.mubr.msk.bf16.mxu0 %vm5609_vm0, %v5608_v1  ;;  %5025 = vmatpush3.bf16.msra.mxu0 %v6097_v36  ;;  %v5007_v61 = vpop.f32.mrb[31].mxu1 }
 0x874   : > { %5026 = vmatprep.subr.bf16.mxu0 %v5608_v1  ;;  %v1825_v63 = vpop.f32.mrb[32].mxu1  ;;  %v6191_v61 = vld [vmem:[%s6925_s4 + $0x1] ss:$0 sm:$0xff] }
 0x875   : > { %v5012_v0 = vpop.f32.mrb[33].mxu1 }
 0x876   : > { %v1828_v2 = vpop.f32.mrb[34].mxu1 }
 0x877   : > { %5027 = vmatpush3.bf16.msra.mxu0 %v6105_v37  ;;  %v5013_v4 = vpop.f32.mrb[35].mxu1 }
 0x878   : > { %5040 = vmatprep.subr.bf16.mxu0 %v5608_v1 }
 0x945   : > { %v1675_v17 = vpop.f32.mrb[16].mxu0 }
 0x946   : > { %v1676_v22 = vadd.f32 %v4609_v14, %v1675_v17  ;;  %v5000_v24 = vpop.f32.mrb[17].mxu0 }
 0x947   : > { %v1678_v26 = vpop.f32.mrb[18].mxu0  ;;  %v6149_v24 = vrot.slane %v6141_v21, %v5883_v31 }
 0x948   : > { %v1682_v18 = vmul.f32 %v1676_v22, %v1555_v48  ;;  %v5001_v27 = vpop.f32.mrb[19].mxu0  ;;  %v6123_v48 = vrot.slane %v1979_v44, %v5889_v33 }
 0x94a   : > { %v1687_v29 = vmul.f32 %v1686_v23, %v1682_v18  ;;  %v6155_v18 = vld [vmem:[%s6922_s29 + $0x10] sm:$0xff]  }
 0x94c   : > { %v1688_v32 = vadd.f32 %v1687_v29, %v5968_v11  ;;  %v861_v11 = vld [vmem:[%s6928_s11] sm:$0xff]  ;;  %v6160_v29 = vrot.slane %v6141_v21, %v5889_v33 }
 0x94d   : > { %5017 = vmatmul.mubr.msk.f32.vlgmr.msra.gmra.mrb[36].mxu1 %vm1341_vm6, %v861_v11 }
 0x94e   : > { %v1980_v16 = vsel %vm1154_vm2, %v1688_v32, 0.0  ;;  %4404 = vst.msk [vmem:[%s6073_s10] sm:$0xf] %vm1154_vm2, %v1688_v32  ;;  %5020 = vmatpush3.xpose.msk.msra.mxu1 %vm1341_vm6, %v861_v11  ;;  %5021 = vmatprep.mubr.msk.f32.mxu1 %vm5609_vm0, %v5608_v1 }
 0x94f   : > { %1981 = vadd.xlane.f32.xlu1 %v1980_v16  ;;  %5032 = vmatprep.subr.bf16.mxu1 %v5608_v1 }
 0x951   : > { %5022 = vmatmul.mubr.msk.f32.vlgmr.msra.gmra.mrb[38].mxu1 %vm1341_vm6, %v861_v11 }
 0x952   : > { %5033 = vmatpush3.bf16.msra.mxu1 %v6097_v36  ;;  %5036 = vmatprep.mubr.msk.bf16.mxu1 %vm5609_vm0, %v5608_v1 }
 0x953   : > { %2079 = vadd.xlane.f32.xlu1 %v2078_v62  ;;  %5034 = vmatprep.subr.bf16.mxu1 %v5608_v1 }
 0x956   : > { %5035 = vmatpush3.bf16.msra.mxu1 %v6105_v37 }
 0x957   : > { %5048 = vmatprep.subr.bf16.mxu1 %v5608_v1 }
 0x9dc   : > { %v1982_v38 = vpop.xlane.xlu1 %1981 }
 0x9dd   : > { %v1983_v39 = vmul.f32 0.03125, %v1982_v38 }
 0x9df   : > { %v1984_v30 = vsub.f32 %v1688_v32, %v1983_v39  ;;  %v6167_v32 = vld [vmem:[%s6922_s29 + $0x18] sm:$0xff]  }
 0x9e0   : > { %v2080_v40 = vpop.xlane.xlu1 %2079 }
 0x9e1   : > { %v2081_v60 = vmul.f32 0.03125, %v2080_v40  ;;  %v1985_v41 = vmul.f32 %v1984_v30, %v1984_v30  ;;  %v6183_v40 = vadd.f32 1.0, %v1825_v63  ;;  %v6195_v63 = vadd.f32 1.0, %v6130_v53 }
 0x9e3   : > { %v2082_v42 = vadd.f32 1e-05, %v2081_v60  ;;  %v1986_v43 = vsel %vm1154_vm2, %v1985_v41, 0.0 }
 0x9e4   : > { %1987 = vadd.xlane.f32.xlu0 %v1986_v43 }
 0x9e5   : > { %5442 = vrsqrt.f32 %v2082_v42  ;;  %v1786_v42 = vadd.f32 1.0, %v1785_v57 }
 0x9ef   : > { %v5443_v46 = vpop.eup %5442 }
 0x9f0   : > { %v2084_v47 = vmul.f32 %v5443_v46, %v2076_v28 }
 0x9f2   : > { %v2085_v49 = vmul.f32 %v2084_v47, %v6120_v45  ;;  %v2140_v28 = vmul.f32 %v6149_v24, %v2084_v47 }
 0x9f4   : > { %v2086_v50 = vadd.f32 %v2085_v49, %v6123_v48  ;;  %v2145_v16 = vadd.f32 %v6160_v29, %v2140_v28 }
 0x9f6   : > { %v2087_v51 = vpack.c.bf16 %v2086_v50, %v2086_v50  ;;  %v2151_v34 = vpack.c.bf16 %v2145_v16, %v2145_v16 }
 0x9f8   : > { %5037 = vmatmul.mubr.msk.bf16.vlgmr.msra.gmra.mrb[40].mxu1 %vm1203_vm3, %v2087_v51 }
 0x9f9   : > { %5050 = vmatprep.mubr.msk.bf16.mxu1 %vm5609_vm0, %v5608_v1 }
 0xa20   : > { %v6134_v5 = vpop.f32.mrb[36].mxu1 }
 0xa21   : > { %v5018_v6 = vpop.f32.mrb[37].mxu1  ;;  %v6213_v16 = vmul.f32 0.35355338, %v6134_v5 }
 0xa24   : > { %v6136_v7 = vpop.f32.mrb[38].mxu1 }
 0xa25   : > { %v5023_v8 = vpop.f32.mrb[39].mxu1  ;;  %v6210_v53 = vmul.f32 0.35355338, %v6136_v7 }
 0xa71   : > { %v1988_v9 = vpop.xlane.xlu0 %1987 }
 0xa72   : > { %v1989_v10 = vmul.f32 0.03125, %v1988_v9 }
 0xa74   : > { %v1990_v14 = vadd.f32 1e-05, %v1989_v10 }
 0xa76   : > { %5444 = vrsqrt.f32 %v1990_v14 }
 0xa80   : > { %v5445_v17 = vpop.eup %5444 }
 0xa81   : > { %v6143_v22 = vmul.f32 %v5445_v17, %v1984_v30  ;;  %v6181_v30 = vld [vmem:[%s6847_s13 + $0x1] ss:$0 sm:$0xff] }
 0xa83   : > { %v1997_v23 = vmul.f32 %v6120_v45, %v6143_v22 }
 0xa85   : > { %v2002_v26 = vadd.f32 %v6123_v48, %v1997_v23 }
 0xa87   : > { %v2007_v27 = vpack.c.bf16 %v2002_v26, %v2002_v26 }
 0xa89   : > { %5029 = vmatmul.mubr.msk.bf16.vlgmr.msra.gmra.mrb[20].mxu0 %vm1203_vm3, %v2007_v27 }
 0xa8a   : > { %5041 = vmatpush3.bf16.msra.mxu0 %v6155_v18  ;;  %5044 = vmatprep.mubr.msk.bf16.mxu0 %vm5609_vm0, %v5608_v1 }
 0xa8b   : > { %5042 = vmatprep.subr.bf16.mxu0 %v5608_v1 }
 0xa8e   : > { %5043 = vmatpush3.bf16.msra.mxu0 %v6167_v32 }
 0xa8f   : > { %5054 = vmatprep.subr.bf16.mxu0 %v5608_v1 }
 0xa91   : > { %5045 = vmatmul.mubr.msk.bf16.vlgmr.msra.gmra.mrb[24].mxu0 %vm1203_vm3, %v2151_v34 }
 0xa92   : > { %5056 = vmatprep.mubr.msk.bf16.mxu0 %vm5609_vm0, %v5608_v1 }
 0xacb   : > { %v2125_v62 = vpop.f32.mrb[40].mxu1 }
 0xacc   : > { %v5038_v11 = vpop.f32.mrb[41].mxu1  ;;  %v2126_v60 = vadd.f32 %v6181_v30, %v2125_v62 }
 0xacd   : > { %v2128_v38 = vpop.f32.mrb[42].mxu1 }
 0xace   : > { %v5039_v39 = vpop.f32.mrb[43].mxu1  ;;  %v2131_v47 = vmul.f32 %v2126_v60, %v6183_v40 }
 0xb5c   : > { %v2065_v41 = vpop.f32.mrb[20].mxu0 }
 0xb5d   : > { %v2066_v43 = vadd.f32 %v6181_v30, %v2065_v41  ;;  %v5030_v44 = vpop.f32.mrb[21].mxu0 }
 0xb5e   : > { %v2068_v46 = vpop.f32.mrb[22].mxu0  ;;  %v2391_v44 = vpack.c.bf16 %v2131_v47, %v2131_v47 }
 0xb5f   : > { %v2071_v49 = vmul.f32 %v2066_v43, %v1786_v42  ;;  %v5031_v50 = vpop.f32.mrb[23].mxu0 }
 0xb61   : > { %v5350_v51 = vpack.i.bf16 %v2131_v47, %v2071_v49  ;;  %v2382_v5 = vpack.c.bf16 %v2071_v49, %v2071_v49 }
 0xb63   : > { %5351 = vxpose.xlu0.b32.start.end [1/1] (short) (narrow) %v5350_v51, 16 }
 0xb64   : > { %v2209_v55 = vpop.f32.mrb[24].mxu0 }
 0xb65   : > { %v5046_v56 = vpop.f32.mrb[25].mxu0  ;;  %v2210_v57 = vadd.f32 %v6191_v61, %v2209_v55 }
 0xb66   : > { %v2212_v58 = vpop.f32.mrb[26].mxu0 }
 0xb67   : > { %v5047_v59 = vpop.f32.mrb[27].mxu0  ;;  %v2215_v2 = vmul.f32 %v2210_v57, %v6195_v63 }
 0xb69   : > { %v2216_v14 = vmul.f32 0.25, %v2215_v2 }
 0xb6b   : > { %v2217_v26 = vpack.c.bf16 %v2216_v14, %v2216_v14  ;;  %v6241_v14 = vld [vmem:[%s6848_s14 + $0x8] sm:$0xff]  }
 0xbe3   : > { %v5352_v0 = vpop.trf.xlu0 }
 0xbe4   : > { %v5356_v4 = vunpack.i.h.bf16 %v5352_v0  ;;  %v5353_v6 = vunpack.i.l.bf16 %v5352_v0 }
 0xbe7   : > { %v5357_v8 = vpop.trf.xlu0 }
 0xbe8   : > { %v5361_v9 = vunpack.i.h.bf16 %v5357_v8  ;;  %v5358_v10 = vunpack.i.l.bf16 %v5357_v8 }
 0xbea   : > { %v6198_v17 = vpack.c.bf16 %v5358_v10, %v5353_v6  ;;  %v2326_v23 = vpack.c.bf16 %v5361_v9, %v5356_v4 }
 0xbec   : > { %5049 = vmatpush3.bf16.msra.mxu1 %v6198_v17  ;;  %5055 = vmatpush3.bf16.msra.mxu0 %v2326_v23 }
 0xbed   : > { %5060 = vmatprep.subr.bf16.mxu1 %v5608_v1  ;;  %5072 = vmatprep.subr.bf16.mxu0 %v5608_v1 }
 0xbef   : > { %5051 = vmatmul.mubr.msk.bf16.vlgmr.msra.gmra.mrb[44].mxu1 %vm882_vm1, %v2217_v26  ;;  %5057 = vmatmul.mubr.msk.bf16.vlgmr.msra.gmra.mrb[28].mxu0 %vm882_vm1, %v2217_v26 }
 0xbf0   : > { %5062 = vmatprep.mubr.msk.bf16.mxu1 %vm5609_vm0, %v5608_v1  ;;  %5074 = vmatprep.mubr.msk.bf16.mxu0 %vm5609_vm0, %v5608_v1 }
 0xbf1   : > { %5073 = vmatpush3.bf16.msra.mxu0 %v6241_v14 }
 0xbf2   : > { %5078 = vmatprep.subr.bf16.mxu0 %v5608_v1 }
 0xcc2   : > { %v2288_v27 = vpop.f32.mrb[44].mxu1  ;;  %v2361_v28 = vpop.f32.mrb[28].mxu0 }
 0xcc3   : > { %v2362_v34 = vadd.f32 %v2361_v28, %v6210_v53  ;;  %v5052_v62 = vpop.f32.mrb[45].mxu1  ;;  %v5058_v11 = vpop.f32.mrb[29].mxu0  ;;  %v2289_v60 = vadd.f32 %v2288_v27, %v6213_v16 }
 0xcc4   : > { %v2291_v38 = vpop.f32.mrb[46].mxu1  ;;  %v2364_v39 = vpop.f32.mrb[30].mxu0 }
 0xcc5   : > { %v5053_v41 = vpop.f32.mrb[47].mxu1  ;;  %v5059_v42 = vpop.f32.mrb[31].mxu0  ;;  %v2371_v43 = vsel %vm1341_vm6, %v2362_v34, -inf  ;;  %v2368_v7 = vsel %vm2367_vm8, %v2289_v60, -inf }
 0xcc6   : > { %2372 = vmax.xlane.f32.xlu1 %v2371_v43  ;;  %v6251_v41 = vld [vmem:[%s6926_s12 + $0x2] sm:$0x3]  ;;  %v6256_v42 = vld [vmem:[%s6849_s15 + $0x1] ss:$0 sm:$0xff] }
 0xcca   : > { %2369 = vmax.xlane.f32.xlu1 %v2368_v7 }
 0xcdb   : > { %2393 = vrot.lane.b32.xlu1 %v2391_v44, %s6929_s7  ;;  %v6261_v44 = vrot.slane %v6251_v41, %v5883_v31 }
 0xcdf   : > { %2442 = vrot.lane.b32.xlu1 %v2382_v5, %s6929_s7 }
 0xd53   : > { %v2373_v46 = vpop.xlane.xlu1 %2372 }
 0xd57   : > { %v2370_v50 = vpop.xlane.xlu1 %2369 }
 0xd58   : > { %v2374_v51 = vmax.f32 %v2370_v50, %v2373_v46 }
 0xd5a   : > { %v2375_v55 = vsub.f32 %v2289_v60, %v2374_v51  ;;  %v2383_v56 = vsub.f32 %v2362_v34, %v2374_v51 }
 0xd5b   : > { %v2394_v58 = vpop.permute.xlu1 %2393 }
 0xd5c   : > { %v2376_v59 = vmul.f32 1.442695, %v2375_v55  ;;  %v2384_v57 = vmul.f32 1.442695, %v2383_v56  ;;  %v2399_v0 = vsel %vm1345_vm5, %v2394_v58, 0 }
 0xd5d   : > { %5061 = vmatpush3.bf16.msra.mxu1 %v2399_v0 }
 0xd5e   : > { %5446 = vpow2.f32 %v2376_v59  ;;  %5066 = vmatprep.subr.bf16.mxu1 %v5608_v1 }
 0xd5f   : > { %5448 = vpow2.f32 %v2384_v57  ;;  %v2443_v49 = vpop.permute.xlu1 %2442  ;;  %v1739_v57 = vadd.f32 1.0, %v6132_v54  ;;  %v6287_v54 = vld [vmem:[%s6850_s16 + $0x18] sm:$0xff]  }
 0xd60   : > { %v6226_v9 = vsel %vm2447_vm9, %v2443_v49, 0 }
 0xd68   : > { %v5447_v47 = vpop.eup %5446 }
 0xd69   : > { %v5449_v2 = vpop.eup %5448  ;;  %v2378_v4 = vsel %vm2367_vm8, %v5447_v47, 0.0  ;;  %v2381_v10 = vpack.c.bf16 %v5447_v47, %v5447_v47 }
 0xd6a   : > { %v2386_v6 = vsel %vm1341_vm6, %v5449_v2, 0.0  ;;  %2379 = vadd.xlane.f32.xlu1 %v2378_v4  ;;  %v2390_v8 = vpack.c.bf16 %v5449_v2, %v5449_v2 }
 0xd6b   : > { %2387 = vadd.xlane.f32.xlu0 %v2386_v6 }
 0xd6c   : > { %5063 = vmatmul.mubr.msk.bf16.vlgmr.msra.gmra.mrb[48].mxu1 %vm1341_vm6, %v2390_v8 }
 0xd6d   : > { %5067 = vmatpush3.bf16.msra.mxu1 %v6226_v9  ;;  %5068 = vmatprep.mubr.msk.bf16.mxu1 %vm5609_vm0, %v5608_v1 }
 0xd6e   : > { %5086 = vmatprep.subr.bf16.mxu1 %v5608_v1 }
 0xd78   : > { %5069 = vmatmul.mubr.msk.bf16.vlgmr.msra.gmra.mrb[48].mxu1 %vm2367_vm8, %v2381_v10 }
 0xd79   : > { %5102 = vmatprep.mubr.msk.bf16.mxu1 %vm5609_vm0, %v5608_v1 }
 0xd7b   : > { %2555 = vrot.lane.b32.xlu1 %v6195_v63, %s6929_s7 }
 0xdf7   : > { %v2380_v26 = vpop.xlane.xlu1 %2379 }
 0xdf8   : > { %v2388_v23 = vpop.xlane.xlu0 %2387 }
 0xdf9   : > { %v2389_v27 = vadd.f32 %v2388_v23, %v2380_v26  ;;  %v6294_v23 = vrot.slane %v6141_v21, %v5986_v13 }
 0xdfb   : > { %5450 = vrcp.f32 %v2389_v27  ;;  %v6263_v46 = vpop.permute.xlu1 %2555 }
 0xe05   : > { %v5451_v28 = vpop.eup %5450 }
 0xe4b   : > { %v2485_v34 = vpop.f32.mrb[48].mxu1 }
 0xe4c   : > { %v2492_v62 = vmul.f32 %v5451_v28, %v2485_v34  ;;  %v5070_v11 = vpop.f32.mrb[49].mxu1  ;;  %v6298_v28 = vrot.slane %v6141_v21, %v5989_v19  ;;  %v6312_v21 = vld [vmem:[%s6852_s18 + $0x40] sm:$0xff]  }
 0xe4d   : > { %v2488_v38 = vpop.f32.mrb[50].mxu1  ;;  %5087 = vmatpush3.bf16.msra.mxu1 %v6312_v21 }
 0xe4e   : > { %v2496_v39 = vpack.c.bf16 %v2492_v62, %v2492_v62  ;;  %v5071_v60 = vpop.f32.mrb[51].mxu1  ;;  %5088 = vmatprep.subr.bf16.mxu1 %v5608_v1  ;;  %v6333_v38 = vld [vmem:[%s6852_s18 + $0x58] sm:$0xff]  }
 0xe4f   : > { %v6346_v60 = vld [vmem:[%s6852_s18 + $0x68] sm:$0xff]  }
 0xe50   : > { %5075 = vmatmul.mubr.msk.bf16.vlgmr.msra.gmra.mrb[32].mxu0 %vm882_vm1, %v2496_v39  ;;  %v6339_v39 = vld [vmem:[%s6852_s18 + $0x60] sm:$0xff]  }
 0xe51   : > { %5082 = vmatprep.mubr.msk.bf16.mxu0 %vm5609_vm0, %v5608_v1 }
 0xf23   : > { %v2548_v43 = vpop.f32.mrb[32].mxu0 }
 0xf24   : > { %v2549_v7 = vadd.f32 %v6256_v42, %v2548_v43  ;;  %v5076_v5 = vpop.f32.mrb[33].mxu0  ;;  %v6353_v43 = vld [vmem:[%s6852_s18 + $0x70] sm:$0xff]  }
 0xf25   : > { %v2551_v50 = vpop.f32.mrb[34].mxu0  ;;  %v6368_v5 = vld [vmem:[%s6851_s17 + $0x1] ss:$0 sm:$0xff] }
 0xf26   : > { %v2558_v51 = vmul.f32 %v6263_v46, %v2549_v7  ;;  %v5077_v55 = vpop.f32.mrb[35].mxu0  ;;  %v6360_v7 = vld [vmem:[%s6852_s18 + $0x78] sm:$0xff]  }
 0xf28   : > { %v2563_v56 = vmul.f32 %v6261_v44, %v2558_v51 }
 0xf2a   : > { %v6268_v58 = vadd.f32 %v2563_v56, %v5930_v20  ;;  %v6281_v20 = vld [vmem:[%s6850_s16 + $0x10] sm:$0xff]  }
 0xf2b   : > { %5079 = vmatpush3.bf16.msra.mxu0 %v6281_v20 }
 0xf2c   : > { %v2565_v59 = vsel %vm1203_vm3, %v6268_v58, 0.0  ;;  %5080 = vmatprep.subr.bf16.mxu0 %v5608_v1 }
 0xf2d   : > { %2566 = vadd.xlane.f32.xlu1 %v2565_v59 }
 0xf2f   : > { %5081 = vmatpush3.bf16.msra.mxu0 %v6287_v54 }
 0xf30   : > { %5106 = vmatprep.subr.bf16.mxu0 %v5608_v1 }
 0xf3e   : > { %2660 = vrot.lane.b32.xlu1 %v1739_v57, %s6930_s0 }
 0xfba   : > { %v2567_v0 = vpop.xlane.xlu1 %2566 }
 0xfbb   : > { %v2568_v47 = vmul.f32 0.03125, %v2567_v0 }
 0xfbd   : > { %v2569_v2 = vsub.f32 %v6268_v58, %v2568_v47 }
 0xfbe   : > { %v6370_v55 = vpop.permute.xlu1 %2660 }
 0xfbf   : > { %v2570_v49 = vmul.f32 %v2569_v2, %v2569_v2 }
 0xfc1   : > { %v2571_v4 = vsel %vm1203_vm3, %v2570_v49, 0.0 }
 0xfc2   : > { %2572 = vadd.xlane.f32.xlu0 %v2571_v4 }
 0xfd8   : > { %2658 = vrot.lane.b32.xlu0 %v6195_v63, %s6930_s0 }
0x104f   : > { %v2573_v6 = vpop.xlane.xlu0 %2572 }
0x1050   : > { %v2574_v8 = vmul.f32 0.03125, %v2573_v6 }
0x1052   : > { %v2575_v10 = vadd.f32 1e-05, %v2574_v8 }
0x1053   : > { %v2659_v50 = vpop.permute.xlu0 %2658 }
0x1054   : > { %5452 = vrsqrt.f32 %v2575_v10  ;;  %v6375_v57 = vsel %vm1556_vm7, %v2659_v50, %v6370_v55  ;;  %v6383_v50 = vld [vmem:[%s6853_s19 + $0x1] ss:$0 sm:$0xff] }
0x105e   : > { %v5453_v26 = vpop.eup %5452 }
0x105f   : > { %v2577_v27 = vmul.f32 %v5453_v26, %v2569_v2 }
0x1061   : > { %v2582_v34 = vmul.f32 %v6294_v23, %v2577_v27 }
0x1063   : > { %v2587_v62 = vadd.f32 %v6298_v28, %v2582_v34 }
0x1065   : > { %v2593_v11 = vpack.c.bf16 %v2587_v62, %v2587_v62 }
0x1067   : > { %5083 = vmatmul.mubr.msk.bf16.vlgmr.msra.gmra.mrb[36].mxu0 %vm1203_vm3, %v2593_v11 }
0x1068   : > { %5107 = vmatpush3.bf16.msra.mxu0 %v6097_v36  ;;  %5110 = vmatprep.mubr.msk.bf16.mxu0 %vm5609_vm0, %v5608_v1  ;;  %v6319_v36 = vld [vmem:[%s6852_s18 + $0x48] sm:$0xff]  }
0x1069   : > { %5108 = vmatprep.subr.bf16.mxu0 %v5608_v1  ;;  %5089 = vmatpush3.bf16.msra.mxu1 %v6319_v36 }
0x106a   : > { %5090 = vmatprep.subr.bf16.mxu1 %v5608_v1 }
0x106c   : > { %5109 = vmatpush3.bf16.msra.mxu0 %v6105_v37  ;;  %v6326_v37 = vld [vmem:[%s6852_s18 + $0x50] sm:$0xff]  }
0x106d   : > { %5114 = vmatprep.subr.bf16.mxu0 %v5608_v1  ;;  %5091 = vmatpush3.bf16.msra.mxu1 %v6326_v37 }
0x106e   : > { %5092 = vmatprep.subr.bf16.mxu1 %v5608_v1 }
0x1071   : > { %5093 = vmatpush3.bf16.msra.mxu1 %v6333_v38 }
0x1072   : > { %5094 = vmatprep.subr.bf16.mxu1 %v5608_v1 }
0x1075   : > { %5095 = vmatpush3.bf16.msra.mxu1 %v6339_v39 }
0x1076   : > { %5096 = vmatprep.subr.bf16.mxu1 %v5608_v1 }
0x1079   : > { %5097 = vmatpush3.bf16.msra.mxu1 %v6346_v60 }
0x107a   : > { %5098 = vmatprep.subr.bf16.mxu1 %v5608_v1 }
0x107d   : > { %5099 = vmatpush3.bf16.msra.mxu1 %v6353_v43 }
0x107e   : > { %5100 = vmatprep.subr.bf16.mxu1 %v5608_v1 }
0x1081   : > { %5101 = vmatpush3.bf16.msra.mxu1 %v6360_v7 }
0x1082   : > { %5134 = vmatprep.subr.bf16.mxu1 %v5608_v1 }
0x113a   : > { %v2651_v51 = vpop.f32.mrb[36].mxu0 }
0x113b   : > { %v2652_v56 = vadd.f32 %v6368_v5, %v2651_v51  ;;  %v5084_v59 = vpop.f32.mrb[37].mxu0 }
0x113c   : > { %v2654_v0 = vpop.f32.mrb[38].mxu0  ;;  %v6388_v59 = vrot.slane %v6251_v41, %v5889_v33 }
0x113d   : > { %v2664_v47 = vmul.f32 %v6375_v57, %v2652_v56  ;;  %v5085_v2 = vpop.f32.mrb[39].mxu0 }
0x113f   : > { %v2665_v49 = vmul.f32 %v2664_v47, %v2664_v47 }
0x1141   : > { %v2666_v4 = vmul.f32 %v2665_v49, %v2664_v47 }
0x1143   : > { %v2667_v6 = vmul.f32 0.044715, %v2666_v4 }
0x1145   : > { %v2668_v8 = vadd.f32 %v2667_v6, %v2664_v47 }
0x1147   : > { %v2669_v10 = vmul.f32 0.7978846, %v2668_v8 }
0x1149   : > { %5454 = vtanh.f32 %v2669_v10 }
0x1153   : > { %v5455_v26 = vpop.eup %5454 }
0x1154   : > { %v2671_v27 = vadd.f32 1.0, %v5455_v26 }
0x1156   : > { %v2672_v34 = vmul.f32 0.5, %v2671_v27 }
0x1158   : > { %v2673_v62 = vmul.f32 %v2672_v34, %v2664_v47 }
0x115a   : > { %v2691_v11 = vpack.c.bf16 %v2673_v62, %v2673_v62 }
0x115c   : > { %5103 = vmatmul.mubr.bf16.vlgmr.msra.gmra.mrb[52].mxu1 %v2691_v11 }
0x115d   : > { %5136 = vmatprep.mubr.msk.bf16.mxu1 %vm5609_vm0, %v5608_v1 }
0x122f   : > { %v2782_v51 = vpop.f32.mrb[52].mxu1 }
0x1230   : > { %v2783_v56 = vadd.f32 %v6383_v50, %v2782_v51  ;;  %v5104_v0 = vpop.f32.mrb[53].mxu1 }
0x1231   : > { %v2785_v2 = vpop.f32.mrb[54].mxu1 }
0x1232   : > { %v2789_v47 = vmul.f32 %v2783_v56, %v6370_v55  ;;  %v5105_v49 = vpop.f32.mrb[55].mxu1 }
0x1234   : > { %v2794_v4 = vmul.f32 %v6388_v59, %v2789_v47 }
0x1236   : > { %v6393_v6 = vadd.f32 %v2794_v4, %v6268_v58 }
0x1238   : > { %v2796_v8 = vsel %vm1203_vm3, %v6393_v6, 0.0 }
0x1239   : > { %2797 = vadd.xlane.f32.xlu0 %v2796_v8 }
0x12c6   : > { %v2798_v10 = vpop.xlane.xlu0 %2797 }
0x12c7   : > { %v2799_v26 = vmul.f32 0.03125, %v2798_v10 }
0x12c9   : > { %v2800_v27 = vsub.f32 %v6393_v6, %v2799_v26 }
0x12cb   : > { %v2801_v41 = vmul.f32 %v2800_v27, %v2800_v27 }
0x12cd   : > { %v2802_v34 = vsel %vm1203_vm3, %v2801_v41, 0.0 }
0x12ce   : > { %2803 = vadd.xlane.f32.xlu1 %v2802_v34 }
0x135b   : > { %v2804_v62 = vpop.xlane.xlu1 %2803 }
0x135c   : > { %v2805_v11 = vmul.f32 0.03125, %v2804_v62 }
0x135e   : > { %v2806_v51 = vadd.f32 1e-05, %v2805_v11 }
0x1360   : > { %5456 = vrsqrt.f32 %v2806_v51 }
0x136a   : > { %v5457_v56 = vpop.eup %5456 }
0x136b   : > { %v2808_v0 = vmul.f32 %v5457_v56, %v2800_v27 }
0x136d   : > { %v2809_v58 = vmul.f32 %v2808_v0, %v6120_v45  ;;  %v2856_v49 = vmul.f32 %v2808_v0, %v6149_v24 }
0x136f   : > { %v2810_v2 = vadd.f32 %v2809_v58, %v6123_v48  ;;  %v2857_v4 = vadd.f32 %v2856_v49, %v6160_v29 }
0x1371   : > { %v2811_v47 = vpack.c.bf16 %v2810_v2, %v2810_v2  ;;  %v2858_v45 = vpack.c.bf16 %v2857_v4, %v2857_v4 }
0x1373   : > { %5111 = vmatmul.mubr.msk.bf16.vlgmr.msra.gmra.mrb[40].mxu0 %vm1203_vm3, %v2811_v47 }
0x1374   : > { %5115 = vmatpush3.bf16.msra.mxu0 %v6155_v18  ;;  %5118 = vmatprep.mubr.msk.bf16.mxu0 %vm5609_vm0, %v5608_v1 }
0x1375   : > { %5116 = vmatprep.subr.bf16.mxu0 %v5608_v1 }
0x1378   : > { %5117 = vmatpush3.bf16.msra.mxu0 %v6167_v32 }
0x1379   : > { %5122 = vmatprep.subr.bf16.mxu0 %v5608_v1 }
0x137b   : > { %5119 = vmatmul.mubr.msk.bf16.vlgmr.msra.gmra.mrb[44].mxu0 %vm1203_vm3, %v2858_v45 }
0x137c   : > { %5123 = vmatpush3.bf16.msra.mxu0 %v6198_v17  ;;  %5124 = vmatprep.mubr.msk.bf16.mxu0 %vm5609_vm0, %v5608_v1 }
0x137d   : > { %5128 = vmatprep.subr.bf16.mxu0 %v5608_v1 }
0x1446   : > { %v2849_v48 = vpop.f32.mrb[40].mxu0 }
0x1447   : > { %v2850_v24 = vadd.f32 %v6181_v30, %v2849_v48  ;;  %v5112_v18 = vpop.f32.mrb[41].mxu0 }
0x1448   : > { %v2852_v8 = vpop.f32.mrb[42].mxu0 }
0x1449   : > { %v2855_v29 = vmul.f32 %v2850_v24, %v6183_v40  ;;  %v5113_v32 = vpop.f32.mrb[43].mxu0 }
0x144b   : > { %2948 = vxpose.xlu0.b32.start.end [1/1] (short) (narrow) %v2855_v29, 16  ;;  %v3043_v24 = vpack.c.bf16 %v2855_v29, %v2855_v29  ;;  %v5482_v29 = vld [vmem:[%s6920_s6] ss:$0 sm:$0xff] }
0x144e   : > { %v2896_v10 = vpop.f32.mrb[44].mxu0 }
0x144f   : > { %v2897_v26 = vadd.f32 %v6191_v61, %v2896_v10  ;;  %v5120_v27 = vpop.f32.mrb[45].mxu0 }
0x1450   : > { %v2899_v41 = vpop.f32.mrb[46].mxu0 }
0x1451   : > { %v2902_v17 = vmul.f32 %v2897_v26, %v6195_v63  ;;  %v5121_v34 = vpop.f32.mrb[47].mxu0 }
0x1453   : > { %v2903_v62 = vmul.f32 0.25, %v2902_v17 }
0x1455   : > { %v2904_v11 = vpack.c.bf16 %v2903_v62, %v2903_v62  ;;  %v6439_v62 = vadd.f32 %v5482_v29, %v5906_v52 }
0x1457   : > { %5125 = vmatmul.mubr.msk.bf16.vlgmr.msra.gmra.mrb[48].mxu0 %vm882_vm1, %v2904_v11 }
0x1458   : > { %5130 = vmatprep.mubr.msk.bf16.mxu0 %vm5609_vm0, %v5608_v1 }
0x14cb   : > { %v2964_v30 = vpop.trf.xlu0 }
0x14cf   : > { %v2965_v51 = vpop.trf.xlu0 }
0x14d0   : > { %v2980_v40 = vpack.c.bf16 %v2965_v51, %v2964_v30 }
0x14d2   : > { %5129 = vmatpush3.bf16.msra.mxu0 %v2980_v40  ;;  %v3732_v40 = vsel %vm1154_vm2, %v6439_v62, 0.0 }
0x14d3   : > { %5146 = vmatprep.subr.bf16.mxu0 %v5608_v1 }
0x14d5   : > { %5131 = vmatmul.mubr.msk.bf16.vlgmr.msra.gmra.mrb[52].mxu0 %vm882_vm1, %v2904_v11 }
0x14d6   : > { %5147 = vmatpush3.bf16.msra.mxu0 %v6241_v14  ;;  %5148 = vmatprep.mubr.msk.bf16.mxu0 %vm5609_vm0, %v5608_v1 }
0x14d7   : > { %5152 = vmatprep.subr.bf16.mxu0 %v5608_v1 }
0x152a   : > { %v2942_v61 = vpop.f32.mrb[48].mxu0 }
0x152b   : > { %v2943_v63 = vadd.f32 %v2942_v61, %v6213_v16  ;;  %v5126_v56 = vpop.f32.mrb[49].mxu0 }
0x152c   : > { %v2945_v0 = vpop.f32.mrb[50].mxu0 }
0x152d   : > { %v5127_v58 = vpop.f32.mrb[51].mxu0  ;;  %v3021_v2 = vsel %vm2367_vm8, %v2943_v63, -inf }
0x152e   : > { %3022 = vmax.xlane.f32.xlu1 %v3021_v2 }
0x15a8   : > { %v3015_v47 = vpop.f32.mrb[52].mxu0 }
0x15a9   : > { %v3016_v49 = vadd.f32 %v3015_v47, %v6210_v53  ;;  %v5132_v4 = vpop.f32.mrb[53].mxu0 }
0x15aa   : > { %v3018_v45 = vpop.f32.mrb[54].mxu0 }
0x15ab   : > { %v5133_v14 = vpop.f32.mrb[55].mxu0  ;;  %v3024_v48 = vsel %vm1341_vm6, %v3016_v49, -inf }
0x15ac   : > { %3025 = vmax.xlane.f32.xlu1 %v3024_v48 }
0x15bb   : > { %v3023_v18 = vpop.xlane.xlu1 %3022 }
0x15bd   : > { %3045 = vrot.lane.b32.xlu1 %v3043_v24, %s6929_s7 }
0x1639   : > { %v3026_v16 = vpop.xlane.xlu1 %3025 }
0x163a   : > { %v3027_v8 = vmax.f32 %v3023_v18, %v3026_v16 }
0x163c   : > { %v3028_v32 = vsub.f32 %v2943_v63, %v3027_v8  ;;  %v3035_v10 = vsub.f32 %v3016_v49, %v3027_v8 }
0x163d   : > { %v3046_v26 = vpop.permute.xlu1 %3045 }
0x163e   : > { %v3029_v27 = vmul.f32 1.442695, %v3028_v32  ;;  %v3036_v41 = vmul.f32 1.442695, %v3035_v10  ;;  %v3051_v17 = vsel %vm1345_vm5, %v3046_v26, 0 }
0x163f   : > { %5135 = vmatpush3.bf16.msra.mxu1 %v3051_v17 }
0x1640   : > { %5458 = vpow2.f32 %v3029_v27  ;;  %5140 = vmatprep.subr.bf16.mxu1 %v5608_v1 }
0x1641   : > { %5460 = vpow2.f32 %v3036_v41 }
0x164a   : > { %v5459_v53 = vpop.eup %5458 }
0x164b   : > { %v5461_v34 = vpop.eup %5460  ;;  %v3031_v11 = vsel %vm2367_vm8, %v5459_v53, 0.0  ;;  %v3034_v52 = vpack.c.bf16 %v5459_v53, %v5459_v53  ;;  %v5411_v53 = vld [vmem:[%s6854_s20 + $0x20] ss:$8 sps:$4 sm:$0xff]  }
0x164c   : > { %v3038_v30 = vsel %vm1341_vm6, %v5461_v34, 0.0  ;;  %3032 = vadd.xlane.f32.xlu0 %v3031_v11  ;;  %v3042_v51 = vpack.c.bf16 %v5461_v34, %v5461_v34  ;;  %v5413_v34 = vld [vmem:[%s6854_s20 + $0x24] ss:$8 sps:$4 sm:$0xff]  }
0x164d   : > { %3039 = vadd.xlane.f32.xlu1 %v3038_v30 }
0x164e   : > { %5137 = vmatmul.mubr.msk.bf16.vlgmr.msra.gmra.mrb[56].mxu1 %vm1341_vm6, %v3042_v51 }
0x164f   : > { %5141 = vmatpush3.bf16.msra.mxu1 %v6226_v9  ;;  %5142 = vmatprep.mubr.msk.bf16.mxu1 %vm5609_vm0, %v5608_v1 }
0x1650   : > { %3733 = vadd.xlane.f32.xlu0 %v3732_v40  ;;  %5160 = vmatprep.subr.bf16.mxu1 %v5608_v1 }
0x165a   : > { %5143 = vmatmul.mubr.msk.bf16.vlgmr.msra.gmra.mrb[56].mxu1 %vm2367_vm8, %v3034_v52 }
0x165b   : > { %5161 = vmatpush3.bf16.msra.mxu1 %v6312_v21  ;;  %5176 = vmatprep.mubr.msk.bf16.mxu1 %vm5609_vm0, %v5608_v1 }
0x165c   : > { %5162 = vmatprep.subr.bf16.mxu1 %v5608_v1 }
0x165f   : > { %5163 = vmatpush3.bf16.msra.mxu1 %v6319_v36 }
0x1660   : > { %5164 = vmatprep.subr.bf16.mxu1 %v5608_v1 }
0x1663   : > { %5165 = vmatpush3.bf16.msra.mxu1 %v6326_v37 }
0x1664   : > { %5166 = vmatprep.subr.bf16.mxu1 %v5608_v1 }
0x1667   : > { %5167 = vmatpush3.bf16.msra.mxu1 %v6333_v38 }
0x1668   : > { %5168 = vmatprep.subr.bf16.mxu1 %v5608_v1 }
0x166b   : > { %5169 = vmatpush3.bf16.msra.mxu1 %v6339_v39 }
0x166c   : > { %5170 = vmatprep.subr.bf16.mxu1 %v5608_v1 }
0x166f   : > { %5171 = vmatpush3.bf16.msra.mxu1 %v6346_v60 }
0x1670   : > { %5172 = vmatprep.subr.bf16.mxu1 %v5608_v1 }
0x1673   : > { %5173 = vmatpush3.bf16.msra.mxu1 %v6353_v43 }
0x1674   : > { %5174 = vmatprep.subr.bf16.mxu1 %v5608_v1 }
0x1677   : > { %5175 = vmatpush3.bf16.msra.mxu1 %v6360_v7 }
0x1678   : > { %5202 = vmatprep.subr.bf16.mxu1 %v5608_v1 }
0x16d9   : > { %v3033_v9 = vpop.xlane.xlu0 %3032 }
0x16da   : > { %v3040_v60 = vpop.xlane.xlu1 %3039 }
0x16db   : > { %v3041_v43 = vadd.f32 %v3040_v60, %v3033_v9 }
0x16dd   : > { %v3734_v21 = vpop.xlane.xlu0 %3733  ;;  %5462 = vrcp.f32 %v3041_v43 }
0x16de   : > { %v3735_v36 = vmul.f32 0.03125, %v3734_v21 }
0x16e0   : > { %v6470_v37 = vsub.f32 %v6439_v62, %v3735_v36 }
0x16e2   : > { %v3737_v38 = vmul.f32 %v6470_v37, %v6470_v37 }
0x16e4   : > { %v3738_v39 = vsel %vm1154_vm2, %v3737_v38, 0.0 }
0x16e5   : > { %3739 = vadd.xlane.f32.xlu0 %v3738_v39 }
0x16e7   : > { %v5463_v61 = vpop.eup %5462 }
0x172d   : > { %v3130_v63 = vpop.f32.mrb[56].mxu1 }
0x172e   : > { %v3137_v7 = vmul.f32 %v5463_v61, %v3130_v63  ;;  %v5144_v56 = vpop.f32.mrb[57].mxu1  ;;  %v5416_v61 = vld [vmem:[%s6858_s24 + $0x18] sm:$0xff]  }
0x172f   : > { %v3133_v0 = vpop.f32.mrb[58].mxu1 }
0x1730   : > { %v3138_v58 = vpack.c.bf16 %v3137_v7, %v3137_v7  ;;  %v5145_v2 = vpop.f32.mrb[59].mxu1 }
0x1732   : > { %5149 = vmatmul.mubr.msk.bf16.vlgmr.msra.gmra.mrb[56].mxu0 %vm882_vm1, %v3138_v58 }
0x1733   : > { %5153 = vmatpush3.bf16.msra.mxu0 %v6281_v20  ;;  %5156 = vmatprep.mubr.msk.bf16.mxu0 %vm5609_vm0, %v5608_v1 }
0x1734   : > { %5154 = vmatprep.subr.bf16.mxu0 %v5608_v1 }
0x1737   : > { %5155 = vmatpush3.bf16.msra.mxu0 %v6287_v54 }
0x1738   : > { %3311 = vmatprep.subr.bf16.mxu0 %v5413_v34 }
0x1805   : > { %v3176_v47 = vpop.f32.mrb[56].mxu0 }
0x1806   : > { %v3177_v49 = vadd.f32 %v6256_v42, %v3176_v47  ;;  %v5150_v4 = vpop.f32.mrb[57].mxu0 }
0x1807   : > { %v3179_v45 = vpop.f32.mrb[58].mxu0 }
0x1808   : > { %v3182_v14 = vmul.f32 %v3177_v49, %v6263_v46  ;;  %v5151_v48 = vpop.f32.mrb[59].mxu0 }
0x180a   : > { %v3183_v24 = vmul.f32 %v3182_v14, %v6261_v44 }
0x180c   : > { %v6485_v18 = vadd.f32 %v3183_v24, %v6393_v6 }
0x180e   : > { %v3185_v20 = vsel %vm1203_vm3, %v6485_v18, 0.0 }
0x180f   : > { %3186 = vadd.xlane.f32.xlu1 %v3185_v20 }
0x189c   : > { %v3187_v16 = vpop.xlane.xlu1 %3186 }
0x189d   : > { %v3188_v8 = vmul.f32 0.03125, %v3187_v16 }
0x189f   : > { %v3189_v54 = vsub.f32 %v6485_v18, %v3188_v8 }
0x18a1   : > { %v3190_v32 = vmul.f32 %v3189_v54, %v3189_v54 }
0x18a3   : > { %v3191_v42 = vsel %vm1203_vm3, %v3190_v32, 0.0 }
0x18a4   : > { %3192 = vadd.xlane.f32.xlu1 %v3191_v42 }
0x1931   : > { %v3193_v10 = vpop.xlane.xlu1 %3192 }
0x1932   : > { %v3194_v46 = vmul.f32 0.03125, %v3193_v10 }
0x1934   : > { %v3195_v26 = vadd.f32 1e-05, %v3194_v46 }
0x1936   : > { %5464 = vrsqrt.f32 %v3195_v26 }
0x1940   : > { %v5465_v44 = vpop.eup %5464 }
0x1941   : > { %v3197_v27 = vmul.f32 %v5465_v44, %v3189_v54  ;;  %v4720_v54 = vld [vmem:[%s6847_s13 + $0x2] ss:$0 sm:$0xff] }
0x1943   : > { %v3198_v6 = vmul.f32 %v3197_v27, %v6294_v23 }
0x1945   : > { %v3199_v41 = vadd.f32 %v3198_v6, %v6298_v28 }
0x1947   : > { %v3200_v17 = vpack.c.bf16 %v3199_v41, %v3199_v41 }
0x1949   : > { %5157 = vmatmul.mubr.msk.bf16.vlgmr.msra.gmra.mrb[60].mxu0 %vm1203_vm3, %v3200_v17 }
0x194a   : > { %3343 = vmatprep.mubr.bf16.mxu0 %v5610_v25  ;;  %3312 = vmatpush1.bf16.msra.mxu0 %v5411_v53  ;;  %v5415_v25 = vld [vmem:[%s6859_s25 + $0x8] sm:$0xff]  }
0x194b   : > { %5180 = vmatprep.subr.bf16.mxu0 %v5608_v1 }
0x1951   : > { %4704 = vmatmul.mubr.msk.bf16.vlgmr.msra.gmra.mrb[64].mxu0 %vm882_vm1, %v5854_v15 }
0x1952   : > { %5182 = vmatprep.mubr.msk.bf16.mxu0 %vm5609_vm0, %v5608_v1  ;;  %5181 = vmatpush3.bf16.msra.mxu0 %v5415_v25 }
0x1953   : > { %5186 = vmatprep.subr.bf16.mxu0 %v5608_v1 }
0x1959   : > { %5183 = vmatmul.mubr.msk.bf16.vlgmr.msra.gmra.mrb[68].mxu0 %vm882_vm1, %v5822_v3 }
0x195a   : > { %5187 = vmatpush3.bf16.msra.mxu0 %v5415_v25  ;;  %5188 = vmatprep.mubr.msk.bf16.mxu0 %vm5609_vm0, %v5608_v1 }
0x195b   : > { %5192 = vmatprep.subr.mxu0 %v5608_v1 }
0x1961   : > { %5189 = vmatmul.mubr.msk.bf16.vlgmr.msra.gmra.mrb[72].mxu0 %vm882_vm1, %v5841_v12 }
0x1962   : > { %5194 = vmatprep.mubr.msk.f32.mxu0 %vm5609_vm0, %v5608_v1 }
0x1963   : > { %5193 = vmatpush3.xpose.msk.msra.mxu0 %vm1341_vm6, %v6081_v35  ;;  %v4714_v35 = vld [vmem:[%s6857_s23 + $0x2] sm:$0x3] }
0x1964   : > { %5197 = vmatprep.subr.mxu0 %v5608_v1  ;;  %v6536_v43 = vrot.slane %v4714_v35, %v5889_v33 }
0x1a1c   : > { %v3238_v15 = vpop.f32.mrb[60].mxu0 }
0x1a1d   : > { %v3239_v3 = vadd.f32 %v6368_v5, %v3238_v15  ;;  %v5158_v23 = vpop.f32.mrb[61].mxu0  ;;  %v6528_v5 = vrot.slane %v4714_v35, %v5883_v31 }
0x1a1e   : > { %v3241_v28 = vpop.f32.mrb[62].mxu0 }
0x1a1f   : > { %v3244_v29 = vmul.f32 %v3239_v3, %v6375_v57  ;;  %v5159_v11 = vpop.f32.mrb[63].mxu0  ;;  %v5414_v57 = vld [vmem:[%s6858_s24 + $0x10] sm:$0xff]   ;;  %v3592_v60 = vmul.f32 %v6528_v5, %v6143_v22  ;;  %v3740_v3 = vpop.xlane.xlu0 %3739 }
0x1a20   : > { %v3741_v23 = vmul.f32 0.03125, %v3740_v3 }
0x1a21   : > { %v3245_v30 = vmul.f32 %v3244_v29, %v3244_v29  ;;  %v3597_v63 = vadd.f32 %v6536_v43, %v3592_v60 }
0x1a22   : > { %v3742_v28 = vadd.f32 1e-05, %v3741_v23 }
0x1a23   : > { %v3246_v51 = vmul.f32 %v3245_v30, %v3244_v29  ;;  %v3603_v7 = vpack.c.bf16 %v3597_v63, %v3597_v63 }
0x1a24   : > { %v6551_v22 = vpop.f32.mrb[64].mxu0 }
0x1a25   : > { %v3247_v40 = vmul.f32 0.044715, %v3246_v51  ;;  %v6553_v56 = vpop.f32.mrb[65].mxu0 }
0x1a26   : > { %v3349_v0 = vpop.f32.mrb[66].mxu0 }
0x1a27   : > { %v3248_v12 = vadd.f32 %v3247_v40, %v3244_v29  ;;  %v3350_v58 = vpop.f32.mrb[67].mxu0 }
0x1a29   : > { %v3249_v52 = vmul.f32 0.7978846, %v3248_v12  ;;  %v6574_v12 = vld [vmem:[%s6923_s1 + $0x8] sm:$0xf]  ;;  %s4444_s1 = sshll.u32 %s6564_s21, 4  ;;  %s4445_s1 = int_to_ptr.vmem [resolvable:$true] %s4444_s1 }
0x1a2a   : > { %v3753_v60 = vrot.slane %v6574_v12, %v5889_v33  ;;  %s5484_s22 = scalar_lea.vmem %s4445_s1, 128 }
0x1a2b   : > { %5466 = vtanh.f32 %v3249_v52  ;;  %p5485_p11 = scmp.ne.s32.totalorder %s4445_s1, %s5484_s22 }
0x1a2c   : > { %v3395_v2 = vpop.f32.mrb[68].mxu0  ;;  %5468 = vrsqrt.f32 %v3742_v28 }
0x1a2d   : > { %v5184_v47 = vpop.f32.mrb[69].mxu0  ;;  %v3396_v32 = vadd.f32 1.0, %v3395_v2  ;;  %p5486_p12 = pnand %p5485_p11, %p5801_p5 }
0x1a2e   : > { %v3398_v49 = vpop.f32.mrb[70].mxu0 }
0x1a2f   : > { %v5185_v4 = vpop.f32.mrb[71].mxu0  ;;  %p5487_p13 = pneg %p5486_p12 }
0x1a34   : > { %v3435_v53 = vpop.f32.mrb[72].mxu0 }
0x1a35   : > { %v5467_v9 = vpop.eup %5466  ;;  %v5190_v34 = vpop.f32.mrb[73].mxu0 }
0x1a36   : > { %v3251_v21 = vadd.f32 1.0, %v5467_v9  ;;  %v3438_v25 = vpop.f32.mrb[74].mxu0  ;;  %v5469_v51 = vpop.eup %5468 }
0x1a37   : > { %v5191_v15 = vpop.f32.mrb[75].mxu0  ;;  %v3744_v9 = vmul.f32 %v5469_v51, %v6470_v37  ;;  %v5418_v37 = vld [vmem:[%s6922_s29 + $0x28] sm:$0xff]  }
0x1a38   : > { %v3252_v36 = vmul.f32 0.5, %v3251_v21  ;;  %v3748_v21 = vrot.slane %v6574_v12, %v5883_v31 }
0x1a3a   : > { %v3253_v38 = vmul.f32 %v3252_v36, %v3244_v29 }
0x1a3c   : > { %v3254_v39 = vpack.c.bf16 %v3253_v38, %v3253_v38  ;;  %v5417_v38 = vld [vmem:[%s6922_s29 + $0x20] sm:$0xff]  }
0x1a3e   : > { %5177 = vmatmul.mubr.bf16.vlgmr.msra.gmra.mrb[60].mxu1 %v3254_v39  ;;  %v3749_v39 = vmul.f32 %v3748_v21, %v3744_v9 }
0x1a3f   : > { %5203 = vmatpush3.bf16.msra.mxu1 %v5414_v57  ;;  %5206 = vmatprep.mubr.msk.bf16.mxu1 %vm5609_vm0, %v5608_v1 }
0x1a40   : > { %5204 = vmatprep.subr.bf16.mxu1 %v5608_v1 }
0x1a43   : > { %5205 = vmatpush3.bf16.msra.mxu1 %v5416_v61 }
0x1a44   : > { %5210 = vmatprep.subr.bf16.mxu1 %v5608_v1 }
0x1a46   : > { %5207 = vmatmul.mubr.msk.bf16.vlgmr.msra.gmra.mrb[64].mxu1 %vm1203_vm3, %v3603_v7 }
0x1a47   : > { %5211 = vmatpush3.bf16.msra.mxu1 %v5414_v57  ;;  %5214 = vmatprep.mubr.msk.bf16.mxu1 %vm5609_vm0, %v5608_v1 }
0x1a48   : > { %5212 = vmatprep.subr.bf16.mxu1 %v5608_v1 }
0x1a4b   : > { %5213 = vmatpush3.bf16.msra.mxu1 %v5416_v61  ;;  %v3436_v61 = vadd.f32 1.0, %v3435_v53 }
0x1a4c   : > { %5218 = vmatprep.subr.bf16.mxu1 %v5608_v1 }
0x1b11   : > { %v3289_v45 = vpop.f32.mrb[60].mxu1 }
0x1b12   : > { %v3290_v14 = vadd.f32 %v6383_v50, %v3289_v45  ;;  %v5178_v48 = vpop.f32.mrb[61].mxu1  ;;  %v862_v45 = vld [vmem:[%s6931_s30] sm:$0xf]  ;;  %s4785_s30 = sshll.u32 %s5782_s3, 7 }
0x1b13   : > { %v3292_v24 = vpop.f32.mrb[62].mxu1  ;;  %5195 = vmatmul.mubr.msk.f32.vlgmr.msra.gmra.mrb[76].mxu0 %vm1341_vm6, %v862_v45  ;;  %s6730_s8 = scalar_lea.hbm %s6861_s27, %s4785_s30 }
0x1b14   : > { %v3295_v20 = vmul.f32 %v3290_v14, %v6370_v55  ;;  %v5179_v16 = vpop.f32.mrb[63].mxu1  ;;  %v5483_v24 = vld [vmem:[%s6928_s11] sm:$0xff]  ;;  %5199 = vmatprep.mubr.msk.f32.mxu0 %vm5609_vm0, %v5608_v1 }
0x1b15   : > { %5198 = vmatpush3.xpose.msk.msra.mxu0 %vm1341_vm6, %v5483_v24  ;;  %v4732_v16 = vld [vmem:[%s6925_s4 + $0x2] ss:$0 sm:$0xff]  ;;  %s5613_s4 = smov [#allocation4]  }
0x1b16   : > { %v3296_v8 = vmul.f32 %v3295_v20, %v6388_v59  ;;  %5226 = vmatprep.subr.bf16.mxu0 %v5608_v1  ;;  %s5488_s6 = sshll.u32 %s5613_s4, 4  ;;  %s5489_s6 = int_to_ptr.vmem [resolvable:$false] %s5488_s6 }
0x1b17   : > { %s5490_s11 = scalar_lea.vmem %s5489_s6, 256  ;;  %p5491_p0 = scmp.lt.s32.totalorder %s4445_s1, %s5489_s6 }
0x1b18   : > { %v3297_v42 = vadd.f32 %v3296_v8, %v6485_v18  ;;  %5200 = vmatmul.mubr.msk.f32.vlgmr.msra.gmra.mrb[78].mxu0 %vm1341_vm6, %v862_v45  ;;  %v5419_v45 = vld [vmem:[%s6848_s14 + $0x10] sm:$0xff]   ;;  %p5492_p1 = scmp.lt.s32.totalorder %s5490_s11, %s5484_s22 }
0x1b19   : > { %v3661_v10 = vpop.f32.mrb[64].mxu1  ;;  %5228 = vmatprep.mubr.msk.bf16.mxu0 %vm5609_vm0, %v5608_v1 }
0x1b1a   : > { %v3662_v46 = vadd.f32 %v4720_v54, %v3661_v10  ;;  %v5208_v26 = vpop.f32.mrb[65].mxu1  ;;  %v3668_v50 = vsel %vm1203_vm3, %v3297_v42, 0.0  ;;  %4405 = vst.msk [vmem:[%s6564_s21] sm:$0xff] %vm1203_vm3, %v3297_v42  ;;  %p5493_p2 = por %p5492_p1, %p5491_p0 }
0x1b1b   : > { %3669 = vadd.xlane.f32.xlu1 %v3668_v50  ;;  %v3664_v55 = vpop.f32.mrb[66].mxu1 }
0x1b1c   : > { %v6568_v59 = vmul.f32 %v3662_v46, %v3396_v32  ;;  %v5209_v44 = vpop.f32.mrb[67].mxu1  ;;  %p5494_p3 = pnand %p5493_p2, %p5487_p13 }
0x1ba8   : > { %v3670_v27 = vpop.xlane.xlu1 %3669 }
0x1ba9   : > { %v3671_v6 = vmul.f32 0.03125, %v3670_v27 }
0x1bab   : > { %v3672_v41 = vsub.f32 %v3297_v42, %v3671_v6 }
0x1bad   : > { %v3673_v17 = vmul.f32 %v3672_v41, %v3672_v41 }
0x1baf   : > { %v3674_v18 = vsel %vm1203_vm3, %v3673_v17, 0.0 }
0x1bb0   : > { %3675 = vadd.xlane.f32.xlu1 %v3674_v18 }
0x1c3d   : > { %v3676_v29 = vpop.xlane.xlu1 %3675 }
0x1c3e   : > { %v3677_v11 = vmul.f32 0.03125, %v3676_v29 }
0x1c40   : > { %v3678_v30 = vadd.f32 1e-05, %v3677_v11 }
0x1c42   : > { %5470 = vrsqrt.f32 %v3678_v30 }
0x1c4c   : > { %v5471_v40 = vpop.eup %5470 }
0x1c4d   : > { %v3680_v52 = vmul.f32 %v5471_v40, %v3672_v41 }
0x1c4f   : > { %v3681_v35 = vmul.f32 %v3680_v52, %v6528_v5  ;;  %v3754_v5 = vadd.f32 %v3753_v60, %v3749_v39 }
0x1c51   : > { %v3682_v36 = vadd.f32 %v3681_v35, %v6536_v43  ;;  %v3760_v43 = vpack.c.bf16 %v3754_v5, %v3754_v5 }
0x1c53   : > { %v3683_v57 = vpack.c.bf16 %v3682_v36, %v3682_v36  ;;  %v3991_v36 = vpack.c.bf16 %v6568_v59, %v6568_v59 }
0x1c55   : > { %5215 = vmatmul.mubr.msk.bf16.vlgmr.msra.gmra.mrb[68].mxu1 %vm1203_vm3, %v3683_v57 }
0x1c56   : > { %5219 = vmatpush3.bf16.msra.mxu1 %v5417_v38  ;;  %5222 = vmatprep.mubr.msk.bf16.mxu1 %vm5609_vm0, %v5608_v1 }
0x1c57   : > { %5220 = vmatprep.subr.bf16.mxu1 %v5608_v1 }
0x1c5a   : > { %5221 = vmatpush3.bf16.msra.mxu1 %v5418_v37 }
0x1c5b   : > { %5232 = vmatprep.subr.bf16.mxu1 %v5608_v1 }
0x1c5d   : > { %5223 = vmatmul.mubr.msk.bf16.vlgmr.msra.gmra.mrb[72].mxu1 %vm1203_vm3, %v3760_v43 }
0x1c5e   : > { %5234 = vmatprep.mubr.msk.bf16.mxu1 %vm5609_vm0, %v5608_v1 }
0x1d28   : > { %v3721_v63 = vpop.f32.mrb[68].mxu1 }
0x1d29   : > { %v3722_v7 = vadd.f32 %v4720_v54, %v3721_v63  ;;  %v5216_v0 = vpop.f32.mrb[69].mxu1  ;;  %v6616_v54 = vadd.f32 1.0, %v6551_v22  ;;  %v3510_v22 = vpop.f32.mrb[76].mxu0 }
0x1d2a   : > { %v3724_v58 = vpop.f32.mrb[70].mxu1  ;;  %v5196_v17 = vpop.f32.mrb[77].mxu0  ;;  %v3514_v34 = vmul.f32 0.35355338, %v3510_v22 }
0x1d2b   : > { %v3727_v2 = vmul.f32 %v3722_v7, %v3436_v61  ;;  %v5217_v47 = vpop.f32.mrb[71].mxu1  ;;  %v3581_v18 = vpop.f32.mrb[78].mxu0 }
0x1d2c   : > { %v5201_v53 = vpop.f32.mrb[79].mxu0  ;;  %v3585_v25 = vmul.f32 0.35355338, %v3581_v18 }
0x1d2d   : > { %v5362_v49 = vpack.i.bf16 %v3727_v2, %v6568_v59  ;;  %v4000_v21 = vpack.c.bf16 %v3727_v2, %v3727_v2 }
0x1d2f   : > { %5363 = vxpose.xlu1.b32.start.end [1/1] (short) (narrow) %v5362_v49, 16 }
0x1d30   : > { %v3818_v4 = vpop.f32.mrb[72].mxu1 }
0x1d31   : > { %v5224_v14 = vpop.f32.mrb[73].mxu1  ;;  %v3819_v8 = vadd.f32 %v4732_v16, %v3818_v4 }
0x1d32   : > { %v3821_v48 = vpop.f32.mrb[74].mxu1 }
0x1d33   : > { %v5225_v20 = vpop.f32.mrb[75].mxu1  ;;  %v3824_v42 = vmul.f32 %v3819_v8, %v6616_v54 }
0x1d35   : > { %v3825_v44 = vmul.f32 0.25, %v3824_v42 }
0x1d37   : > { %v3826_v41 = vpack.c.bf16 %v3825_v44, %v3825_v44 }
0x1daf   : > { %v5364_v32 = vpop.trf.xlu1 }
0x1db0   : > { %v5368_v10 = vunpack.i.h.bf16 %v5364_v32  ;;  %v5365_v46 = vunpack.i.l.bf16 %v5364_v32 }
0x1db3   : > { %v5369_v26 = vpop.trf.xlu1 }
0x1db4   : > { %v5373_v50 = vunpack.i.h.bf16 %v5369_v26  ;;  %v5370_v55 = vunpack.i.l.bf16 %v5369_v26  ;;  %v6657_v26 = vld [vmem:[%s6926_s12 + $0x4] sm:$0x3] }
0x1db6   : > { %v3859_v27 = vpack.c.bf16 %v5370_v55, %v5365_v46  ;;  %v3935_v6 = vpack.c.bf16 %v5373_v50, %v5368_v10  ;;  %v4743_v50 = vld [vmem:[%s6849_s15 + $0x2] ss:$0 sm:$0xff] }
0x1db8   : > { %5227 = vmatpush3.bf16.msra.mxu0 %v3859_v27  ;;  %5233 = vmatpush3.bf16.msra.mxu1 %v3935_v6  ;;  %v4170_v27 = vrot.slane %v6657_v26, %v5883_v31 }
0x1db9   : > { %5238 = vmatprep.subr.bf16.mxu0 %v5608_v1  ;;  %5250 = vmatprep.subr.bf16.mxu1 %v5608_v1 }
0x1dbb   : > { %5229 = vmatmul.mubr.msk.bf16.vlgmr.msra.gmra.mrb[80].mxu0 %vm882_vm1, %v3826_v41  ;;  %5235 = vmatmul.mubr.msk.bf16.vlgmr.msra.gmra.mrb[76].mxu1 %vm882_vm1, %v3826_v41 }
0x1dbc   : > { %5240 = vmatprep.mubr.msk.bf16.mxu0 %vm5609_vm0, %v5608_v1  ;;  %5252 = vmatprep.mubr.msk.bf16.mxu1 %vm5609_vm0, %v5608_v1 }
0x1dbd   : > { %5251 = vmatpush3.bf16.msra.mxu1 %v5419_v45 }
0x1dbe   : > { %5256 = vmatprep.subr.bf16.mxu1 %v5608_v1 }
0x1e8e   : > { %v3897_v15 = vpop.f32.mrb[80].mxu0  ;;  %v3970_v3 = vpop.f32.mrb[76].mxu1 }
0x1e8f   : > { %v3898_v23 = vadd.f32 %v3897_v15, %v3514_v34  ;;  %v3971_v28 = vadd.f32 %v3970_v3, %v3585_v25  ;;  %v5230_v29 = vpop.f32.mrb[81].mxu0  ;;  %v5236_v11 = vpop.f32.mrb[77].mxu1 }
0x1e90   : > { %v3900_v30 = vpop.f32.mrb[82].mxu0  ;;  %v3973_v51 = vpop.f32.mrb[78].mxu1  ;;  %v3348_v29 = vadd.f32 1.0, %v6553_v56  ;;  %v5421_v11 = vld [vmem:[%s6850_s16 + $0x28] sm:$0xff]   ;;  %v4189_v56 = vrot.slane %v6574_v12, %v5986_v13 }
0x1e91   : > { %v5231_v40 = vpop.f32.mrb[83].mxu0  ;;  %v5237_v52 = vpop.f32.mrb[79].mxu1  ;;  %v3977_v9 = vsel %vm3976_vm10, %v3898_v23, -inf  ;;  %v3980_v35 = vsel %vm1326_vm4, %v3971_v28, -inf  ;;  %v5423_v13 = vld [vmem:[%s6852_s18 + $0x88] sm:$0xff]  }
0x1e92   : > { %3978 = vmax.xlane.f32.xlu0 %v3977_v9  ;;  %v4194_v9 = vrot.slane %v6574_v12, %v5989_v19  ;;  %v5424_v19 = vld [vmem:[%s6852_s18 + $0x90] sm:$0xff]   ;;  %v5425_v12 = vld [vmem:[%s6852_s18 + $0x98] sm:$0xff]  }
0x1e96   : > { %3981 = vmax.xlane.f32.xlu0 %v3980_v35 }
0x1eac   : > { %4002 = vrot.lane.b32.xlu0 %v4000_v21, %s6929_s7 }
0x1eb0   : > { %4051 = vrot.lane.b32.xlu0 %v3991_v36, %s6929_s7 }
0x1f1f   : > { %v3979_v38 = vpop.xlane.xlu0 %3978 }
0x1f23   : > { %v3982_v57 = vpop.xlane.xlu0 %3981 }
0x1f24   : > { %v3983_v39 = vmax.f32 %v3979_v38, %v3982_v57  ;;  %v5422_v38 = vld [vmem:[%s6852_s18 + $0x80] sm:$0xff]  }
0x1f25   : > { %v5426_v57 = vld [vmem:[%s6852_s18 + $0xa0] sm:$0xff]  }
0x1f26   : > { %v3984_v60 = vsub.f32 %v3898_v23, %v3983_v39  ;;  %v3992_v37 = vsub.f32 %v3971_v28, %v3983_v39  ;;  %v5427_v39 = vld [vmem:[%s6852_s18 + $0xa8] sm:$0xff]  }
0x1f27   : > { %v4003_v5 = vpop.permute.xlu0 %4002 }
0x1f28   : > { %v3985_v43 = vmul.f32 1.442695, %v3984_v60  ;;  %v3993_v61 = vmul.f32 1.442695, %v3992_v37  ;;  %v4008_v63 = vsel %vm1345_vm5, %v4003_v5, 0  ;;  %v5428_v60 = vld [vmem:[%s6852_s18 + $0xb0] sm:$0xff]  }
0x1f29   : > { %5239 = vmatpush3.bf16.msra.mxu0 %v4008_v63  ;;  %v5429_v37 = vld [vmem:[%s6852_s18 + $0xb8] sm:$0xff]  }
0x1f2a   : > { %5472 = vpow2.f32 %v3985_v43  ;;  %5244 = vmatprep.subr.bf16.mxu0 %v5608_v1  ;;  %v4751_v43 = vld [vmem:[%s6851_s17 + $0x2] ss:$0 sm:$0xff] }
0x1f2b   : > { %5474 = vpow2.f32 %v3993_v61  ;;  %v4052_v59 = vpop.permute.xlu0 %4051 }
0x1f2c   : > { %v4057_v49 = vsel %vm2447_vm9, %v4052_v59, 0 }
0x1f34   : > { %v5473_v7 = vpop.eup %5472 }
0x1f35   : > { %v5475_v0 = vpop.eup %5474  ;;  %v3987_v58 = vsel %vm3976_vm10, %v5473_v7, 0.0  ;;  %v3990_v4 = vpack.c.bf16 %v5473_v7, %v5473_v7 }
0x1f36   : > { %v3995_v2 = vsel %vm1326_vm4, %v5475_v0, 0.0  ;;  %3988 = vadd.xlane.f32.xlu0 %v3987_v58  ;;  %v3999_v47 = vpack.c.bf16 %v5475_v0, %v5475_v0 }
0x1f37   : > { %3996 = vadd.xlane.f32.xlu1 %v3995_v2 }
0x1f38   : > { %5241 = vmatmul.mubr.msk.bf16.vlgmr.msra.gmra.mrb[84].mxu0 %vm1341_vm6, %v3999_v47 }
0x1f39   : > { %5245 = vmatpush3.bf16.msra.mxu0 %v4057_v49  ;;  %5246 = vmatprep.mubr.msk.bf16.mxu0 %vm5609_vm0, %v5608_v1 }
0x1f3a   : > { %5264 = vmatprep.subr.bf16.mxu0 %v5608_v1 }
0x1f44   : > { %5247 = vmatmul.mubr.msk.bf16.vlgmr.msra.gmra.mrb[84].mxu0 %vm2367_vm8, %v3990_v4 }
0x1f45   : > { %5280 = vmatprep.mubr.msk.bf16.mxu0 %vm5609_vm0, %v5608_v1  ;;  %5265 = vmatpush3.bf16.msra.mxu0 %v5422_v38 }
0x1f46   : > { %5266 = vmatprep.subr.bf16.mxu0 %v5608_v1 }
0x1f49   : > { %5267 = vmatpush3.bf16.msra.mxu0 %v5423_v13 }
0x1f4a   : > { %5268 = vmatprep.subr.bf16.mxu0 %v5608_v1 }
0x1f4c   : > { %4163 = vrot.lane.b32.xlu0 %v6616_v54, %s6929_s7 }
0x1f4d   : > { %5269 = vmatpush3.bf16.msra.mxu0 %v5424_v19 }
0x1f4e   : > { %5270 = vmatprep.subr.bf16.mxu0 %v5608_v1 }
0x1f51   : > { %5271 = vmatpush3.bf16.msra.mxu0 %v5425_v12 }
0x1f52   : > { %5272 = vmatprep.subr.bf16.mxu0 %v5608_v1 }
0x1f55   : > { %5273 = vmatpush3.bf16.msra.mxu0 %v5426_v57 }
0x1f56   : > { %5274 = vmatprep.subr.bf16.mxu0 %v5608_v1 }
0x1f59   : > { %5275 = vmatpush3.bf16.msra.mxu0 %v5427_v39 }
0x1f5a   : > { %5276 = vmatprep.subr.bf16.mxu0 %v5608_v1 }
0x1f5d   : > { %5277 = vmatpush3.bf16.msra.mxu0 %v5428_v60 }
0x1f5e   : > { %5278 = vmatprep.subr.bf16.mxu0 %v5608_v1 }
0x1f61   : > { %5279 = vmatpush3.bf16.msra.mxu0 %v5429_v37 }
0x1fc3   : > { %v3989_v48 = vpop.xlane.xlu0 %3988 }
0x1fc4   : > { %v3997_v14 = vpop.xlane.xlu1 %3996 }
0x1fc5   : > { %v3998_v24 = vadd.f32 %v3997_v14, %v3989_v48 }
0x1fc7   : > { %5476 = vrcp.f32 %v3998_v24  ;;  %v4164_v41 = vpop.permute.xlu0 %4163 }
0x1fd1   : > { %v5477_v20 = vpop.eup %5476 }
0x2017   : > { %v4093_v16 = vpop.f32.mrb[84].mxu0 }
0x2018   : > { %v4100_v8 = vmul.f32 %v5477_v20, %v4093_v16  ;;  %v5248_v32 = vpop.f32.mrb[85].mxu0 }
0x2019   : > { %v4096_v42 = vpop.f32.mrb[86].mxu0 }
0x201a   : > { %v4104_v10 = vpack.c.bf16 %v4100_v8, %v4100_v8  ;;  %v5249_v46 = vpop.f32.mrb[87].mxu0 }
0x201c   : > { %5253 = vmatmul.mubr.msk.bf16.vlgmr.msra.gmra.mrb[80].mxu1 %vm882_vm1, %v4104_v10 }
0x201d   : > { %5260 = vmatprep.mubr.msk.bf16.mxu1 %vm5609_vm0, %v5608_v1 }
0x20ef   : > { %v4156_v55 = vpop.f32.mrb[80].mxu1 }
0x20f0   : > { %v4157_v44 = vadd.f32 %v4743_v50, %v4156_v55  ;;  %v5254_v6 = vpop.f32.mrb[81].mxu1 }
0x20f1   : > { %v4159_v22 = vpop.f32.mrb[82].mxu1 }
0x20f2   : > { %v4166_v17 = vmul.f32 %v4164_v41, %v4157_v44  ;;  %v5255_v18 = vpop.f32.mrb[83].mxu1 }
0x20f4   : > { %v4171_v53 = vmul.f32 %v4170_v27, %v4166_v17 }
0x20f6   : > { %v6665_v34 = vadd.f32 %v4171_v53, %v6439_v62  ;;  %v5420_v62 = vld [vmem:[%s6850_s16 + $0x20] sm:$0xff]  }
0x20f7   : > { %5257 = vmatpush3.bf16.msra.mxu1 %v5420_v62 }
0x20f8   : > { %v4173_v25 = vsel %vm1154_vm2, %v6665_v34, 0.0  ;;  %5258 = vmatprep.subr.bf16.mxu1 %v5608_v1 }
0x20f9   : > { %4174 = vadd.xlane.f32.xlu0 %v4173_v25 }
0x20fb   : > { %5259 = vmatpush3.bf16.msra.mxu1 %v5421_v11 }
0x2186   : > { %v4175_v15 = vpop.xlane.xlu0 %4174 }
0x2187   : > { %v4176_v3 = vmul.f32 0.03125, %v4175_v15 }
0x2189   : > { %v4177_v23 = vsub.f32 %v6665_v34, %v4176_v3 }
0x218b   : > { %v4178_v28 = vmul.f32 %v4177_v23, %v4177_v23 }
0x218d   : > { %v4179_v31 = vsel %vm1154_vm2, %v4178_v28, 0.0 }
0x218e   : > { %4180 = vadd.xlane.f32.xlu1 %v4179_v31 }
0x219f   : > { %4266 = vrot.lane.b32.xlu1 %v6616_v54, %s6930_s0 }
0x21a3   : > { %4268 = vrot.lane.b32.xlu1 %v3348_v29, %s6930_s0  ;;  %s6733_s0 = scalar_lea.sflag [#allocation5], %s4412_s28 }
0x221b   : > { %v4181_v30 = vpop.xlane.xlu1 %4180 }
0x221c   : > { %v4182_v51 = vmul.f32 0.03125, %v4181_v30 }
0x221e   : > { %v4183_v40 = vadd.f32 1e-05, %v4182_v51 }
0x221f   : > { %v4267_v5 = vpop.permute.xlu1 %4266 }
0x2220   : > { %5478 = vrsqrt.f32 %v4183_v40 }
0x2223   : > { %v6721_v61 = vpop.permute.xlu1 %4268 }
0x2224   : > { %v4270_v59 = vsel %vm1556_vm7, %v4267_v5, %v6721_v61 }
0x222a   : > { %v5479_v54 = vpop.eup %5478 }
0x222b   : > { %v4185_v52 = vmul.f32 %v5479_v54, %v4177_v23 }
0x222d   : > { %v4190_v35 = vmul.f32 %v4189_v56, %v4185_v52 }
0x222f   : > { %v4195_v21 = vadd.f32 %v4194_v9, %v4190_v35 }
0x2231   : > { %v4201_v36 = vpack.c.bf16 %v4195_v21, %v4195_v21 }
0x2233   : > { %5261 = vmatmul.mubr.msk.bf16.vlgmr.msra.gmra.mrb[84].mxu1 %vm1203_vm3, %v4201_v36 }
0x2306   : > { %v4259_v63 = vpop.f32.mrb[84].mxu1 }
0x2307   : > { %v4260_v7 = vadd.f32 %v4751_v43, %v4259_v63  ;;  %v5262_v0 = vpop.f32.mrb[85].mxu1 }
0x2308   : > { %v4262_v58 = vpop.f32.mrb[86].mxu1 }
0x2309   : > { %v4272_v2 = vmul.f32 %v4270_v59, %v4260_v7  ;;  %v5263_v47 = vpop.f32.mrb[87].mxu1 }
0x230b   : > { %v4273_v1 = vmul.f32 %v4272_v2, %v4272_v2 }
0x230d   : > { %v4274_v49 = vmul.f32 %v4273_v1, %v4272_v2 }
0x230f   : > { %v4275_v4 = vmul.f32 0.044715, %v4274_v49 }
0x2311   : > { %v4276_v45 = vadd.f32 %v4275_v4, %v4272_v2 }
0x2313   : > { %v4277_v14 = vmul.f32 0.7978846, %v4276_v45 }
0x2315   : > { %5480 = vtanh.f32 %v4277_v14 }
0x231f   : > { %v5481_v48 = vpop.eup %5480 }
0x2320   : > { %v4279_v24 = vadd.f32 1.0, %v5481_v48 }
0x2322   : > { %v4280_v20 = vmul.f32 0.5, %v4279_v24 }
0x2324   : > { %v4281_v16 = vmul.f32 %v4280_v20, %v4272_v2 }
0x2326   : > { %v4299_v8 = vpack.c.bf16 %v4281_v16, %v4281_v16 }
0x2328   : > { %5281 = vmatmul.mubr.bf16.vlgmr.msra.gmra.mrb[88].mxu0 %v4299_v8 }
0x2329   : > { %5497 = shalt.err (!%p5494_p3)
}
0x232a   : > { %s5498_s21 = scalar_lea.hbm %s6730_s8, 128  ;;  %s5502_s4 = scalar_lea.hbm %s6861_s27, 256 }
0x232b   : > { %p5499_p4 = scmp.ne.s32.totalorder %s6730_s8, %s5498_s21  ;;  %p5503_p9 = scmp.lt.u32.totalorder %s6730_s8, %s6861_s27 }
0x232c   : > { %p5504_p10 = scmp.lt.u32.totalorder %s5502_s4, %s5498_s21  ;;  %p5506_p12 = scmp.lt.u32.totalorder %s5498_s21, %s6730_s8 }
0x232d   : > { %p5500_p7 = pnand %p5499_p4, %p5801_p5 }
0x232e   : > { %p5505_p11 = por %p5504_p10, %p5503_p9 }
0x232f   : > { %p5501_p8 = pneg %p5500_p7 }
0x2330   : > { %p5507_p13 = por %p5506_p12, %p5505_p11 }
0x2332   : > { %p5508_p0 = pnand %p5507_p13, %p5501_p8 }
0x2334   : > { %5511 = shalt.err (!%p5508_p0)
}
0x2335   : > { %5297 = dma.vmem_to_hbm [thread:$0]  (%p5801_p5), %s4445_s1, 128, %s6730_s8, %s6733_s0  }
0x2336   : > { %s4784_s11 = sshll.u32 %s5782_s3, 6  ;;  %s4431_s7 = sshll.u32 %s6073_s10, 4  ;;  %s4432_s7 = int_to_ptr.vmem [resolvable:$true] %s4431_s7 }
0x2337   : > { %s6760_s21 = scalar_lea.hbm %s6860_s26, %s4784_s11  ;;  %s4408_s30 = scalar_lea.sflag [#allocation3], %s6063_s9 }
0x2338   : > { %s5512_s4 = scalar_lea.vmem %s4432_s7, 64  ;;  %s5614_s5 = smov [#allocation2]  }
0x2339   : > { %p5513_p1 = scmp.ne.s32.totalorder %s4432_s7, %s5512_s4  ;;  %s5516_s6 = sshll.u32 %s5614_s5, 4  ;;  %s5517_s6 = int_to_ptr.vmem [resolvable:$false] %s5516_s6 }
0x233a   : > { %s5518_s12 = scalar_lea.vmem %s5517_s6, 128  ;;  %p5519_p4 = scmp.lt.s32.totalorder %s4432_s7, %s5517_s6 }
0x233b   : > { %p5514_p2 = pnand %p5513_p1, %p5801_p5  ;;  %p5520_p7 = scmp.lt.s32.totalorder %s5518_s12, %s5512_s4 }
0x233d   : > { %p5515_p3 = pneg %p5514_p2  ;;  %p5521_p8 = por %p5520_p7, %p5519_p4 }
0x233f   : > { %p5522_p9 = pnand %p5521_p8, %p5515_p3 }
0x2341   : > { %5525 = shalt.err (!%p5522_p9)
}
0x2342   : > { %s5526_s10 = scalar_lea.hbm %s6760_s21, 64  ;;  %s5530_s22 = scalar_lea.hbm %s6860_s26, 128 }
0x2343   : > { %p5527_p10 = scmp.ne.s32.totalorder %s6760_s21, %s5526_s10  ;;  %p5531_p13 = scmp.lt.u32.totalorder %s6760_s21, %s6860_s26 }
0x2344   : > { %p5532_p0 = scmp.lt.u32.totalorder %s5530_s22, %s5526_s10  ;;  %p5534_p2 = scmp.lt.u32.totalorder %s5526_s10, %s6760_s21 }
0x2345   : > { %p5528_p11 = pnand %p5527_p10, %p5801_p5 }
0x2346   : > { %p5533_p1 = por %p5532_p0, %p5531_p13 }
0x2347   : > { %p5529_p12 = pneg %p5528_p11 }
0x2348   : > { %p5535_p3 = por %p5534_p2, %p5533_p1 }
0x234a   : > { %p5536_p4 = pnand %p5535_p3, %p5529_p12 }
0x234c   : > { %5539 = shalt.err (!%p5536_p4)
}
0x234d   : > { %5296 = dma.vmem_to_hbm [thread:$0]  (%p5801_p5), %s4432_s7, 64, %s6760_s21, %s4408_s30   ;;  %v4772_v32 = vld [vmem:[%s6853_s19 + $0x2] ss:$0 sm:$0xff]  ;;  %v4401_v46 = vrot.slane %v6657_v26, %v5889_v33 }
0x234e   : > { %s6932_s6 = sshll.u32 %s6063_s9, 2  ;;  %s6933_s30 = sld [smem:[#allocation31_spill]] }
0x234f   : > { %s854_s10 = scalar_lea.vmem [#allocation6], %s6932_s6  ;;  %s5615_s9 = smov [#allocation6]  }
0x2350   : > { %s4457_s8 = sshll.u32 %s854_s10, 4  ;;  %s5544_s5 = sshll.u32 %s5615_s9, 4  ;;  %s4458_s8 = int_to_ptr.vmem [resolvable:$true] %s4457_s8  ;;  %s5545_s5 = int_to_ptr.vmem [resolvable:$false] %s5544_s5 }
0x2351   : > { %s5540_s28 = scalar_lea.vmem %s4458_s8, 64  ;;  %s5546_s12 = scalar_lea.vmem %s5545_s5, 128 }
0x2352   : > { %p5541_p7 = scmp.ne.s32.totalorder %s4458_s8, %s5540_s28  ;;  %p5547_p10 = scmp.lt.s32.totalorder %s4458_s8, %s5545_s5 }
0x2353   : > { %p5548_p11 = scmp.lt.s32.totalorder %s5546_s12, %s5540_s28 }
0x2354   : > { %s6934_s1 = smov %s6933_s30  ;;  %s6794_s22 = scalar_lea.hbm %s6933_s30, %s4784_s11 }
0x2355   : > { %p5542_p8 = pnand %p5541_p7, %p5801_p5  ;;  %p5549_p12 = por %p5548_p11, %p5547_p10 }
0x2357   : > { %p5543_p9 = pneg %p5542_p8 }
0x2359   : > { %p5550_p13 = pnand %p5549_p12, %p5543_p9 }
0x23fb   : > { %v4390_v42 = vpop.f32.mrb[88].mxu0 }
0x23fc   : > { %v4391_v10 = vadd.f32 %v4772_v32, %v4390_v42  ;;  %v5282_v50 = vpop.f32.mrb[89].mxu0 }
0x23fd   : > { %v4393_v55 = vpop.f32.mrb[90].mxu0 }
0x23fe   : > { %v4397_v44 = vmul.f32 %v4391_v10, %v6721_v61  ;;  %v5283_v27 = vpop.f32.mrb[91].mxu0 }
0x2400   : > { %v4402_v6 = vmul.f32 %v4401_v46, %v4397_v44 }
0x2402   : > { %v4403_v41 = vadd.f32 %v4402_v6, %v6665_v34 }
0x2404   : > { %4406 = vst.msk [vmem:[%s854_s10] sm:$0xf] %vm1154_vm2, %v4403_v41 }
0x2405   : > { %5553 = shalt.err (!%p5550_p13)
}
0x2406   : > { %s5554_s3 = scalar_lea.hbm %s6794_s22, 64  ;;  %s5558_s6 = scalar_lea.hbm %s6934_s1, 128 }
0x2407   : > { %p5555_p0 = scmp.ne.s32.totalorder %s6794_s22, %s5554_s3  ;;  %p5559_p3 = scmp.lt.u32.totalorder %s6794_s22, %s6934_s1 }
0x2408   : > { %p5560_p4 = scmp.lt.u32.totalorder %s5558_s6, %s5554_s3  ;;  %p5562_p8 = scmp.lt.u32.totalorder %s5554_s3, %s6794_s22 }
0x2409   : > { %p5556_p1 = pnand %p5555_p0, %p5801_p5 }
0x240a   : > { %p5561_p7 = por %p5560_p4, %p5559_p3 }
0x240b   : > { %p5557_p2 = pneg %p5556_p1 }
0x240c   : > { %p5563_p9 = por %p5562_p8, %p5561_p7 }
0x240e   : > { %p5564_p10 = pnand %p5563_p9, %p5557_p2 }
0x2410   : > { %5567 = shalt.err (!%p5564_p10)
}
0x2411   : > { %5298 = dma.vmem_to_hbm [thread:$0]  (%p5801_p5), %s4458_s8, 64, %s6794_s22, %s6733_s0  }
0x2412 PF: > { %s6935_s21 = sld [smem:[#allocation12_spill]]  ;;  %s6936_s30 = sld [smem:[#allocation9_spill]] }
0x2418   : > { %p5312_p11 = scmp.ge.s32.totalorder %s6935_s21, 2  ;;  %s4469_s9 = sand.u32 1, %s6936_s30  }
0x2419   : > { %s4470_s5 = scalar_lea.sflag [#allocation3], %s4469_s9 }
0x241a   : > { %p5303_p12 = pnand %p5312_p11, %p5805_p6 }
0x241c   : > { %5585 = dma.done.wait (!%p5303_p12), %s4470_s5, 64  }
0x241d   : > { %5587 = vsyncadd (!%p5303_p12), %s4470_s5, 4294967232  ;;  %s6938_s12 = sadd.s32 4294967294, %s6935_s21  }
0x241e   : > { %s4478_s3 = sand.u32 1, %s6938_s12  }
0x241f   : > { %s4479_s11 = scalar_lea.sflag [#allocation5], %s4478_s3 }
0x2420   : > { %5589 = dma.done.wait (!%p5303_p12), %s4479_s11, 192  }
0x2421   : > { %5591 = vsyncadd (!%p5303_p12), %s4479_s11, 4294967104  ;;  %s6939_s30 = sld [smem:[#allocation13_spill]]  ;;  %s6940_s8 = sld [smem:[#allocation10_spill]] }
0x2422   : > { %s6941_s5 = sld [smem:[#allocation11_spill]]  ;;  %s6942_s9 = sld [smem:[#allocation14_spill]] }
0x2427   : > { %p42_p5 = scmp.ge.s32.totalorder %s6939_s30, 4  }
0x2429   :  { %44 = sbr.rel (!%p42_p5) target bundleno = 22 (0x16), region = 218 }
0x2430   :  { %4493 = vsyncpa [#allocation3], 1 }
0x2431   :  { %4495 = vsyncpa [#allocation3 + $0x1], 1 }
0x2432   :  { %4496 = vsyncpa [#allocation5], 1 }
0x2433   :  { %4498 = vsyncpa [#allocation5 + $0x1], 1 }

</bundles_post_ra>
